<compile_context>
chip_gen: v5e
topology: v5e:2x2
jax: 0.10.0
libtpu: 0.0.40
codegen_flags: <defaults>
</compile_context>

<pallas_src>
import functools
import math

import jax
import jax.numpy as jnp
from jax.experimental import pallas as pl
from jax.experimental.pallas import tpu as pltpu

_GELU_C = math.sqrt(2.0 / math.pi)


def _gelu_tanh(x):
    # tanh-approximate GELU (EUP tanh).
    # TODO(synk): PyTorch nn.GELU() defaults to exact erf; erf has no reliable
    # Mosaic lowering, so the tanh approximation (max abs diff ~1e-3) is used
    # in-kernel. The pure-JAX reference below uses the exact erf form.
    return 0.5 * x * (1.0 + jnp.tanh(_GELU_C * (x + 0.044715 * x * x * x)))


def _sigmoid_in_kernel(x):
    # 1/(1+exp(-x)) with the divide on the EUP (approx reciprocal), not the VALU.
    return pl.reciprocal(1.0 + jnp.exp(-x), approx=True)


def _ffn_kernel(x_ref, ln_w_ref, ln_b_ref,
                wc1_ref, bc1_ref, wc2_ref, bc2_ref,
                wp1_ref, bp1_ref, wp2_ref, bp2_ref,
                w1a_ref, w1b_ref, b1_ref, w2_ref, b2_ref,
                o_ref, *, eps):
    """One grid step == one batch element.

    x_ref : (1, C,  HW)  NCHW slab (f32)
    o_ref : (1, Do, HW)  NCHW slab (f32)
    """
    f32 = jnp.float32
    bf16 = jnp.bfloat16

    # NCHW slab -> pixel rows (HW, C): channels on the 128-lane axis (XLU transpose).
    x = jnp.transpose(x_ref[0], (1, 0))                          # (HW, C) f32

    # ---- LayerNorm2d == per-pixel LayerNorm over the channel (lane) axis, f32 ----
    mu = jnp.mean(x, axis=-1, keepdims=True)
    xc = x - mu
    var = jnp.mean(xc * xc, axis=-1, keepdims=True)
    xn = xc * jax.lax.rsqrt(var + eps) * ln_w_ref[...] + ln_b_ref[...]   # (HW, C)
    xn_bf = xn.astype(bf16)

    # ---- Pixel attention: per-pixel scalar gate (wp1 is the big dot -> bf16) ----
    hp = _gelu_tanh(jnp.dot(xn_bf, wp1_ref[...], preferred_element_type=f32)
                    + bp1_ref[...])                              # (HW, red) f32
    gp = _sigmoid_in_kernel(
        jnp.dot(hp, wp2_ref[...], preferred_element_type=f32) + bp2_ref[...])  # (HW, 1)
    pa = gp * xn                                                 # lane broadcast

    # ---- Channel attention: global avg-pool over this batch element + tiny MLP ----
    pooled = jnp.mean(xn, axis=0, keepdims=True)                 # (1, C)
    hc = _gelu_tanh(jnp.dot(pooled, wc1_ref[...], preferred_element_type=f32)
                    + bc1_ref[...])                              # (1, red)
    gc = _sigmoid_in_kernel(
        jnp.dot(hc, wc2_ref[...], preferred_element_type=f32) + bc2_ref[...])   # (1, C)
    ca = gc * xn                                                 # sublane broadcast, no concat

    # ---- fc1 on cat([ca*x, pa*x]) expressed as a split matmul (no 2C concat) ----
    h = jnp.dot(ca.astype(bf16), w1a_ref[...], preferred_element_type=f32)
    h = h + jnp.dot(pa.astype(bf16), w1b_ref[...], preferred_element_type=f32)
    h = _gelu_tanh(h + b1_ref[...])                              # (HW, hidden)

    # ---- fc2 ----
    y = jnp.dot(h.astype(bf16), w2_ref[...], preferred_element_type=f32) + b2_ref[...]

    # Rows -> NCHW slab; one lane-dense (Do, HW) store.
    o_ref[0] = jnp.transpose(y, (1, 0)).astype(o_ref.dtype)


def ffn_pallas(x_nchw, params):
    """x_nchw: (B, C, H, W) float32. Returns (B, out_dim, H, W)."""
    B, C, H, W = x_nchw.shape
    HW = H * W
    out_dim = params["w2"].shape[1]

    f32, bf16 = jnp.float32, jnp.bfloat16
    x_slab = x_nchw.reshape(B, C, HW)            # contiguous reshape, no HBM transpose

    args = (
        x_slab,
        params["ln_w"].reshape(1, C).astype(f32),
        params["ln_b"].reshape(1, C).astype(f32),
        params["wc1"].astype(f32), params["bc1"].reshape(1, -1).astype(f32),
        params["wc2"].astype(f32), params["bc2"].reshape(1, -1).astype(f32),
        params["wp1"].astype(bf16), params["bp1"].reshape(1, -1).astype(f32),
        params["wp2"].astype(f32), params["bp2"].reshape(1, 1).astype(f32),
        params["w1a"].astype(bf16), params["w1b"].astype(bf16),
        params["b1"].reshape(1, -1).astype(f32),
        params["w2"].astype(bf16), params["b2"].reshape(1, -1).astype(f32),
    )

    def resident_spec(a):
        # Weights/biases: full-array block mapped to block (0,...,0) every step
        # -> resident in VMEM across the whole batch grid.
        return pl.BlockSpec(a.shape, lambda b, _n=a.ndim: (0,) * _n)

    in_specs = [pl.BlockSpec((1, C, HW), lambda b: (b, 0, 0))]
    in_specs += [resident_spec(a) for a in args[1:]]

    kernel = functools.partial(_ffn_kernel, eps=1e-6)

    out_slab = pl.pallas_call(
        kernel,
        out_shape=jax.ShapeDtypeStruct((B, out_dim, HW), x_nchw.dtype),
        grid_spec=pltpu.PrefetchScalarGridSpec(
            num_scalar_prefetch=0,
            grid=(B,),                                   # one step per batch element
            in_specs=in_specs,
            out_specs=pl.BlockSpec((1, out_dim, HW), lambda b: (b, 0, 0)),
        ),
        compiler_params=pltpu.CompilerParams(
            dimension_semantics=("parallel",),           # megacore-shardable on v7x
            vmem_limit_bytes=32 * 1024 * 1024,
        ),
    )(*args)

    return out_slab.reshape(B, out_dim, H, W)


def ffn_reference(x_nchw, params):
    """Pure-JAX f32 reference replicating the PyTorch FFN forward (exact-erf GELU)."""
    eps = 1e-6
    gelu = lambda v: jax.nn.gelu(v, approximate=False)   # PyTorch nn.GELU() default
    sigmoid = jax.nn.sigmoid

    xh = jnp.transpose(x_nchw, (0, 2, 3, 1))             # (B,H,W,C)
    mu = jnp.mean(xh, -1, keepdims=True)
    xc = xh - mu
    var = jnp.mean(xc * xc, -1, keepdims=True)
    xn = xc * jax.lax.rsqrt(var + eps) * params["ln_w"] + params["ln_b"]

    # channel attention (AdaptiveAvgPool2d(1) -> 1x1 conv -> GELU -> 1x1 conv -> sigmoid)
    pooled = jnp.mean(xn, axis=(1, 2))                   # (B, C)
    gc = sigmoid(jnp.dot(gelu(jnp.dot(pooled, params["wc1"]) + params["bc1"]),
                         params["wc2"]) + params["bc2"])
    ca_branch = gc[:, None, None, :] * xn

    # pixel attention
    gp = sigmoid(jnp.dot(gelu(jnp.dot(xn, params["wp1"]) + params["bp1"]),
                         params["wp2"]) + params["bp2"])
    pa_branch = gp * xn

    feat = jnp.concatenate([ca_branch, pa_branch], axis=-1)
    w1 = jnp.concatenate([params["w1a"], params["w1b"]], axis=0)
    h = gelu(jnp.dot(feat, w1) + params["b1"])
    y = jnp.dot(h, params["w2"]) + params["b2"]
    return jnp.transpose(y, (0, 3, 1, 2))


if __name__ == "__main__":
    # Module hyper-parameters; dim chosen lane-dense (128) per the perf review.
    dim = 128
    hidden_dim = 256
    out_dim = 128
    red = dim // 8
    B, H, W = 2, 16, 16

    key = jax.random.PRNGKey(0)
    ks = jax.random.split(key, 16)

    def u(k, shape, fan_in):
        b = 1.0 / math.sqrt(fan_in)
        return jax.random.uniform(k, shape, jnp.float32, -b, b)

    x = jax.random.normal(ks[0], (B, dim, H, W), dtype=jnp.float32)
    params = dict(
        ln_w=jnp.ones((dim,), jnp.float32) + 0.1 * jax.random.normal(ks[1], (dim,), jnp.float32),
        ln_b=0.1 * jax.random.normal(ks[2], (dim,), jnp.float32),
        wc1=u(ks[3], (dim, red), dim),        bc1=u(ks[4], (red,), dim),
        wc2=u(ks[5], (red, dim), red),        bc2=u(ks[6], (dim,), red),
        wp1=u(ks[7], (dim, red), dim),        bp1=u(ks[8], (red,), dim),
        wp2=u(ks[9], (red, 1), red),          bp2=u(ks[10], (1,), red),
        w1a=u(ks[11], (dim, hidden_dim), 2 * dim),
        w1b=u(ks[12], (dim, hidden_dim), 2 * dim),
        b1=u(ks[13], (hidden_dim,), 2 * dim),
        w2=u(ks[14], (hidden_dim, out_dim), hidden_dim),
        b2=u(ks[15], (out_dim,), hidden_dim),
    )

    out = jax.block_until_ready(ffn_pallas(x, params))
    with jax.default_matmul_precision("highest"):
        ref = jax.block_until_ready(ffn_reference(x, params))

    assert out.shape == (B, out_dim, H, W)
    # Tolerance covers bf16 MXU operands + tanh-GELU vs exact erf + approx reciprocal.
    assert jnp.allclose(out, ref, atol=2e-2, rtol=2e-2), "mismatch vs reference"

    print("KERNEL_OK")
</pallas_src>

<mosaic_0001>
module attributes {stable_mosaic.version = 11 : i64} {
  func.func @_ffn_kernel(%arg0: i32, %arg1: memref<1x128x256xf32, #tpu.memory_space<vmem>>, %arg2: memref<1x128xf32, #tpu.memory_space<vmem>>, %arg3: memref<1x128xf32, #tpu.memory_space<vmem>>, %arg4: memref<128x16xf32, #tpu.memory_space<vmem>>, %arg5: memref<1x16xf32, #tpu.memory_space<vmem>>, %arg6: memref<16x128xf32, #tpu.memory_space<vmem>>, %arg7: memref<1x128xf32, #tpu.memory_space<vmem>>, %arg8: memref<128x16xbf16, #tpu.memory_space<vmem>>, %arg9: memref<1x16xf32, #tpu.memory_space<vmem>>, %arg10: memref<16x1xf32, #tpu.memory_space<vmem>>, %arg11: memref<1x1xf32, #tpu.memory_space<vmem>>, %arg12: memref<128x256xbf16, #tpu.memory_space<vmem>>, %arg13: memref<128x256xbf16, #tpu.memory_space<vmem>>, %arg14: memref<1x256xf32, #tpu.memory_space<vmem>>, %arg15: memref<256x128xbf16, #tpu.memory_space<vmem>>, %arg16: memref<1x128xf32, #tpu.memory_space<vmem>>, %arg17: memref<1x128x256xf32, #tpu.memory_space<vmem>>) attributes {dimension_semantics = [#tpu.dimension_semantics<parallel>], iteration_bounds = array<i64: 2>, scalar_prefetch = 0 : i64, scratch_operands = 0 : i64, tpu.core_type = #tpu.core_type<tc>, window_params = [{transform_indices = @transform_0, window_bounds = array<i64: 1, 128, 256>}, {pipeline_mode = #tpu.pipeline_mode<synchronous>, transform_indices = @transform_1, window_bounds = array<i64: 1, 128>}, {pipeline_mode = #tpu.pipeline_mode<synchronous>, transform_indices = @transform_2, window_bounds = array<i64: 1, 128>}, {pipeline_mode = #tpu.pipeline_mode<synchronous>, transform_indices = @transform_3, window_bounds = array<i64: 128, 16>}, {pipeline_mode = #tpu.pipeline_mode<synchronous>, transform_indices = @transform_4, window_bounds = array<i64: 1, 16>}, {pipeline_mode = #tpu.pipeline_mode<synchronous>, transform_indices = @transform_5, window_bounds = array<i64: 16, 128>}, {pipeline_mode = #tpu.pipeline_mode<synchronous>, transform_indices = @transform_6, window_bounds = array<i64: 1, 128>}, {pipeline_mode = #tpu.pipeline_mode<synchronous>, transform_indices = @transform_7, window_bounds = array<i64: 128, 16>}, {pipeline_mode = #tpu.pipeline_mode<synchronous>, transform_indices = @transform_8, window_bounds = array<i64: 1, 16>}, {pipeline_mode = #tpu.pipeline_mode<synchronous>, transform_indices = @transform_9, window_bounds = array<i64: 16, 1>}, {pipeline_mode = #tpu.pipeline_mode<synchronous>, transform_indices = @transform_10, window_bounds = array<i64: 1, 1>}, {pipeline_mode = #tpu.pipeline_mode<synchronous>, transform_indices = @transform_11, window_bounds = array<i64: 128, 256>}, {pipeline_mode = #tpu.pipeline_mode<synchronous>, transform_indices = @transform_12, window_bounds = array<i64: 128, 256>}, {pipeline_mode = #tpu.pipeline_mode<synchronous>, transform_indices = @transform_13, window_bounds = array<i64: 1, 256>}, {pipeline_mode = #tpu.pipeline_mode<synchronous>, transform_indices = @transform_14, window_bounds = array<i64: 256, 128>}, {pipeline_mode = #tpu.pipeline_mode<synchronous>, transform_indices = @transform_15, window_bounds = array<i64: 1, 128>}, {transform_indices = @transform_16, window_bounds = array<i64: 1, 128, 256>}]} {
    %c0 = arith.constant 0 : index
    %c0_0 = arith.constant 0 : index
    %c0_1 = arith.constant 0 : index
    %0 = vector.load %arg1[%c0, %c0_0, %c0_1] : memref<1x128x256xf32, #tpu.memory_space<vmem>>, vector<1x128x256xf32>
    %1 = vector.shape_cast %0 : vector<1x128x256xf32> to vector<128x256xf32>
    %2 = tpu.transpose %1, [1, 0] : vector<128x256xf32> -> vector<256x128xf32>
    %cst = arith.constant dense<0.000000e+00> : vector<256xf32>
    %3 = vector.multi_reduction <add>, %2, %cst [1] : vector<256x128xf32> to vector<256xf32>
    %4 = vector.shape_cast %3 : vector<256xf32> to vector<256x1xf32>
    %cst_2 = arith.constant 1.280000e+02 : f32
    %5 = vector.broadcast %cst_2 : f32 to vector<256x1xf32>
    %6 = arith.divf %4, %5 : vector<256x1xf32>
    %7 = vector.broadcast %6 : vector<256x1xf32> to vector<256x128xf32>
    %8 = arith.subf %2, %7 : vector<256x128xf32>
    %9 = arith.mulf %8, %8 : vector<256x128xf32>
    %cst_3 = arith.constant dense<0.000000e+00> : vector<256xf32>
    %10 = vector.multi_reduction <add>, %9, %cst_3 [1] : vector<256x128xf32> to vector<256xf32>
    %11 = vector.shape_cast %10 : vector<256xf32> to vector<256x1xf32>
    %cst_4 = arith.constant 1.280000e+02 : f32
    %12 = vector.broadcast %cst_4 : f32 to vector<256x1xf32>
    %13 = arith.divf %11, %12 : vector<256x1xf32>
    %cst_5 = arith.constant 9.99999997E-7 : f32
    %14 = vector.broadcast %cst_5 : f32 to vector<256x1xf32>
    %15 = arith.addf %13, %14 : vector<256x1xf32>
    %16 = math.rsqrt %15 : vector<256x1xf32>
    %17 = vector.broadcast %16 : vector<256x1xf32> to vector<256x128xf32>
    %18 = arith.mulf %8, %17 : vector<256x128xf32>
    %c0_6 = arith.constant 0 : index
    %c0_7 = arith.constant 0 : index
    %19 = vector.load %arg2[%c0_6, %c0_7] : memref<1x128xf32, #tpu.memory_space<vmem>>, vector<1x128xf32>
    %20 = vector.broadcast %19 : vector<1x128xf32> to vector<256x128xf32>
    %21 = arith.mulf %18, %20 : vector<256x128xf32>
    %c0_8 = arith.constant 0 : index
    %c0_9 = arith.constant 0 : index
    %22 = vector.load %arg3[%c0_8, %c0_9] : memref<1x128xf32, #tpu.memory_space<vmem>>, vector<1x128xf32>
    %23 = vector.broadcast %22 : vector<1x128xf32> to vector<256x128xf32>
    %24 = arith.addf %21, %23 : vector<256x128xf32>
    %25 = arith.truncf %24 : vector<256x128xf32> to vector<256x128xbf16>
    %c0_10 = arith.constant 0 : index
    %c0_11 = arith.constant 0 : index
    %26 = vector.load %arg8[%c0_10, %c0_11] : memref<128x16xbf16, #tpu.memory_space<vmem>>, vector<128x16xbf16>
    %cst_12 = arith.constant dense<0.000000e+00> : vector<256x16xf32>
    %27 = tpu.matmul %25, %26, %cst_12 {dimension_numbers = #tpu.dot_dimension_numbers<[1], [0], [0], [1], [0, 0, 1, 1], [], []>} : vector<256x128xbf16>, vector<128x16xbf16>, vector<256x16xf32> -> vector<256x16xf32>
    %c0_13 = arith.constant 0 : index
    %c0_14 = arith.constant 0 : index
    %28 = vector.load %arg9[%c0_13, %c0_14] : memref<1x16xf32, #tpu.memory_space<vmem>>, vector<1x16xf32>
    %29 = vector.broadcast %28 : vector<1x16xf32> to vector<256x16xf32>
    %30 = arith.addf %27, %29 : vector<256x16xf32>
    %cst_15 = arith.constant 5.000000e-01 : f32
    %31 = vector.broadcast %cst_15 : f32 to vector<256x16xf32>
    %32 = arith.mulf %31, %30 : vector<256x16xf32>
    %cst_16 = arith.constant 4.471500e-02 : f32
    %33 = vector.broadcast %cst_16 : f32 to vector<256x16xf32>
    %34 = arith.mulf %33, %30 : vector<256x16xf32>
    %35 = arith.mulf %34, %30 : vector<256x16xf32>
    %36 = arith.mulf %35, %30 : vector<256x16xf32>
    %37 = arith.addf %30, %36 : vector<256x16xf32>
    %cst_17 = arith.constant 0.797884583 : f32
    %38 = vector.broadcast %cst_17 : f32 to vector<256x16xf32>
    %39 = arith.mulf %38, %37 : vector<256x16xf32>
    %40 = math.tanh %39 : vector<256x16xf32>
    %cst_18 = arith.constant 1.000000e+00 : f32
    %41 = vector.broadcast %cst_18 : f32 to vector<256x16xf32>
    %42 = arith.addf %41, %40 : vector<256x16xf32>
    %43 = arith.mulf %32, %42 : vector<256x16xf32>
    %c0_19 = arith.constant 0 : index
    %c0_20 = arith.constant 0 : index
    %44 = vector.load %arg10[%c0_19, %c0_20] : memref<16x1xf32, #tpu.memory_space<vmem>>, vector<16x1xf32>
    %cst_21 = arith.constant dense<0.000000e+00> : vector<256x1xf32>
    %45 = tpu.matmul %43, %44, %cst_21 {dimension_numbers = #tpu.dot_dimension_numbers<[1], [0], [0], [1], [0, 0, 1, 1], [], []>} : vector<256x16xf32>, vector<16x1xf32>, vector<256x1xf32> -> vector<256x1xf32>
    %c0_22 = arith.constant 0 : index
    %c0_23 = arith.constant 0 : index
    %46 = vector.load %arg11[%c0_22, %c0_23] : memref<1x1xf32, #tpu.memory_space<vmem>>, vector<1x1xf32>
    %47 = vector.broadcast %46 : vector<1x1xf32> to vector<256x1xf32>
    %48 = arith.addf %45, %47 : vector<256x1xf32>
    %cst_24 = arith.constant 0.000000e+00 : f32
    %49 = vector.broadcast %cst_24 : f32 to vector<256x1xf32>
    %50 = arith.subf %49, %48 : vector<256x1xf32>
    %51 = math.exp %50 : vector<256x1xf32>
    %cst_25 = arith.constant 1.000000e+00 : f32
    %52 = vector.broadcast %cst_25 : f32 to vector<256x1xf32>
    %53 = arith.addf %52, %51 : vector<256x1xf32>
    %54 = tpu.reciprocal %53 {approx = true} : vector<256x1xf32> -> vector<256x1xf32>
    %55 = vector.broadcast %54 : vector<256x1xf32> to vector<256x128xf32>
    %56 = arith.mulf %55, %24 : vector<256x128xf32>
    %cst_26 = arith.constant dense<0.000000e+00> : vector<128xf32>
    %57 = vector.multi_reduction <add>, %24, %cst_26 [0] : vector<256x128xf32> to vector<128xf32>
    %58 = vector.shape_cast %57 : vector<128xf32> to vector<1x128xf32>
    %cst_27 = arith.constant 2.560000e+02 : f32
    %59 = vector.broadcast %cst_27 : f32 to vector<1x128xf32>
    %60 = arith.divf %58, %59 : vector<1x128xf32>
    %c0_28 = arith.constant 0 : index
    %c0_29 = arith.constant 0 : index
    %61 = vector.load %arg4[%c0_28, %c0_29] : memref<128x16xf32, #tpu.memory_space<vmem>>, vector<128x16xf32>
    %cst_30 = arith.constant dense<0.000000e+00> : vector<1x16xf32>
    %62 = tpu.matmul %60, %61, %cst_30 {dimension_numbers = #tpu.dot_dimension_numbers<[1], [0], [0], [1], [0, 0, 1, 1], [], []>} : vector<1x128xf32>, vector<128x16xf32>, vector<1x16xf32> -> vector<1x16xf32>
    %c0_31 = arith.constant 0 : index
    %c0_32 = arith.constant 0 : index
    %63 = vector.load %arg5[%c0_31, %c0_32] : memref<1x16xf32, #tpu.memory_space<vmem>>, vector<1x16xf32>
    %64 = arith.addf %62, %63 : vector<1x16xf32>
    %cst_33 = arith.constant 5.000000e-01 : f32
    %65 = vector.broadcast %cst_33 : f32 to vector<1x16xf32>
    %66 = arith.mulf %65, %64 : vector<1x16xf32>
    %cst_34 = arith.constant 4.471500e-02 : f32
    %67 = vector.broadcast %cst_34 : f32 to vector<1x16xf32>
    %68 = arith.mulf %67, %64 : vector<1x16xf32>
    %69 = arith.mulf %68, %64 : vector<1x16xf32>
    %70 = arith.mulf %69, %64 : vector<1x16xf32>
    %71 = arith.addf %64, %70 : vector<1x16xf32>
    %cst_35 = arith.constant 0.797884583 : f32
    %72 = vector.broadcast %cst_35 : f32 to vector<1x16xf32>
    %73 = arith.mulf %72, %71 : vector<1x16xf32>
    %74 = math.tanh %73 : vector<1x16xf32>
    %cst_36 = arith.constant 1.000000e+00 : f32
    %75 = vector.broadcast %cst_36 : f32 to vector<1x16xf32>
    %76 = arith.addf %75, %74 : vector<1x16xf32>
    %77 = arith.mulf %66, %76 : vector<1x16xf32>
    %c0_37 = arith.constant 0 : index
    %c0_38 = arith.constant 0 : index
    %78 = vector.load %arg6[%c0_37, %c0_38] : memref<16x128xf32, #tpu.memory_space<vmem>>, vector<16x128xf32>
    %cst_39 = arith.constant dense<0.000000e+00> : vector<1x128xf32>
    %79 = tpu.matmul %77, %78, %cst_39 {dimension_numbers = #tpu.dot_dimension_numbers<[1], [0], [0], [1], [0, 0, 1, 1], [], []>} : vector<1x16xf32>, vector<16x128xf32>, vector<1x128xf32> -> vector<1x128xf32>
    %c0_40 = arith.constant 0 : index
    %c0_41 = arith.constant 0 : index
    %80 = vector.load %arg7[%c0_40, %c0_41] : memref<1x128xf32, #tpu.memory_space<vmem>>, vector<1x128xf32>
    %81 = arith.addf %79, %80 : vector<1x128xf32>
    %cst_42 = arith.constant 0.000000e+00 : f32
    %82 = vector.broadcast %cst_42 : f32 to vector<1x128xf32>
    %83 = arith.subf %82, %81 : vector<1x128xf32>
    %84 = math.exp %83 : vector<1x128xf32>
    %cst_43 = arith.constant 1.000000e+00 : f32
    %85 = vector.broadcast %cst_43 : f32 to vector<1x128xf32>
    %86 = arith.addf %85, %84 : vector<1x128xf32>
    %87 = tpu.reciprocal %86 {approx = true} : vector<1x128xf32> -> vector<1x128xf32>
    %88 = vector.broadcast %87 : vector<1x128xf32> to vector<256x128xf32>
    %89 = arith.mulf %88, %24 : vector<256x128xf32>
    %90 = arith.truncf %89 : vector<256x128xf32> to vector<256x128xbf16>
    %c0_44 = arith.constant 0 : index
    %c0_45 = arith.constant 0 : index
    %91 = vector.load %arg12[%c0_44, %c0_45] : memref<128x256xbf16, #tpu.memory_space<vmem>>, vector<128x256xbf16>
    %cst_46 = arith.constant dense<0.000000e+00> : vector<256x256xf32>
    %92 = tpu.matmul %90, %91, %cst_46 {dimension_numbers = #tpu.dot_dimension_numbers<[1], [0], [0], [1], [0, 0, 1, 1], [], []>} : vector<256x128xbf16>, vector<128x256xbf16>, vector<256x256xf32> -> vector<256x256xf32>
    %93 = arith.truncf %56 : vector<256x128xf32> to vector<256x128xbf16>
    %c0_47 = arith.constant 0 : index
    %c0_48 = arith.constant 0 : index
    %94 = vector.load %arg13[%c0_47, %c0_48] : memref<128x256xbf16, #tpu.memory_space<vmem>>, vector<128x256xbf16>
    %cst_49 = arith.constant dense<0.000000e+00> : vector<256x256xf32>
    %95 = tpu.matmul %93, %94, %cst_49 {dimension_numbers = #tpu.dot_dimension_numbers<[1], [0], [0], [1], [0, 0, 1, 1], [], []>} : vector<256x128xbf16>, vector<128x256xbf16>, vector<256x256xf32> -> vector<256x256xf32>
    %96 = arith.addf %92, %95 : vector<256x256xf32>
    %c0_50 = arith.constant 0 : index
    %c0_51 = arith.constant 0 : index
    %97 = vector.load %arg14[%c0_50, %c0_51] : memref<1x256xf32, #tpu.memory_space<vmem>>, vector<1x256xf32>
    %98 = vector.broadcast %97 : vector<1x256xf32> to vector<256x256xf32>
    %99 = arith.addf %96, %98 : vector<256x256xf32>
    %cst_52 = arith.constant 5.000000e-01 : f32
    %100 = vector.broadcast %cst_52 : f32 to vector<256x256xf32>
    %101 = arith.mulf %100, %99 : vector<256x256xf32>
    %cst_53 = arith.constant 4.471500e-02 : f32
    %102 = vector.broadcast %cst_53 : f32 to vector<256x256xf32>
    %103 = arith.mulf %102, %99 : vector<256x256xf32>
    %104 = arith.mulf %103, %99 : vector<256x256xf32>
    %105 = arith.mulf %104, %99 : vector<256x256xf32>
    %106 = arith.addf %99, %105 : vector<256x256xf32>
    %cst_54 = arith.constant 0.797884583 : f32
    %107 = vector.broadcast %cst_54 : f32 to vector<256x256xf32>
    %108 = arith.mulf %107, %106 : vector<256x256xf32>
    %109 = math.tanh %108 : vector<256x256xf32>
    %cst_55 = arith.constant 1.000000e+00 : f32
    %110 = vector.broadcast %cst_55 : f32 to vector<256x256xf32>
    %111 = arith.addf %110, %109 : vector<256x256xf32>
    %112 = arith.mulf %101, %111 : vector<256x256xf32>
    %113 = arith.truncf %112 : vector<256x256xf32> to vector<256x256xbf16>
    %c0_56 = arith.constant 0 : index
    %c0_57 = arith.constant 0 : index
    %114 = vector.load %arg15[%c0_56, %c0_57] : memref<256x128xbf16, #tpu.memory_space<vmem>>, vector<256x128xbf16>
    %cst_58 = arith.constant dense<0.000000e+00> : vector<256x128xf32>
    %115 = tpu.matmul %113, %114, %cst_58 {dimension_numbers = #tpu.dot_dimension_numbers<[1], [0], [0], [1], [0, 0, 1, 1], [], []>} : vector<256x256xbf16>, vector<256x128xbf16>, vector<256x128xf32> -> vector<256x128xf32>
    %c0_59 = arith.constant 0 : index
    %c0_60 = arith.constant 0 : index
    %116 = vector.load %arg16[%c0_59, %c0_60] : memref<1x128xf32, #tpu.memory_space<vmem>>, vector<1x128xf32>
    %117 = vector.broadcast %116 : vector<1x128xf32> to vector<256x128xf32>
    %118 = arith.addf %115, %117 : vector<256x128xf32>
    %119 = tpu.transpose %118, [1, 0] : vector<256x128xf32> -> vector<128x256xf32>
    %c0_61 = arith.constant 0 : index
    %c0_62 = arith.constant 0 : index
    %c0_63 = arith.constant 0 : index
    %120 = vector.load %arg17[%c0_61, %c0_62, %c0_63] : memref<1x128x256xf32, #tpu.memory_space<vmem>>, vector<1x128x256xf32>
    %121 = vector.shape_cast %120 : vector<1x128x256xf32> to vector<128x256xf32>
    %122 = vector.shape_cast %119 : vector<128x256xf32> to vector<1x128x256xf32>
    tpu.vector_store %arg17[%c0_61, %c0_62, %c0_63], %122 {strides = array<i32>} : memref<1x128x256xf32, #tpu.memory_space<vmem>>, vector<1x128x256xf32>,
    return
  }
  func.func @transform_0(%arg0: i32) -> (i32, i32, i32) {
    %c0_i32 = arith.constant 0 : i32
    %c0_i32_0 = arith.constant 0 : i32
    %c0_i32_1 = arith.constant 0 : i32
    return %arg0, %c0_i32, %c0_i32_0 : i32, i32, i32
  }
  func.func @transform_1(%arg0: i32) -> (i32, i32) {
    %c0_i32 = arith.constant 0 : i32
    %c0_i32_0 = arith.constant 0 : i32
    %c0_i32_1 = arith.constant 0 : i32
    return %c0_i32, %c0_i32_0 : i32, i32
  }
  func.func @transform_2(%arg0: i32) -> (i32, i32) {
    %c0_i32 = arith.constant 0 : i32
    %c0_i32_0 = arith.constant 0 : i32
    %c0_i32_1 = arith.constant 0 : i32
    return %c0_i32, %c0_i32_0 : i32, i32
  }
  func.func @transform_3(%arg0: i32) -> (i32, i32) {
    %c0_i32 = arith.constant 0 : i32
    %c0_i32_0 = arith.constant 0 : i32
    %c0_i32_1 = arith.constant 0 : i32
    return %c0_i32, %c0_i32_0 : i32, i32
  }
  func.func @transform_4(%arg0: i32) -> (i32, i32) {
    %c0_i32 = arith.constant 0 : i32
    %c0_i32_0 = arith.constant 0 : i32
    %c0_i32_1 = arith.constant 0 : i32
    return %c0_i32, %c0_i32_0 : i32, i32
  }
  func.func @transform_5(%arg0: i32) -> (i32, i32) {
    %c0_i32 = arith.constant 0 : i32
    %c0_i32_0 = arith.constant 0 : i32
    %c0_i32_1 = arith.constant 0 : i32
    return %c0_i32, %c0_i32_0 : i32, i32
  }
  func.func @transform_6(%arg0: i32) -> (i32, i32) {
    %c0_i32 = arith.constant 0 : i32
    %c0_i32_0 = arith.constant 0 : i32
    %c0_i32_1 = arith.constant 0 : i32
    return %c0_i32, %c0_i32_0 : i32, i32
  }
  func.func @transform_7(%arg0: i32) -> (i32, i32) {
    %c0_i32 = arith.constant 0 : i32
    %c0_i32_0 = arith.constant 0 : i32
    %c0_i32_1 = arith.constant 0 : i32
    return %c0_i32, %c0_i32_0 : i32, i32
  }
  func.func @transform_8(%arg0: i32) -> (i32, i32) {
    %c0_i32 = arith.constant 0 : i32
    %c0_i32_0 = arith.constant 0 : i32
    %c0_i32_1 = arith.constant 0 : i32
    return %c0_i32, %c0_i32_0 : i32, i32
  }
  func.func @transform_9(%arg0: i32) -> (i32, i32) {
    %c0_i32 = arith.constant 0 : i32
    %c0_i32_0 = arith.constant 0 : i32
    %c0_i32_1 = arith.constant 0 : i32
    return %c0_i32, %c0_i32_0 : i32, i32
  }
  func.func @transform_10(%arg0: i32) -> (i32, i32) {
    %c0_i32 = arith.constant 0 : i32
    %c0_i32_0 = arith.constant 0 : i32
    %c0_i32_1 = arith.constant 0 : i32
    return %c0_i32, %c0_i32_0 : i32, i32
  }
  func.func @transform_11(%arg0: i32) -> (i32, i32) {
    %c0_i32 = arith.constant 0 : i32
    %c0_i32_0 = arith.constant 0 : i32
    %c0_i32_1 = arith.constant 0 : i32
    return %c0_i32, %c0_i32_0 : i32, i32
  }
  func.func @transform_12(%arg0: i32) -> (i32, i32) {
    %c0_i32 = arith.constant 0 : i32
    %c0_i32_0 = arith.constant 0 : i32
    %c0_i32_1 = arith.constant 0 : i32
    return %c0_i32, %c0_i32_0 : i32, i32
  }
  func.func @transform_13(%arg0: i32) -> (i32, i32) {
    %c0_i32 = arith.constant 0 : i32
    %c0_i32_0 = arith.constant 0 : i32
    %c0_i32_1 = arith.constant 0 : i32
    return %c0_i32, %c0_i32_0 : i32, i32
  }
  func.func @transform_14(%arg0: i32) -> (i32, i32) {
    %c0_i32 = arith.constant 0 : i32
    %c0_i32_0 = arith.constant 0 : i32
    %c0_i32_1 = arith.constant 0 : i32
    return %c0_i32, %c0_i32_0 : i32, i32
  }
  func.func @transform_15(%arg0: i32) -> (i32, i32) {
    %c0_i32 = arith.constant 0 : i32
    %c0_i32_0 = arith.constant 0 : i32
    %c0_i32_1 = arith.constant 0 : i32
    return %c0_i32, %c0_i32_0 : i32, i32
  }
  func.func @transform_16(%arg0: i32) -> (i32, i32, i32) {
    %c0_i32 = arith.constant 0 : i32
    %c0_i32_0 = arith.constant 0 : i32
    %c0_i32_1 = arith.constant 0 : i32
    return %arg0, %c0_i32, %c0_i32_0 : i32, i32, i32
  }
}

</mosaic_0001>

<bundles_post_ra>
// kernel: tpu_custom_call.1
= control target key start
LH: loop header
LB: loop body
LE: loop exit
PB: predicated region body
PF: predicated region fallthrough
CT: control target
= control target key end

     0   :  { %s7645_s0 = inlined_call_operand.hbm [shape: f32[2,128,256], index: 0, kind: input, shape index: {}]   ;;  %s7646_s1 = inlined_call_operand.vmem [shape: f32[1,128], index: 1, kind: input, shape index: {}]   ;;  %s7647_s2 = inlined_call_operand.vmem [shape: f32[1,128], index: 2, kind: input, shape index: {}]   ;;  %s7648_s3 = inlined_call_operand.vmem [shape: f32[128,16], index: 3, kind: input, shape index: {}]   ;;  %s7649_s4 = inlined_call_operand.vmem [shape: f32[1,16], index: 4, kind: input, shape index: {}]   ;;  %s7650_s5 = inlined_call_operand.vmem [shape: f32[16,128], index: 5, kind: input, shape index: {}]   ;;  %s7651_s6 = inlined_call_operand.vmem [shape: f32[1,128], index: 6, kind: input, shape index: {}]   ;;  %s7652_s7 = inlined_call_operand.vmem [shape: bf16[128,16], index: 7, kind: input, shape index: {}]   ;;  %s7653_s8 = inlined_call_operand.vmem [shape: f32[1,16], index: 8, kind: input, shape index: {}]   ;;  %s7654_s9 = inlined_call_operand.vmem [shape: f32[16,1], index: 9, kind: input, shape index: {}]   ;;  %s7655_s10 = inlined_call_operand.<no memory space> [shape: f32[1,1], index: 10, kind: input, shape index: {}]   ;;  %s7656_s11 = inlined_call_operand.vmem [shape: bf16[128,256], index: 11, kind: input, shape index: {}]   ;;  %s7657_s12 = inlined_call_operand.hbm [shape: bf16[128,256], index: 12, kind: input, shape index: {}]   ;;  %s7658_s13 = inlined_call_operand.vmem [shape: f32[1,256], index: 13, kind: input, shape index: {}]   ;;  %s7659_s14 = inlined_call_operand.hbm [shape: bf16[256,128], index: 14, kind: input, shape index: {}]   ;;  %s7660_s15 = inlined_call_operand.vmem [shape: f32[1,128], index: 15, kind: input, shape index: {}]   ;;  %s7661_s16 = inlined_call_operand.hbm [shape: f32[2,128,256], index: 16, kind: output, shape index: {}]  }
   0x1   :  { %7686 = sst [smem:[#allocation31_spill]] %s7645_s0  ;;  %v21_v0 = vstv %s7655_s10 }
   0x2   :  { %7687 = sst [smem:[#allocation32_spill]] %s7646_s1  ;;  %22 = vst [vmem:[#allocation2] sm:$0x1] %v21_v0 }
   0x3   :  { %7688 = sst [smem:[#allocation33_spill]] %s7657_s12 }
   0x4   :  { %7689 = sst [smem:[#allocation34_spill]] %s7659_s14 }
   0x5   :  { %7690 = sst [smem:[#allocation35_spill]] %s7661_s16 }
   0x6   :  { %23 = vsyncpa [#allocation4], 0 }
   0x7   :  { %25 = vsyncpa [#allocation4 + $0x1], 0 }
   0x8   :  { %26 = vsyncpa [#allocation7], 0 }
   0x9   :  { %27 = vsyncpa [#allocation5], 0 }
   0xa   :  { %29 = vsyncpa [#allocation5 + $0x1], 0  ;;  %s5433_s23 = smov 0   ;;  %s5435_s24 = smov 0  }
   0xb   :  { %s5437_s25 = smov 0   ;;  %s5439_s26 = smov 0  }
   0xc LB: > { %7691 = sst [smem:[#allocation13_spill]] %s5318_s23  ;;  %s5454_s10 = sadd.s32 4294967295, %s5330_s26   ;;  %s5330_s26 = sphi %s5439_s26, %s7751_s26   ;;  %s5326_s25 = sphi %s5437_s25, %s7753_s25   ;;  %s5322_s24 = sphi %s5435_s24, %s7755_s24   ;;  %s5318_s23 = sphi %s5433_s23, %s7754_s23  }
   0xd   : > { %7692 = sst [smem:[#allocation14_spill]] %s5326_s25  ;;  %s4348_s27 = sadd.s32 4294967294, %s5330_s26  }
   0xe   : > { %p55_p0 = scmp.ne.s32.totalorder %s5322_s24, %s5318_s23  ;;  %p56_p1 = scmp.eq.s32.totalorder %s5454_s10, 0 }
   0xf   : > { %p394_p2 = scmp.eq.s32.totalorder %s5454_s10, 1  ;;  %p400_p3 = scmp.eq.s32.totalorder %s4348_s27, 1 }
  0x10   : > { %p5463_p4 = por %p56_p1, %p55_p0  ;;  %p4349_p5 = scmp.ge.s32.totalorder %s5330_s26, 1 }
  0x11   : > { %p5468_p6 = por %p400_p3, %p55_p0  ;;  %p407_p7 = scmp.lt.s32.totalorder %s5330_s26, 3 }
  0x12   : > { %s7696_s12 = sld [smem:[#allocation33_spill]]  ;;  %s5332_s19 = smov [#allocation6]  }
  0x13   : > { %s7694_s29 = scalar_select %p5468_p6, 1, 0 }
  0x14   : > { %p5476_p8 = pnand %p4349_p5, %p407_p7  ;;  %s453_s20 = sshll.u32 %s5332_s19, 4  ;;  %s454_s20 = int_to_ptr.vmem [resolvable:$true] %s453_s20 }
  0x15   : > { %7695 = sst [smem:[#allocation15_spill]] %s7694_s29  ;;  %s5333_s30 = smov 128  }
  0x16   : > { %p4693_p9 = pneg %p5476_p8  ;;  %s7698_s14 = sld [smem:[#allocation34_spill]] }
  0x17   : > { %s5334_s0 = smov 8   ;;  %s5335_s19 = smov [#allocation8]  }
  0x18   : > { %s451_s17 = sshll.u32 %s7696_s12, 4  ;;  %p4694_p10 = pnand %p4693_p9, %p56_p1  ;;  %s452_s17 = int_to_ptr.hbm [resolvable:$true] %s451_s17 }
  0x19   : > { %s470_s12 = sshll.u32 %s5335_s19, 4  ;;  %s5336_s29 = smov 64   ;;  %s471_s12 = int_to_ptr.vmem [resolvable:$true] %s470_s12 }
  0x1a   : > { %4696 = dma.hbm_to_vmem [thread:$0]  (!%p4694_p10), %s452_s17, 2048, %s454_s20, [#allocation7], %s5333_s30, %s5333_s30, %s5334_s0  }
  0x1b   : > { %s5337_s23 = smov 4   ;;  %s5489_s21 = sadd.s32 1, %s5330_s26  }
  0x1c   : > { %s468_s27 = sshll.u32 %s7698_s14, 4  ;;  %7699 = sst [smem:[#allocation16_spill]] %s5489_s21  ;;  %s469_s27 = int_to_ptr.hbm [resolvable:$true] %s468_s27 }
  0x1d   : > { %4699 = dma.hbm_to_vmem [thread:$0]  (!%p4694_p10), %s469_s27, 2048, %s471_s12, [#allocation7], %s5336_s29, %s5336_s29, %s5337_s23  }
  0x1e   : > { %s39_s22 = ssub.s32 %s5330_s26, %s5489_s21  ;;  %s42_s14 = sadd.s32 1, %s5326_s25 }
  0x1f   : > { %p40_p12 = scmp.eq.s32.totalorder %s39_s22, 0  ;;  %p49_p13 = scmp.ne.s32.totalorder %s5326_s25, %s5322_s24 }
  0x20   : > { %p50_p0 = scmp.eq.s32.totalorder %s5330_s26, 0  ;;  %p4710_p7 = scmp.lt.s32.totalorder %s5330_s26, 2 }
  0x21   : > { %s5498_s16 = scalar_select %p40_p12, %s5326_s25, %s42_s14  }
  0x22   : > { %p51_p3 = por %p50_p0, %p49_p13  ;;  %p5502_p5 = por %p394_p2, %p49_p13 }
  0x23   : > { %7700 = sst [smem:[#allocation17_spill]] %s5498_s16  ;;  %s487_s20 = sand.u32 1, %s5326_s25  }
  0x24   : > { %s7701_s17 = scalar_select %p5502_p5, 1, 0 }
  0x25   : > { %s4353_s30 = sshll.u32 %s487_s20, 8  ;;  %s4623_s12 = sshll.u32 %s5330_s26, 8 }
  0x26   : > { %7702 = sst [smem:[#allocation18_spill]] %s7701_s17  ;;  %s491_s19 = scalar_lea.vmem [#allocation3], %s4353_s30 }
  0x27   : > { %s7703_s27 = sld [smem:[#allocation31_spill]]  ;;  %s499_s22 = sshll.u32 %s491_s19, 4  ;;  %s500_s22 = int_to_ptr.vmem [resolvable:$true] %s499_s22 }
  0x28   : > { %p5512_p9 = pnand %p4710_p7, %p51_p3  ;;  %s488_s16 = scalar_lea.sflag [#allocation4], %s487_s20 }
  0x2a   : > { %p5234_p10 = pneg %p5512_p9 }
  0x2d   : > { %s496_s0 = scalar_lea.hbm %s7703_s27, %s4623_s12  ;;  %s5237_s23 = scalar_lea.hbm %s7703_s27, 512 }
  0x2e   : > { %s497_s21 = sshll.u32 %s496_s0, 4  ;;  %s498_s21 = int_to_ptr.hbm [resolvable:$true] %s497_s21 }
  0x2f   : > { %s5230_s17 = sshra.s32 %s498_s21, 4  ;;  %s5231_s17 = int_to_ptr.hbm [resolvable:$true] %s5230_s17 }
  0x30   : > { %s5232_s25 = scalar_lea.hbm %s5231_s17, 256  ;;  %p5238_p0 = scmp.lt.s32.totalorder %s5231_s17, %s7703_s27 }
  0x31   : > { %p5233_p2 = scmp.ne.s32.totalorder %s5231_s17, %s5232_s25  ;;  %p5239_p3 = scmp.lt.s32.totalorder %s5237_s23, %s5232_s25 }
  0x33   : > { %p5235_p12 = pnand %p5234_p10, %p5233_p2  ;;  %p5240_p7 = por %p5239_p3, %p5238_p0 }
  0x35   : > { %p5236_p13 = pneg %p5235_p12 }
  0x37   : > { %p5241_p11 = pnand %p5240_p7, %p5236_p13 }
  0x39   : > { %5244 = shalt.err (!%p5241_p11)
}
  0x3a   : > { %s5338_s20 = smov 256   ;;  %s5339_s19 = smov 16  }
  0x3b   : > { %4703 = dma.hbm_to_vmem [thread:$0]  (!%p5512_p9), %s498_s21, 4096, %s500_s22, %s488_s16, %s5338_s20, %s5338_s20, %s5339_s19  }
  0x3c   : > { %511 = sbr.rel (%p5476_p8) target bundleno = 2412 (0x96c), region = 84 }
  0x41   : > { %s5529_s12 = sand.u32 1, %s5322_s24  }
  0x42   : > { %s4357_s17 = sshll.u32 %s5529_s12, 8  ;;  %s514_s25 = scalar_lea.sflag [#allocation4], %s5529_s12 }
  0x43   : > { %s5535_s30 = scalar_lea.vmem [#allocation3], %s4357_s17 }
  0x44   : > { %5305 = dma.done.wait (%p5463_p4), %s514_s25, 4096  }
  0x45   : > { %5307 = vsyncadd (%p5463_p4), %s514_s25, 4294963200 }
  0x46   : > { %5309 = dma.done.wait (%p56_p1), [#allocation7], 4096  }
  0x47   : > { %5311 = vsyncadd (%p56_p1), [#allocation7], 4294963200  ;;  %v577_v1 = vld [vmem:[%s5535_s30] sm:$0xff]  ;;  %v579_v2 = vld [vmem:[%s5535_s30 + $0x10] sm:$0xff]  ;;  %v5340_v29 = vmov 128.0   ;;  %s7705_s1 = sld [smem:[#allocation32_spill]] }
  0x48   : > { %609 = vxpose.xlu0.b32.start [1/16] %v577_v1, 128  ;;  %v581_v3 = vld [vmem:[%s5535_s30 + $0x20] sm:$0xff]  ;;  %v583_v4 = vld [vmem:[%s5535_s30 + $0x30] sm:$0xff]  ;;  %4767 = vrcp.f32 %v5340_v29  ;;  %s7572_s22 = scalar_lea.vmem [#allocation9], %s4357_s17  ;;  %s4680_s29 = sshll.u32 %s5454_s10, 8 }
  0x49   : > { %v585_v5 = vld [vmem:[%s5535_s30 + $0x40] sm:$0xff]  ;;  %v587_v6 = vld [vmem:[%s5535_s30 + $0x50] sm:$0xff]  ;;  %s7747_s20 = sld [smem:[#allocation35_spill]]  ;;  %s4253_s25 = sshll.u32 %s7572_s22, 4  ;;  %s4254_s25 = int_to_ptr.vmem [resolvable:$true] %s4253_s25 }
  0x4a   : > { %v589_v7 = vld [vmem:[%s5535_s30 + $0x60] sm:$0xff]  ;;  %v591_v8 = vld [vmem:[%s5535_s30 + $0x70] sm:$0xff]  ;;  %s4241_s28 = scalar_lea.sflag [#allocation5], %s5529_s12 }
  0x4b   : > { %v593_v9 = vld [vmem:[%s5535_s30 + $0x80] sm:$0xff]  ;;  %v595_v10 = vld [vmem:[%s5535_s30 + $0x90] sm:$0xff] }
  0x4c   : > { %v597_v11 = vld [vmem:[%s5535_s30 + $0xa0] sm:$0xff]  ;;  %v599_v12 = vld [vmem:[%s5535_s30 + $0xb0] sm:$0xff] }
  0x4d   : > { %v601_v13 = vld [vmem:[%s5535_s30 + $0xc0] sm:$0xff]  ;;  %v603_v14 = vld [vmem:[%s5535_s30 + $0xd0] sm:$0xff] }
  0x4e   : > { %v605_v15 = vld [vmem:[%s5535_s30 + $0xe0] sm:$0xff]  ;;  %v607_v16 = vld [vmem:[%s5535_s30 + $0xf0] sm:$0xff]  ;;  %v4768_v30 = vpop.eup %4767 }
  0x4f   : > { %v738_v32 = vmul.f32 128.0, %v4768_v30  ;;  %vm742_vm0 = vweird.f32 %v4768_v30  ;;  %v4627_v29 = vld [vmem:[%s7652_s7 + $0x18] sm:$0xff]  ;;  %s4252_s19 = scalar_lea.hbm %s7747_s20, %s4680_s29  ;;  %s5280_s17 = scalar_lea.hbm %s7747_s20, 512 }
  0x50   : > { %610 = vxpose.xlu0.b32.cont [2/16] %v579_v2, 128  ;;  %s4255_s16 = sshll.u32 %s4252_s19, 4  ;;  %s4256_s16 = int_to_ptr.hbm [resolvable:$true] %s4255_s16 }
  0x51   : > { %v739_v33 = vsub.f32 1.0, %v738_v32  ;;  %v4626_v32 = vld [vmem:[%s7652_s7 + $0x10] sm:$0xff]  ;;  %s5274_s18 = sshra.s32 %s4256_s16, 4  ;;  %s5275_s18 = int_to_ptr.hbm [resolvable:$true] %s5274_s18 }
  0x52   : > { %s5276_s21 = scalar_lea.hbm %s5275_s18, 256  ;;  %p5281_p11 = scmp.lt.s32.totalorder %s5275_s18, %s7747_s20 }
  0x53   : > { %v740_v35 = vmul.f32 %v4768_v30, %v739_v33  ;;  %v580_v33 = vld [vmem:[%s5535_s30 + $0x18] sm:$0xff]  ;;  %p5277_p1 = scmp.ne.s32.totalorder %s5275_s18, %s5276_s21  ;;  %p5282_p9 = scmp.lt.s32.totalorder %s5280_s17, %s5276_s21 }
  0x55   : > { %v741_v36 = vadd.f32 %v4768_v30, %v740_v35  ;;  %p5278_p4 = pnand %p5277_p1, %p5502_p5  ;;  %p5283_p2 = por %p5282_p9, %p5281_p11 }
  0x57   : > { %v5582_v37 = vsel %vm742_vm0, %v4768_v30, %v741_v36  ;;  %v4625_v36 = vld [vmem:[%s7652_s7 + $0x8] sm:$0xff]  ;;  %p5279_p8 = pneg %p5278_p4 }
  0x58   : > { %611 = vxpose.xlu0.b32.cont [3/16] %v581_v3, 128 }
  0x59   : > { %p5284_p10 = pnand %p5283_p2, %p5279_p8 }
  0x60   : > { %612 = vxpose.xlu0.b32.cont [4/16] %v583_v4, 128 }
  0x68   : > { %613 = vxpose.xlu0.b32.cont [5/16] %v585_v5, 128 }
  0x70   : > { %614 = vxpose.xlu0.b32.cont [6/16] %v587_v6, 128 }
  0x78   : > { %615 = vxpose.xlu0.b32.cont [7/16] %v589_v7, 128 }
  0x80   : > { %616 = vxpose.xlu0.b32.cont [8/16] %v591_v8, 128 }
  0x88   : > { %617 = vxpose.xlu0.b32.cont [9/16] %v593_v9, 128 }
  0x90   : > { %618 = vxpose.xlu0.b32.cont [10/16] %v595_v10, 128 }
  0x98   : > { %619 = vxpose.xlu0.b32.cont [11/16] %v597_v11, 128 }
  0xa0   : > { %620 = vxpose.xlu0.b32.cont [12/16] %v599_v12, 128 }
  0xa8   : > { %621 = vxpose.xlu0.b32.cont [13/16] %v601_v13, 128 }
  0xb0   : > { %622 = vxpose.xlu0.b32.cont [14/16] %v603_v14, 128 }
  0xb8   : > { %623 = vxpose.xlu0.b32.cont [15/16] %v605_v15, 128 }
  0xc0   : > { %624 = vxpose.xlu0.b32.end [16/16] %v607_v16, 128 }
  0xec   : > { %v625_v17 = vpop.trf.xlu0 }
  0xed   : > { %673 = vadd.xlane.f32.xlu1 %v625_v17 }
  0xf4   : > { %v626_v18 = vpop.trf.xlu0 }
  0xf5   : > { %675 = vadd.xlane.f32.xlu1 %v626_v18 }
  0xfc   : > { %v627_v19 = vpop.trf.xlu0 }
  0xfd   : > { %677 = vadd.xlane.f32.xlu2 %v627_v19 }
 0x104   : > { %v628_v20 = vpop.trf.xlu0 }
 0x105   : > { %679 = vadd.xlane.f32.xlu2 %v628_v20 }
 0x10c   : > { %v629_v21 = vpop.trf.xlu0 }
 0x10d   : > { %681 = vadd.xlane.f32.xlu1 %v629_v21 }
 0x114   : > { %v630_v22 = vpop.trf.xlu0 }
 0x115   : > { %683 = vadd.xlane.f32.xlu2 %v630_v22 }
 0x11c   : > { %v631_v23 = vpop.trf.xlu0 }
 0x11d   : > { %685 = vadd.xlane.f32.xlu1 %v631_v23 }
 0x124   : > { %v5561_v24 = vpop.trf.xlu0 }
 0x125   : > { %687 = vadd.xlane.f32.xlu2 %v5561_v24 }
 0x12c   : > { %v5564_v25 = vpop.trf.xlu0 }
 0x12d   : > { %689 = vadd.xlane.f32.xlu1 %v5564_v25 }
 0x134   : > { %v5567_v26 = vpop.trf.xlu0 }
 0x135   : > { %691 = vadd.xlane.f32.xlu2 %v5567_v26 }
 0x13c   : > { %v5570_v27 = vpop.trf.xlu0 }
 0x13d   : > { %693 = vadd.xlane.f32.xlu1 %v5570_v27 }
 0x144   : > { %v5573_v28 = vpop.trf.xlu0 }
 0x145   : > { %695 = vadd.xlane.f32.xlu2 %v5573_v28 }
 0x14c   : > { %v5576_v31 = vpop.trf.xlu0 }
 0x14d   : > { %697 = vadd.xlane.f32.xlu1 %v5576_v31 }
 0x154   : > { %v5579_v34 = vpop.trf.xlu0 }
 0x155   : > { %699 = vadd.xlane.f32.xlu2 %v5579_v34 }
 0x15c   : > { %v5615_v0 = vpop.trf.xlu0 }
 0x160   : > { %v674_v38 = vpop.xlane.xlu1 %673 }
 0x161   : > { %v744_v39 = vmul.f32 %v5582_v37, %v674_v38 }
 0x163   : > { %v5585_v40 = vsub.f32 %v625_v17, %v744_v39 }
 0x164   : > { %v5622_v4 = vpop.trf.xlu0 }
 0x165   : > { %v808_v41 = vmul.f32 %v5585_v40, %v5585_v40 }
 0x167   : > { %840 = vadd.xlane.f32.xlu1 %v808_v41  ;;  %v4624_v41 = vld [vmem:[%s7652_s7] sm:$0xff] }
 0x168   : > { %v676_v42 = vpop.xlane.xlu1 %675 }
 0x169   : > { %v745_v43 = vmul.f32 %v5582_v37, %v676_v42 }
 0x16b   : > { %v5590_v44 = vsub.f32 %v626_v18, %v745_v43  ;;  %v582_v43 = vld [vmem:[%s5535_s30 + $0x28] sm:$0xff] }
 0x16d   : > { %v809_v45 = vmul.f32 %v5590_v44, %v5590_v44 }
 0x16f   : > { %842 = vadd.xlane.f32.xlu2 %v809_v45 }
 0x170   : > { %v678_v46 = vpop.xlane.xlu2 %677 }
 0x171   : > { %v746_v47 = vmul.f32 %v5582_v37, %v678_v46 }
 0x173   : > { %v5595_v48 = vsub.f32 %v627_v19, %v746_v47 }
 0x175   : > { %v810_v49 = vmul.f32 %v5595_v48, %v5595_v48 }
 0x177   : > { %844 = vadd.xlane.f32.xlu1 %v810_v49 }
 0x178   : > { %v680_v50 = vpop.xlane.xlu2 %679 }
 0x179   : > { %v747_v51 = vmul.f32 %v5582_v37, %v680_v50 }
 0x17b   : > { %v5600_v52 = vsub.f32 %v628_v20, %v747_v51  ;;  %v584_v51 = vld [vmem:[%s5535_s30 + $0x38] sm:$0xff] }
 0x17d   : > { %v811_v53 = vmul.f32 %v5600_v52, %v5600_v52 }
 0x17f   : > { %846 = vadd.xlane.f32.xlu2 %v811_v53 }
 0x180   : > { %v682_v54 = vpop.xlane.xlu1 %681 }
 0x181   : > { %v748_v55 = vmul.f32 %v5582_v37, %v682_v54 }
 0x183   : > { %v5605_v56 = vsub.f32 %v629_v21, %v748_v55 }
 0x185   : > { %v812_v57 = vmul.f32 %v5605_v56, %v5605_v56 }
 0x187   : > { %848 = vadd.xlane.f32.xlu1 %v812_v57 }
 0x188   : > { %v684_v58 = vpop.xlane.xlu2 %683 }
 0x189   : > { %v749_v59 = vmul.f32 %v5582_v37, %v684_v58 }
 0x18b   : > { %v5610_v60 = vsub.f32 %v630_v22, %v749_v59 }
 0x18d   : > { %v813_v61 = vmul.f32 %v5610_v60, %v5610_v60 }
 0x18f   : > { %850 = vadd.xlane.f32.xlu2 %v813_v61 }
 0x190   : > { %v686_v62 = vpop.xlane.xlu1 %685 }
 0x191   : > { %v750_v63 = vmul.f32 %v5582_v37, %v686_v62 }
 0x193   : > { %v5617_v1 = vsub.f32 %v631_v23, %v750_v63 }
 0x195   : > { %v814_v2 = vmul.f32 %v5617_v1, %v5617_v1 }
 0x197   : > { %852 = vadd.xlane.f32.xlu1 %v814_v2  ;;  %701 = vadd.xlane.f32.xlu2 %v5615_v0  ;;  %v586_v2 = vld [vmem:[%s5535_s30 + $0x48] sm:$0xff] }
 0x198   : > { %v688_v3 = vpop.xlane.xlu2 %687 }
 0x199   : > { %v751_v5 = vmul.f32 %v5582_v37, %v688_v3 }
 0x19b   : > { %v5627_v6 = vsub.f32 %v5561_v24, %v751_v5  ;;  %v4631_v24 = vld [vmem:[%s7652_s7 + $0x38] sm:$0xff] }
 0x19c   : > { %1476 = vmatpush.bf16.msra.mxu0 %v4631_v24 }
 0x19d   : > { %v815_v9 = vmul.f32 %v5627_v6, %v5627_v6 }
 0x19f   : > { %703 = vadd.xlane.f32.xlu2 %v5622_v4 }
 0x1a0   : > { %v690_v7 = vpop.xlane.xlu1 %689 }
 0x1a1   : > { %v752_v8 = vmul.f32 %v5582_v37, %v690_v7 }
 0x1a3   : > { %v5633_v10 = vsub.f32 %v5564_v25, %v752_v8  ;;  %v4630_v25 = vld [vmem:[%s7652_s7 + $0x30] sm:$0xff] }
 0x1a4   : > { %1477 = vmatpush.bf16.msra.mxu0 %v4630_v25  ;;  %v5704_v25 = vld [vmem:[%s7647_s2] ss:$0 sm:$0xff] }
 0x1a5   : > { %v816_v13 = vmul.f32 %v5633_v10, %v5633_v10 }
 0x1a7   : > { %854 = vadd.xlane.f32.xlu2 %v815_v9 }
 0x1a8   : > { %v692_v11 = vpop.xlane.xlu2 %691 }
 0x1a9   : > { %v753_v12 = vmul.f32 %v5582_v37, %v692_v11 }
 0x1ab   : > { %v5639_v14 = vsub.f32 %v5567_v26, %v753_v12  ;;  %v4629_v26 = vld [vmem:[%s7652_s7 + $0x28] sm:$0xff] }
 0x1ac   : > { %1478 = vmatpush.bf16.msra.mxu0 %v4629_v26 }
 0x1ad   : > { %v817_v17 = vmul.f32 %v5639_v14, %v5639_v14 }
 0x1af   : > { %856 = vadd.xlane.f32.xlu2 %v816_v13 }
 0x1b0   : > { %v694_v15 = vpop.xlane.xlu1 %693 }
 0x1b1   : > { %v754_v16 = vmul.f32 %v5582_v37, %v694_v15 }
 0x1b3   : > { %v5645_v19 = vsub.f32 %v5570_v27, %v754_v16  ;;  %v4628_v27 = vld [vmem:[%s7652_s7 + $0x20] sm:$0xff] }
 0x1b4   : > { %1479 = vmatpush.bf16.msra.mxu0 %v4628_v27  ;;  %v5696_v16 = vld [vmem:[%s7705_s1] ss:$0 sm:$0xff] }
 0x1b5   : > { %v818_v23 = vmul.f32 %v5645_v19, %v5645_v19 }
 0x1b7   : > { %858 = vadd.xlane.f32.xlu2 %v817_v17 }
 0x1b8   : > { %v696_v18 = vpop.xlane.xlu2 %695  ;;  %1480 = vmatpush.bf16.msra.mxu0 %v4627_v29 }
 0x1b9   : > { %v755_v20 = vmul.f32 %v5582_v37, %v696_v18 }
 0x1bb   : > { %v5649_v21 = vsub.f32 %v5573_v28, %v755_v20  ;;  %v578_v28 = vld [vmem:[%s5535_s30 + $0x8] sm:$0xff]  ;;  %v588_v20 = vld [vmem:[%s5535_s30 + $0x58] sm:$0xff] }
 0x1bc   : > { %1481 = vmatpush.bf16.msra.mxu0 %v4626_v32 }
 0x1bd   : > { %v819_v22 = vmul.f32 %v5649_v21, %v5649_v21 }
 0x1bf   : > { %862 = vadd.xlane.f32.xlu0 %v819_v22  ;;  %860 = vadd.xlane.f32.xlu2 %v818_v23 }
 0x1c0   : > { %v5671_v30 = vpop.xlane.xlu1 %697  ;;  %1482 = vmatpush.bf16.msra.mxu0 %v4625_v36 }
 0x1c4   : > { %1483 = vmatpush.bf16.msra.mxu0 %v4624_v41 }
 0x1c8   : > { %v5677_v35 = vpop.xlane.xlu2 %699 }
 0x1d1   : > { %641 = vxpose.xlu1.b32.start [1/16] %v578_v28, 128 }
 0x1d9   : > { %642 = vxpose.xlu1.b32.cont [2/16] %v580_v33, 128 }
 0x1da   : > { %v841_v38 = vpop.xlane.xlu1 %840 }
 0x1db   : > { %v904_v39 = vmul.f32 %v841_v38, %v5582_v37 }
 0x1dd   : > { %v936_v42 = vadd.f32 1e-06, %v904_v39 }
 0x1df   : > { %4769 = vrsqrt.f32 %v936_v42  ;;  %vm974_vm2 = vweird.f32 %v936_v42 }
 0x1e1   : > { %643 = vxpose.xlu1.b32.cont [3/16] %v582_v43, 128 }
 0x1e2   : > { %v843_v45 = vpop.xlane.xlu2 %842 }
 0x1e3   : > { %v905_v46 = vmul.f32 %v843_v45, %v5582_v37 }
 0x1e5   : > { %v4770_v47 = vpop.eup %4769  ;;  %v937_v49 = vadd.f32 1e-06, %v905_v46 }
 0x1e6   : > { %v969_v50 = vmul.f32 %v4770_v47, %v936_v42  ;;  %vm975_vm1 = vweird.f32 %v4770_v47  ;;  %v590_v42 = vld [vmem:[%s5535_s30 + $0x68] sm:$0xff] }
 0x1e7   : > { %4771 = vrsqrt.f32 %v937_v49  ;;  %vm976_vm3 = vmor %vm974_vm2, %vm975_vm1  ;;  %vm984_vm5 = vweird.f32 %v937_v49 }
 0x1e8   : > { %v970_v53 = vmul.f32 %v4770_v47, %v969_v50 }
 0x1e9   : > { %644 = vxpose.xlu1.b32.cont [4/16] %v584_v51, 128 }
 0x1ea   : > { %v971_v54 = vmul.f32 0.5, %v970_v53  ;;  %v845_v55 = vpop.xlane.xlu1 %844 }
 0x1eb   : > { %v906_v57 = vmul.f32 %v845_v55, %v5582_v37 }
 0x1ec   : > { %v972_v58 = vsub.f32 1.5, %v971_v54 }
 0x1ed   : > { %v4772_v59 = vpop.eup %4771  ;;  %v938_v61 = vadd.f32 1e-06, %v906_v57 }
 0x1ee   : > { %v973_v62 = vmul.f32 %v4770_v47, %v972_v58  ;;  %v979_v63 = vmul.f32 %v4772_v59, %v937_v49  ;;  %vm985_vm4 = vweird.f32 %v4772_v59 }
 0x1ef   : > { %4773 = vrsqrt.f32 %v938_v61  ;;  %vm986_vm6 = vmor %vm984_vm5, %vm985_vm4  ;;  %vm994_vm8 = vweird.f32 %v938_v61 }
 0x1f0   : > { %v980_v3 = vmul.f32 %v4772_v59, %v979_v63  ;;  %v977_v5 = vsel %vm976_vm3, %v4770_v47, %v973_v62 }
 0x1f1   : > { %645 = vxpose.xlu1.b32.cont [5/16] %v586_v2, 128  ;;  %v1288_v13 = vmul.f32 %v977_v5, %v5585_v40 }
 0x1f2   : > { %v981_v7 = vmul.f32 0.5, %v980_v3  ;;  %v847_v8 = vpop.xlane.xlu2 %846 }
 0x1f3   : > { %v907_v9 = vmul.f32 %v847_v8, %v5582_v37  ;;  %v1324_v40 = vmul.f32 %v5696_v16, %v1288_v13 }
 0x1f4   : > { %v982_v11 = vsub.f32 1.5, %v981_v7 }
 0x1f5   : > { %v4774_v12 = vpop.eup %4773  ;;  %v939_v15 = vadd.f32 1e-06, %v907_v9 }
 0x1f6   : > { %v983_v17 = vmul.f32 %v4772_v59, %v982_v11  ;;  %v989_v18 = vmul.f32 %v4774_v12, %v938_v61  ;;  %vm995_vm7 = vweird.f32 %v4774_v12 }
 0x1f7   : > { %4775 = vrsqrt.f32 %v939_v15  ;;  %vm996_vm9 = vmor %vm994_vm8, %vm995_vm7  ;;  %vm1004_vm11 = vweird.f32 %v939_v15 }
 0x1f8   : > { %v987_v22 = vsel %vm986_vm6, %v4772_v59, %v983_v17  ;;  %v990_v23 = vmul.f32 %v4774_v12, %v989_v18  ;;  %v592_v59 = vld [vmem:[%s5535_s30 + $0x78] sm:$0xff]  ;;  %v594_v18 = vld [vmem:[%s5535_s30 + $0x88] sm:$0xff] }
 0x1f9   : > { %v1289_v24 = vmul.f32 %v987_v22, %v5590_v44  ;;  %646 = vxpose.xlu1.b32.cont [6/16] %v588_v20, 128  ;;  %v5709_v44 = vadd.f32 %v5704_v25, %v1324_v40 }
 0x1fa   : > { %v991_v26 = vmul.f32 0.5, %v990_v23  ;;  %v849_v27 = vpop.xlane.xlu1 %848 }
 0x1fb   : > { %v908_v28 = vmul.f32 %v849_v27, %v5582_v37  ;;  %v1325_v29 = vmul.f32 %v5696_v16, %v1289_v24 }
 0x1fc   : > { %v992_v32 = vsub.f32 1.5, %v991_v26 }
 0x1fd   : > { %v4776_v33 = vpop.eup %4775  ;;  %v940_v36 = vadd.f32 1e-06, %v908_v28  ;;  %v5712_v38 = vadd.f32 %v5704_v25, %v1325_v29 }
 0x1fe   : > { %v993_v39 = vmul.f32 %v4774_v12, %v992_v32  ;;  %v999_v41 = vmul.f32 %v4776_v33, %v939_v15  ;;  %vm1005_vm10 = vweird.f32 %v4776_v33 }
 0x1ff   : > { %4777 = vrsqrt.f32 %v940_v36  ;;  %v1392_v43 = vpack.c.bf16 %v5712_v38, %v5709_v44  ;;  %vm1006_vm12 = vmor %vm1004_vm11, %vm1005_vm10  ;;  %vm1014_vm14 = vweird.f32 %v940_v36 }
 0x200   : > { %v1000_v45 = vmul.f32 %v4776_v33, %v999_v41  ;;  %v997_v46 = vsel %vm996_vm9, %v4774_v12, %v993_v39 }
 0x201   : > { %647 = vxpose.xlu1.b32.cont [7/16] %v590_v42, 128  ;;  %1484 = vmatmul.bf16.vlgmr.msra.gmra.mxu0 %v1392_v43  ;;  %v1290_v54 = vmul.f32 %v997_v46, %v5595_v48 }
 0x202   : > { %v1001_v47 = vmul.f32 0.5, %v1000_v45  ;;  %v851_v49 = vpop.xlane.xlu2 %850 }
 0x203   : > { %v909_v50 = vmul.f32 %v851_v49, %v5582_v37  ;;  %v1326_v2 = vmul.f32 %v5696_v16, %v1290_v54 }
 0x204   : > { %v1002_v51 = vsub.f32 1.5, %v1001_v47 }
 0x205   : > { %v4778_v53 = vpop.eup %4777  ;;  %v941_v55 = vadd.f32 1e-06, %v909_v50  ;;  %v5727_v13 = vadd.f32 %v5704_v25, %v1326_v2 }
 0x206   : > { %v1003_v57 = vmul.f32 %v4776_v33, %v1002_v51  ;;  %v1009_v58 = vmul.f32 %v4778_v53, %v940_v36  ;;  %vm1015_vm13 = vweird.f32 %v4778_v53  ;;  %v598_v51 = vld [vmem:[%s5535_s30 + $0xa8] sm:$0xff] }
 0x207   : > { %4779 = vrsqrt.f32 %v941_v55  ;;  %vm1016_vm15 = vmor %vm1014_vm14, %vm1015_vm13  ;;  %vm1024_vm1 = vweird.f32 %v941_v55 }
 0x208   : > { %v1007_v61 = vsel %vm1006_vm12, %v4776_v33, %v1003_v57  ;;  %v1010_v62 = vmul.f32 %v4778_v53, %v1009_v58  ;;  %v596_v33 = vld [vmem:[%s5535_s30 + $0x98] sm:$0xff] }
 0x209   : > { %v1291_v63 = vmul.f32 %v1007_v61, %v5600_v52  ;;  %648 = vxpose.xlu1.b32.cont [8/16] %v592_v59, 128 }
 0x20a   : > { %v1011_v3 = vmul.f32 0.5, %v1010_v62  ;;  %v853_v5 = vpop.xlane.xlu1 %852  ;;  %v5722_v7 = vpop.xlane.xlu2 %701  ;;  %v600_v62 = vld [vmem:[%s5535_s30 + $0xb8] sm:$0xff] }
 0x20b   : > { %v910_v48 = vmul.f32 %v853_v5, %v5582_v37  ;;  %v1327_v8 = vmul.f32 %v5696_v16, %v1291_v63 }
 0x20c   : > { %v1012_v9 = vsub.f32 1.5, %v1011_v3 }
 0x20d   : > { %v4780_v11 = vpop.eup %4779  ;;  %v942_v12 = vadd.f32 1e-06, %v910_v48  ;;  %v5730_v52 = vadd.f32 %v5704_v25, %v1327_v8 }
 0x20e   : > { %v1013_v15 = vmul.f32 %v4778_v53, %v1012_v9  ;;  %v1019_v17 = vmul.f32 %v4780_v11, %v941_v55  ;;  %vm1025_vm0 = vweird.f32 %v4780_v11 }
 0x20f   : > { %4781 = vrsqrt.f32 %v942_v12  ;;  %v1393_v20 = vpack.c.bf16 %v5730_v52, %v5727_v13  ;;  %vm1026_vm2 = vmor %vm1024_vm1, %vm1025_vm0  ;;  %vm1034_vm4 = vweird.f32 %v942_v12 }
 0x210   : > { %v1020_v22 = vmul.f32 %v4780_v11, %v1019_v17  ;;  %v1017_v23 = vsel %vm1016_vm15, %v4778_v53, %v1013_v15 }
 0x211   : > { %649 = vxpose.xlu1.b32.cont [9/16] %v594_v18, 128  ;;  %1489 = vmatmul.bf16.gmra.mxu0 %v1393_v20  ;;  %v1292_v28 = vmul.f32 %v1017_v23, %v5605_v56  ;;  %v602_v20 = vld [vmem:[%s5535_s30 + $0xc8] sm:$0xff] }
 0x212   : > { %v1021_v24 = vmul.f32 0.5, %v1020_v22  ;;  %v5735_v40 = vpop.xlane.xlu2 %703 }
 0x213   : > { %v1328_v41 = vmul.f32 %v5696_v16, %v1292_v28 }
 0x214   : > { %v1022_v26 = vsub.f32 1.5, %v1021_v24 }
 0x215   : > { %v4782_v27 = vpop.eup %4781  ;;  %v5744_v56 = vadd.f32 %v5704_v25, %v1328_v41 }
 0x216   : > { %v1023_v29 = vmul.f32 %v4780_v11, %v1022_v26  ;;  %v1029_v32 = vmul.f32 %v4782_v27, %v942_v12  ;;  %vm1035_vm3 = vweird.f32 %v4782_v27 }
 0x217   : > { %vm1036_vm5 = vmor %vm1034_vm4, %vm1035_vm3 }
 0x218   : > { %v1027_v36 = vsel %vm1026_vm2, %v4780_v11, %v1023_v29  ;;  %v1030_v42 = vmul.f32 %v4782_v27, %v1029_v32 }
 0x219   : > { %v1293_v39 = vmul.f32 %v1027_v36, %v5610_v60  ;;  %650 = vxpose.xlu1.b32.cont [10/16] %v596_v33, 128 }
 0x21a   : > { %v855_v43 = vpop.xlane.xlu2 %854  ;;  %v1031_v50 = vmul.f32 0.5, %v1030_v42 }
 0x21b   : > { %v911_v45 = vmul.f32 %v855_v43, %v5582_v37  ;;  %v1329_v46 = vmul.f32 %v5696_v16, %v1293_v39 }
 0x21c   : > { %v1032_v53 = vsub.f32 1.5, %v1031_v50 }
 0x21d   : > { %v943_v47 = vadd.f32 1e-06, %v911_v45  ;;  %v5747_v49 = vadd.f32 %v5704_v25, %v1329_v46  ;;  %v604_v46 = vld [vmem:[%s5535_s30 + $0xd8] sm:$0xff] }
 0x21e   : > { %v1033_v59 = vmul.f32 %v4782_v27, %v1032_v53 }
 0x21f   : > { %4783 = vrsqrt.f32 %v943_v47  ;;  %v1394_v60 = vpack.c.bf16 %v5747_v49, %v5744_v56  ;;  %vm1044_vm7 = vweird.f32 %v943_v47 }
 0x220   : > { %v1037_v2 = vsel %vm1036_vm5, %v4782_v27, %v1033_v59  ;;  %vm1859_vm5 = vcmask 130048  }
 0x221   : > { %651 = vxpose.xlu1.b32.cont [11/16] %v598_v51, 128  ;;  %1494 = vmatmul.bf16.gmra.mxu0 %v1394_v60  ;;  %v1294_v11 = vmul.f32 %v1037_v2, %v5617_v1 }
 0x222   : > { %v857_v54 = vpop.xlane.xlu2 %856 }
 0x223   : > { %v912_v55 = vmul.f32 %v857_v54, %v5582_v37  ;;  %v1330_v24 = vmul.f32 %v5696_v16, %v1294_v11 }
 0x225   : > { %v4784_v57 = vpop.eup %4783  ;;  %v944_v58 = vadd.f32 1e-06, %v912_v55  ;;  %v5763_v42 = vadd.f32 %v5704_v25, %v1330_v24 }
 0x226   : > { %v1039_v61 = vmul.f32 %v4784_v57, %v943_v47  ;;  %vm1045_vm6 = vweird.f32 %v4784_v57 }
 0x227   : > { %4785 = vrsqrt.f32 %v944_v58  ;;  %vm1046_vm8 = vmor %vm1044_vm7, %vm1045_vm6  ;;  %vm1054_vm10 = vweird.f32 %v944_v58 }
 0x228   : > { %v1040_v63 = vmul.f32 %v4784_v57, %v1039_v61 }
 0x229   : > { %652 = vxpose.xlu1.b32.cont [12/16] %v600_v62, 128  ;;  %v606_v62 = vld [vmem:[%s5535_s30 + $0xe8] sm:$0xff] }
 0x22a   : > { %v1041_v3 = vmul.f32 0.5, %v1040_v63  ;;  %v859_v5 = vpop.xlane.xlu2 %858 }
 0x22b   : > { %v913_v48 = vmul.f32 %v859_v5, %v5582_v37 }
 0x22c   : > { %v1042_v8 = vsub.f32 1.5, %v1041_v3 }
 0x22d   : > { %v4786_v9 = vpop.eup %4785  ;;  %v945_v15 = vadd.f32 1e-06, %v913_v48 }
 0x22e   : > { %v1043_v17 = vmul.f32 %v4784_v57, %v1042_v8  ;;  %v1049_v18 = vmul.f32 %v4786_v9, %v944_v58  ;;  %vm1055_vm9 = vweird.f32 %v4786_v9 }
 0x22f   : > { %4787 = vrsqrt.f32 %v945_v15  ;;  %vm1056_vm11 = vmor %vm1054_vm10, %vm1055_vm9  ;;  %vm1064_vm13 = vweird.f32 %v945_v15 }
 0x230   : > { %v1047_v12 = vsel %vm1046_vm8, %v4784_v57, %v1043_v17  ;;  %v1050_v22 = vmul.f32 %v4786_v9, %v1049_v18 }
 0x231   : > { %v1295_v23 = vmul.f32 %v1047_v12, %v5627_v6  ;;  %653 = vxpose.xlu1.b32.cont [13/16] %v602_v20, 128 }
 0x232   : > { %v1051_v26 = vmul.f32 0.5, %v1050_v22  ;;  %v863_v27 = vpop.xlane.xlu0 %862  ;;  %v861_v28 = vpop.xlane.xlu2 %860 }
 0x233   : > { %v915_v1 = vmul.f32 %v863_v27, %v5582_v37  ;;  %v914_v29 = vmul.f32 %v861_v28, %v5582_v37  ;;  %v1331_v32 = vmul.f32 %v5696_v16, %v1295_v23 }
 0x234   : > { %v1052_v33 = vsub.f32 1.5, %v1051_v26 }
 0x235   : > { %v4788_v36 = vpop.eup %4787  ;;  %v947_v39 = vadd.f32 1e-06, %v915_v1  ;;  %v946_v41 = vadd.f32 1e-06, %v914_v29  ;;  %v5766_v6 = vadd.f32 %v5704_v25, %v1331_v32 }
 0x236   : > { %v1053_v43 = vmul.f32 %v4786_v9, %v1052_v33  ;;  %v1059_v45 = vmul.f32 %v4788_v36, %v945_v15  ;;  %vm1065_vm12 = vweird.f32 %v4788_v36 }
 0x237   : > { %4789 = vrsqrt.f32 %v947_v39  ;;  %v1395_v47 = vpack.c.bf16 %v5766_v6, %v5763_v42  ;;  %vm1066_vm14 = vmor %vm1064_vm13, %vm1065_vm12  ;;  %vm1084_vm1 = vweird.f32 %v947_v39  ;;  %vm1074_vm3 = vweird.f32 %v946_v41 }
 0x238   : > { %v1060_v50 = vmul.f32 %v4788_v36, %v1059_v45  ;;  %4791 = vrsqrt.f32 %v946_v41  ;;  %v1057_v51 = vsel %vm1056_vm11, %v4786_v9, %v1053_v43 }
 0x239   : > { %654 = vxpose.xlu1.b32.cont [14/16] %v604_v46, 128  ;;  %1499 = vmatmul.bf16.gmra.mxu0 %v1395_v47  ;;  %v1296_v55 = vmul.f32 %v1057_v51, %v5633_v10 }
 0x23a   : > { %v1061_v60 = vmul.f32 0.5, %v1060_v50 }
 0x23b   : > { %v1332_v48 = vmul.f32 %v5696_v16, %v1296_v55 }
 0x23c   : > { %v1062_v53 = vsub.f32 1.5, %v1061_v60 }
 0x23d   : > { %v4790_v54 = vpop.eup %4789  ;;  %v5777_v17 = vadd.f32 %v5704_v25, %v1332_v48 }
 0x23e   : > { %v4792_v57 = vpop.eup %4791  ;;  %v1063_v59 = vmul.f32 %v4788_v36, %v1062_v53  ;;  %v1079_v61 = vmul.f32 %v4790_v54, %v947_v39  ;;  %vm1085_vm15 = vweird.f32 %v4790_v54  ;;  %v5809_v39 = vld [vmem:[%s7653_s8] ss:$0 sm:$0xff] }
 0x23f   : > { %v1069_v58 = vmul.f32 %v4792_v57, %v946_v41  ;;  %vm1075_vm0 = vweird.f32 %v4792_v57  ;;  %vm1086_vm2 = vmor %vm1084_vm1, %vm1085_vm15 }
 0x240   : > { %v1067_v63 = vsel %vm1066_vm14, %v4788_v36, %v1063_v59  ;;  %v1080_v2 = vmul.f32 %v4790_v54, %v1079_v61  ;;  %vm1076_vm4 = vmor %vm1074_vm3, %vm1075_vm0 }
 0x241   : > { %v1297_v3 = vmul.f32 %v1067_v63, %v5639_v14  ;;  %v1070_v5 = vmul.f32 %v4792_v57, %v1069_v58  ;;  %655 = vxpose.xlu1.b32.cont [15/16] %v606_v62, 128  ;;  %v608_v14 = vld [vmem:[%s5535_s30 + $0xf8] sm:$0xff] }
 0x242   : > { %v1081_v8 = vmul.f32 0.5, %v1080_v2 }
 0x243   : > { %v1071_v9 = vmul.f32 0.5, %v1070_v5  ;;  %v1333_v10 = vmul.f32 %v5696_v16, %v1297_v3 }
 0x244   : > { %v1082_v11 = vsub.f32 1.5, %v1081_v8 }
 0x245   : > { %v1072_v15 = vsub.f32 1.5, %v1071_v9  ;;  %v5780_v18 = vadd.f32 %v5704_v25, %v1333_v10 }
 0x246   : > { %v1083_v20 = vmul.f32 %v4790_v54, %v1082_v11 }
 0x247   : > { %v1073_v12 = vmul.f32 %v4792_v57, %v1072_v15  ;;  %v1396_v22 = vpack.c.bf16 %v5780_v18, %v5777_v17 }
 0x248   : > { %v1087_v23 = vsel %vm1086_vm2, %v4790_v54, %v1083_v20 }
 0x249   : > { %v1077_v24 = vsel %vm1076_vm4, %v4792_v57, %v1073_v12  ;;  %656 = vxpose.xlu1.b32.end [16/16] %v608_v14, 128  ;;  %1504 = vmatmul.bf16.gmra.mxu0 %v1396_v22  ;;  %v1299_v26 = vmul.f32 %v1087_v23, %v5649_v21  ;;  %v1854_v21 = vld [vmem:[%s7654_s9 + $0x8] sm:$0xff] }
 0x24a   : > { %v1298_v27 = vmul.f32 %v1077_v24, %v5645_v19  ;;  %v1853_v19 = vld [vmem:[%s7654_s9] sm:$0xff]  ;;  %1970 = vmatpush.msra.mxu1 %v1854_v21 }
 0x24b   : > { %v1335_v1 = vmul.f32 %v5696_v16, %v1299_v26 }
 0x24c   : > { %v1334_v28 = vmul.f32 %v5696_v16, %v1298_v27  ;;  %1971 = vmatpush.msra.mxu1 %v1853_v19 }
 0x24d   : > { %v5793_v32 = vadd.f32 %v5704_v25, %v1335_v1 }
 0x24e   : > { %v5790_v29 = vadd.f32 %v5704_v25, %v1334_v28 }
 0x250   : > { %v1397_v33 = vpack.c.bf16 %v5793_v32, %v5790_v29 }
 0x259   : > { %1509 = vmatmul.bf16.gmra.mxu0 %v1397_v33 }
 0x275   : > { %v5803_v36 = vpop.trf.xlu1 }
 0x276   : > { %705 = vadd.xlane.f32.xlu2 %v5803_v36 }
 0x27d   : > { %v5811_v41 = vpop.trf.xlu1 }
 0x27e   : > { %v1485_v43 = vpop.f32.mrf.mxu0  ;;  %707 = vadd.xlane.f32.xlu2 %v5811_v41 }
 0x27f   : > { %v1486_v45 = vadd.f32 %v5809_v39, %v1485_v43 }
 0x281   : > { %v1597_v46 = vmul.f32 0.044715, %v1486_v45  ;;  %v1565_v8 = vmul.f32 0.5, %v1486_v45 }
 0x283   : > { %v1629_v47 = vmul.f32 %v1597_v46, %v1486_v45 }
 0x285   : > { %v5815_v50 = vpop.trf.xlu1  ;;  %v1661_v51 = vmul.f32 %v1629_v47, %v1486_v45 }
 0x286   : > { %v1487_v60 = vpop.f32.mrf.mxu0  ;;  %709 = vadd.xlane.f32.xlu2 %v5815_v50 }
 0x287   : > { %v1488_v53 = vadd.f32 %v5809_v39, %v1487_v60  ;;  %v1693_v54 = vadd.f32 %v1661_v51, %v1486_v45 }
 0x289   : > { %v1598_v55 = vmul.f32 0.044715, %v1488_v53  ;;  %v1725_v57 = vmul.f32 0.7978846, %v1693_v54  ;;  %v1566_v27 = vmul.f32 0.5, %v1488_v53 }
 0x28b   : > { %4793 = vtanh.f32 %v1725_v57  ;;  %v1630_v59 = vmul.f32 %v1598_v55, %v1488_v53 }
 0x28d   : > { %v5819_v61 = vpop.trf.xlu1  ;;  %v1662_v62 = vmul.f32 %v1630_v59, %v1488_v53 }
 0x28e   : > { %v1490_v58 = vpop.f32.mrf.mxu0  ;;  %711 = vadd.xlane.f32.xlu2 %v5819_v61 }
 0x28f   : > { %v1491_v63 = vadd.f32 %v5809_v39, %v1490_v58  ;;  %v1694_v2 = vadd.f32 %v1662_v62, %v1488_v53 }
 0x291   : > { %v4794_v3 = vpop.eup %4793  ;;  %v1599_v5 = vmul.f32 0.044715, %v1491_v63  ;;  %v1726_v48 = vmul.f32 0.7978846, %v1694_v2  ;;  %v1567_v54 = vmul.f32 0.5, %v1491_v63 }
 0x292   : > { %v1789_v9 = vadd.f32 1.0, %v4794_v3 }
 0x293   : > { %4795 = vtanh.f32 %v1726_v48  ;;  %v1631_v10 = vmul.f32 %v1599_v5, %v1491_v63 }
 0x294   : > { %v1821_v11 = vmul.f32 %v1789_v9, %v1565_v8 }
 0x295   : > { %v5823_v15 = vpop.trf.xlu1  ;;  %v1663_v20 = vmul.f32 %v1631_v10, %v1491_v63 }
 0x296   : > { %v1492_v14 = vpop.f32.mrf.mxu0  ;;  %4393 = vmatmul.msk.f32.vlgmr.msra.gmra.mxu1 %vm1859_vm5, %v1821_v11  ;;  %713 = vadd.xlane.f32.xlu2 %v5823_v15 }
 0x297   : > { %v1493_v12 = vadd.f32 %v5809_v39, %v1492_v14  ;;  %v1695_v22 = vadd.f32 %v1663_v20, %v1491_v63 }
 0x299   : > { %v4796_v23 = vpop.eup %4795  ;;  %v1600_v24 = vmul.f32 0.044715, %v1493_v12  ;;  %v1727_v26 = vmul.f32 0.7978846, %v1695_v22  ;;  %v1568_v8 = vmul.f32 0.5, %v1493_v12 }
 0x29a   : > { %v1790_v28 = vadd.f32 1.0, %v4796_v23 }
 0x29b   : > { %4797 = vtanh.f32 %v1727_v26  ;;  %v1632_v1 = vmul.f32 %v1600_v24, %v1493_v12 }
 0x29c   : > { %v1822_v33 = vmul.f32 %v1790_v28, %v1566_v27 }
 0x29d   : > { %v5828_v21 = vpop.trf.xlu1  ;;  %v1664_v19 = vmul.f32 %v1632_v1, %v1493_v12 }
 0x29e   : > { %v1495_v43 = vpop.f32.mrf.mxu0  ;;  %4394 = vmatmul.msk.f32.gmra.mxu1 %vm1859_vm5, %v1822_v33  ;;  %715 = vadd.xlane.f32.xlu2 %v5828_v21 }
 0x29f   : > { %v1496_v45 = vadd.f32 %v5809_v39, %v1495_v43  ;;  %v1696_v46 = vadd.f32 %v1664_v19, %v1493_v12 }
 0x2a1   : > { %v4798_v47 = vpop.eup %4797  ;;  %v1601_v51 = vmul.f32 0.044715, %v1496_v45  ;;  %v1728_v60 = vmul.f32 0.7978846, %v1696_v46  ;;  %v1569_v23 = vmul.f32 0.5, %v1496_v45 }
 0x2a2   : > { %v1791_v53 = vadd.f32 1.0, %v4798_v47 }
 0x2a3   : > { %4799 = vtanh.f32 %v1728_v60  ;;  %v1633_v55 = vmul.f32 %v1601_v51, %v1496_v45 }
 0x2a4   : > { %v1823_v57 = vmul.f32 %v1791_v53, %v1567_v54 }
 0x2a5   : > { %v1665_v59 = vmul.f32 %v1633_v55, %v1496_v45 }
 0x2a6   : > { %v1497_v62 = vpop.f32.mrf.mxu0  ;;  %4395 = vmatmul.msk.f32.gmra.mxu1 %vm1859_vm5, %v1823_v57 }
 0x2a7   : > { %v1498_v58 = vadd.f32 %v5809_v39, %v1497_v62  ;;  %v1697_v2 = vadd.f32 %v1665_v59, %v1496_v45 }
 0x2a9   : > { %v4800_v3 = vpop.eup %4799  ;;  %v1602_v5 = vmul.f32 0.044715, %v1498_v58  ;;  %v1729_v48 = vmul.f32 0.7978846, %v1697_v2  ;;  %v1570_v33 = vmul.f32 0.5, %v1498_v58 }
 0x2aa   : > { %v1792_v9 = vadd.f32 1.0, %v4800_v3 }
 0x2ab   : > { %4801 = vtanh.f32 %v1729_v48  ;;  %v1634_v10 = vmul.f32 %v1602_v5, %v1498_v58 }
 0x2ac   : > { %v1824_v11 = vmul.f32 %v1792_v9, %v1568_v8 }
 0x2ad   : > { %v1666_v63 = vmul.f32 %v1634_v10, %v1498_v58 }
 0x2ae   : > { %4396 = vmatmul.msk.f32.gmra.mxu1 %vm1859_vm5, %v1824_v11 }
 0x2af   : > { %v1698_v20 = vadd.f32 %v1666_v63, %v1498_v58 }
 0x2b1   : > { %v4802_v14 = vpop.eup %4801  ;;  %v1730_v22 = vmul.f32 0.7978846, %v1698_v20 }
 0x2b2   : > { %v1793_v24 = vadd.f32 1.0, %v4802_v14 }
 0x2b3   : > { %4803 = vtanh.f32 %v1730_v22 }
 0x2b4   : > { %v1825_v26 = vmul.f32 %v1793_v24, %v1569_v23 }
 0x2b6   : > { %v1500_v27 = vpop.f32.mrf.mxu0  ;;  %4397 = vmatmul.msk.f32.gmra.mxu1 %vm1859_vm5, %v1825_v26 }
 0x2b7   : > { %v1501_v28 = vadd.f32 %v5809_v39, %v1500_v27 }
 0x2b9   : > { %v4804_v12 = vpop.eup %4803  ;;  %v1603_v1 = vmul.f32 0.044715, %v1501_v28  ;;  %v1571_v48 = vmul.f32 0.5, %v1501_v28 }
 0x2ba   : > { %v1794_v19 = vadd.f32 1.0, %v4804_v12 }
 0x2bb   : > { %v1635_v43 = vmul.f32 %v1603_v1, %v1501_v28 }
 0x2bc   : > { %v1826_v46 = vmul.f32 %v1794_v19, %v1570_v33 }
 0x2bd   : > { %v1667_v47 = vmul.f32 %v1635_v43, %v1501_v28 }
 0x2be   : > { %v1502_v51 = vpop.f32.mrf.mxu0  ;;  %4398 = vmatmul.msk.f32.gmra.mxu1 %vm1859_vm5, %v1826_v46 }
 0x2bf   : > { %v1503_v45 = vadd.f32 %v5809_v39, %v1502_v51  ;;  %v1699_v60 = vadd.f32 %v1667_v47, %v1501_v28 }
 0x2c1   : > { %v1604_v54 = vmul.f32 0.044715, %v1503_v45  ;;  %v1731_v53 = vmul.f32 0.7978846, %v1699_v60  ;;  %v1572_v26 = vmul.f32 0.5, %v1503_v45 }
 0x2c3   : > { %4805 = vtanh.f32 %v1731_v53  ;;  %v1636_v55 = vmul.f32 %v1604_v54, %v1503_v45 }
 0x2c5   : > { %v1668_v57 = vmul.f32 %v1636_v55, %v1503_v45 }
 0x2c6   : > { %v1505_v59 = vpop.f32.mrf.mxu0 }
 0x2c7   : > { %v1506_v62 = vadd.f32 %v5809_v39, %v1505_v59  ;;  %v1700_v2 = vadd.f32 %v1668_v57, %v1503_v45 }
 0x2c9   : > { %v4806_v58 = vpop.eup %4805  ;;  %v1605_v3 = vmul.f32 0.044715, %v1506_v62  ;;  %v1732_v5 = vmul.f32 0.7978846, %v1700_v2  ;;  %v1573_v60 = vmul.f32 0.5, %v1506_v62 }
 0x2ca   : > { %v1795_v8 = vadd.f32 1.0, %v4806_v58 }
 0x2cb   : > { %4807 = vtanh.f32 %v1732_v5  ;;  %v1637_v9 = vmul.f32 %v1605_v3, %v1506_v62 }
 0x2cc   : > { %v1827_v10 = vmul.f32 %v1795_v8, %v1571_v48 }
 0x2cd   : > { %v1669_v11 = vmul.f32 %v1637_v9, %v1506_v62 }
 0x2ce   : > { %v1507_v63 = vpop.f32.mrf.mxu0  ;;  %4399 = vmatmul.msk.f32.gmra.mxu1 %vm1859_vm5, %v1827_v10 }
 0x2cf   : > { %v1508_v20 = vadd.f32 %v5809_v39, %v1507_v63  ;;  %v1701_v14 = vadd.f32 %v1669_v11, %v1506_v62 }
 0x2d1   : > { %v4808_v22 = vpop.eup %4807  ;;  %v1606_v23 = vmul.f32 0.044715, %v1508_v20  ;;  %v1733_v24 = vmul.f32 0.7978846, %v1701_v14  ;;  %v1574_v48 = vmul.f32 0.5, %v1508_v20 }
 0x2d2   : > { %v1796_v27 = vadd.f32 1.0, %v4808_v22 }
 0x2d3   : > { %4809 = vtanh.f32 %v1733_v24  ;;  %v1638_v12 = vmul.f32 %v1606_v23, %v1508_v20 }
 0x2d4   : > { %v1828_v1 = vmul.f32 %v1796_v27, %v1572_v26  ;;  %v5849_v27 = vpop.trf.xlu1 }
 0x2d5   : > { %v1670_v28 = vmul.f32 %v1638_v12, %v1508_v20 }
 0x2d6   : > { %v1510_v33 = vpop.f32.mrf.mxu0  ;;  %4400 = vmatmul.msk.f32.gmra.mxu1 %vm1859_vm5, %v1828_v1  ;;  %v756_v1 = vmul.f32 %v5582_v37, %v5671_v30 }
 0x2d7   : > { %v1511_v19 = vadd.f32 %v5809_v39, %v1510_v33  ;;  %v1702_v43 = vadd.f32 %v1670_v28, %v1508_v20 }
 0x2d9   : > { %v4810_v46 = vpop.eup %4809  ;;  %v1607_v47 = vmul.f32 0.044715, %v1511_v19  ;;  %v1734_v51 = vmul.f32 0.7978846, %v1702_v43  ;;  %v1575_v24 = vmul.f32 0.5, %v1511_v19 }
 0x2da   : > { %v1797_v54 = vadd.f32 1.0, %v4810_v46 }
 0x2db   : > { %4811 = vtanh.f32 %v1734_v51  ;;  %v1639_v53 = vmul.f32 %v1607_v47, %v1511_v19 }
 0x2dc   : > { %v1829_v55 = vmul.f32 %v1797_v54, %v1573_v60  ;;  %v757_v60 = vmul.f32 %v5582_v37, %v5677_v35 }
 0x2dd   : > { %v1671_v45 = vmul.f32 %v1639_v53, %v1511_v19 }
 0x2de   : > { %v1512_v57 = vpop.f32.mrf.mxu0  ;;  %4401 = vmatmul.msk.f32.gmra.mxu1 %vm1859_vm5, %v1829_v55  ;;  %v5870_v53 = vsub.f32 %v5579_v34, %v757_v60  ;;  %v759_v34 = vmul.f32 %v5582_v37, %v5735_v40 }
 0x2df   : > { %v1513_v59 = vadd.f32 %v5809_v39, %v1512_v57  ;;  %v1703_v2 = vadd.f32 %v1671_v45, %v1511_v19  ;;  %v5860_v19 = vsub.f32 %v5576_v31, %v756_v1  ;;  %v758_v31 = vmul.f32 %v5582_v37, %v5722_v7 }
 0x2e0   : > { %v821_v55 = vmul.f32 %v5870_v53, %v5870_v53 }
 0x2e1   : > { %v4812_v58 = vpop.eup %4811  ;;  %v1608_v3 = vmul.f32 0.044715, %v1513_v59  ;;  %v1735_v5 = vmul.f32 0.7978846, %v1703_v2  ;;  %v1576_v46 = vmul.f32 0.5, %v1513_v59  ;;  %v820_v30 = vmul.f32 %v5860_v19, %v5860_v19 }
 0x2e2   : > { %v1798_v8 = vadd.f32 1.0, %v4812_v58  ;;  %v5879_v57 = vsub.f32 %v5615_v0, %v758_v31  ;;  %v5894_v0 = vsub.f32 %v5622_v4, %v759_v34 }
 0x2e3   : > { %4813 = vtanh.f32 %v1735_v5  ;;  %v1640_v9 = vmul.f32 %v1608_v3, %v1513_v59 }
 0x2e4   : > { %v1830_v10 = vmul.f32 %v1798_v8, %v1574_v48  ;;  %v822_v7 = vmul.f32 %v5879_v57, %v5879_v57  ;;  %v823_v48 = vmul.f32 %v5894_v0, %v5894_v0 }
 0x2e5   : > { %v1672_v62 = vmul.f32 %v1640_v9, %v1513_v59 }
 0x2e6   : > { %4402 = vmatmul.msk.f32.gmra.mxu1 %vm1859_vm5, %v1830_v10 }
 0x2e7   : > { %v1704_v11 = vadd.f32 %v1672_v62, %v1513_v59 }
 0x2e9   : > { %v4814_v63 = vpop.eup %4813  ;;  %v706_v14 = vpop.xlane.xlu2 %705  ;;  %v1736_v22 = vmul.f32 0.7978846, %v1704_v11 }
 0x2ea   : > { %v760_v23 = vmul.f32 %v5582_v37, %v706_v14  ;;  %v1799_v26 = vadd.f32 1.0, %v4814_v63 }
 0x2eb   : > { %4815 = vtanh.f32 %v1736_v22 }
 0x2ec   : > { %v5852_v20 = vsub.f32 %v5803_v36, %v760_v23  ;;  %v1831_v12 = vmul.f32 %v1799_v26, %v1575_v24  ;;  %v5862_v36 = vpop.trf.xlu1 }
 0x2ee   : > { %4403 = vmatmul.msk.f32.gmra.mxu1 %vm1859_vm5, %v1831_v12  ;;  %v824_v28 = vmul.f32 %v5852_v20, %v5852_v20 }
 0x2f0   : > { %872 = vadd.xlane.f32.xlu2 %v824_v28 }
 0x2f1   : > { %v4816_v33 = vpop.eup %4815  ;;  %v708_v43 = vpop.xlane.xlu2 %707 }
 0x2f2   : > { %v1800_v47 = vadd.f32 1.0, %v4816_v33 }
 0x2f4   : > { %v1832_v51 = vmul.f32 %v1800_v47, %v1576_v46  ;;  %v5876_v45 = vpop.trf.xlu1 }
 0x2f6   : > { %4404 = vmatmul.msk.f32.gmra.mxu1 %vm1859_vm5, %v1832_v51 }
 0x2f8   : > { %864 = vadd.xlane.f32.xlu2 %v820_v30 }
 0x2f9   : > { %v710_v54 = vpop.xlane.xlu2 %709 }
 0x2fa   : > { %v762_v14 = vmul.f32 %v5582_v37, %v710_v54 }
 0x2fc   : > { %v5891_v5 = vpop.trf.xlu1 }
 0x300   : > { %866 = vadd.xlane.f32.xlu2 %v821_v55 }
 0x301   : > { %v712_v35 = vpop.xlane.xlu2 %711 }
 0x302   : > { %v763_v59 = vmul.f32 %v5582_v37, %v712_v35 }
 0x304   : > { %v5883_v2 = vsub.f32 %v5819_v61, %v763_v59  ;;  %v761_v61 = vmul.f32 %v5582_v37, %v708_v43  ;;  %v5900_v8 = vpop.trf.xlu1 }
 0x306   : > { %v827_v58 = vmul.f32 %v5883_v2, %v5883_v2  ;;  %v5903_v9 = vsub.f32 %v5811_v41, %v761_v61 }
 0x308   : > { %868 = vadd.xlane.f32.xlu2 %v822_v7  ;;  %878 = vadd.xlane.f32.xlu0 %v827_v58  ;;  %v825_v4 = vmul.f32 %v5903_v9, %v5903_v9 }
 0x309   : > { %v714_v3 = vpop.xlane.xlu2 %713 }
 0x30a   : > { %v764_v23 = vmul.f32 %v5582_v37, %v714_v3 }
 0x30c   : > { %v5913_v63 = vpop.trf.xlu1  ;;  %v5930_v24 = vsub.f32 %v5823_v15, %v764_v23 }
 0x30e   : > { %v828_v26 = vmul.f32 %v5930_v24, %v5930_v24 }
 0x310   : > { %870 = vadd.xlane.f32.xlu2 %v823_v48  ;;  %723 = vadd.xlane.f32.xlu0 %v5891_v5 }
 0x311   : > { %v716_v40 = vpop.xlane.xlu2 %715 }
 0x312   : > { %v765_v10 = vmul.f32 %v5582_v37, %v716_v40 }
 0x313   : > { %v5935_v12 = vpop.f32.mrf.mxu1 }
 0x314   : > { %v5907_v62 = vsub.f32 %v5828_v21, %v765_v10  ;;  %v5917_v41 = vpop.trf.xlu1  ;;  %v5923_v21 = vsub.f32 %v5815_v50, %v762_v14 }
 0x316   : > { %v829_v11 = vmul.f32 %v5907_v62, %v5907_v62  ;;  %v826_v22 = vmul.f32 %v5923_v21, %v5923_v21 }
 0x318   : > { %874 = vadd.xlane.f32.xlu2 %v825_v4  ;;  %882 = vadd.xlane.f32.xlu0 %v829_v11 }
 0x31b   : > { %v5937_v1 = vpop.f32.mrf.mxu1 }
 0x320   : > { %717 = vadd.xlane.f32.xlu2 %v5849_v27  ;;  %727 = vadd.xlane.f32.xlu0 %v5913_v63 }
 0x323   : > { %v5940_v46 = vpop.f32.mrf.mxu1 }
 0x328   : > { %719 = vadd.xlane.f32.xlu2 %v5862_v36  ;;  %729 = vadd.xlane.f32.xlu0 %v5917_v41 }
 0x32b   : > { %v5943_v35 = vpop.f32.mrf.mxu1 }
 0x330   : > { %876 = vadd.xlane.f32.xlu2 %v826_v22 }
 0x338   : > { %721 = vadd.xlane.f32.xlu2 %v5876_v45 }
 0x340   : > { %880 = vadd.xlane.f32.xlu2 %v828_v26  ;;  %v5950_v26 = vpop.f32.mrf.mxu1 }
 0x348   : > { %725 = vadd.xlane.f32.xlu2 %v5900_v8 }
 0x363   : > { %v873_v50 = vpop.xlane.xlu2 %872 }
 0x364   : > { %v920_v58 = vmul.f32 %v873_v50, %v5582_v37 }
 0x366   : > { %v5947_v10 = vadd.f32 1e-06, %v920_v58 }
 0x36b   : > { %v865_v28 = vpop.xlane.xlu2 %864 }
 0x36c   : > { %v916_v33 = vmul.f32 %v865_v28, %v5582_v37 }
 0x36e   : > { %v948_v43 = vadd.f32 1e-06, %v916_v33 }
 0x370   : > { %4817 = vrsqrt.f32 %v948_v43  ;;  %vm1094_vm7 = vweird.f32 %v948_v43 }
 0x373   : > { %v867_v15 = vpop.xlane.xlu2 %866 }
 0x374   : > { %v917_v47 = vmul.f32 %v867_v15, %v5582_v37 }
 0x376   : > { %v4818_v51 = vpop.eup %4817  ;;  %v949_v60 = vadd.f32 1e-06, %v917_v47 }
 0x377   : > { %v1089_v30 = vmul.f32 %v4818_v51, %v948_v43  ;;  %vm1095_vm6 = vweird.f32 %v4818_v51 }
 0x378   : > { %4819 = vrsqrt.f32 %v949_v60  ;;  %vm1096_vm8 = vmor %vm1094_vm7, %vm1095_vm6  ;;  %vm1104_vm10 = vweird.f32 %v949_v60  ;;  %vm1134_vm6 = vweird.f32 %v5947_v10 }
 0x379   : > { %v1090_v54 = vmul.f32 %v4818_v51, %v1089_v30 }
 0x37b   : > { %v1091_v31 = vmul.f32 0.5, %v1090_v54  ;;  %v869_v55 = vpop.xlane.xlu2 %868  ;;  %v879_v50 = vpop.xlane.xlu0 %878 }
 0x37c   : > { %v918_v59 = vmul.f32 %v869_v55, %v5582_v37 }
 0x37d   : > { %v1092_v34 = vsub.f32 1.5, %v1091_v31 }
 0x37e   : > { %v4820_v7 = vpop.eup %4819  ;;  %v950_v3 = vadd.f32 1e-06, %v918_v59 }
 0x37f   : > { %v1099_v61 = vmul.f32 %v4820_v7, %v949_v60  ;;  %v1093_v48 = vmul.f32 %v4818_v51, %v1092_v34  ;;  %vm1105_vm9 = vweird.f32 %v4820_v7 }
 0x380   : > { %4821 = vrsqrt.f32 %v950_v3  ;;  %vm1106_vm11 = vmor %vm1104_vm10, %vm1105_vm9  ;;  %vm1114_vm13 = vweird.f32 %v950_v3 }
 0x381   : > { %v1100_v40 = vmul.f32 %v4820_v7, %v1099_v61  ;;  %v1097_v14 = vsel %vm1096_vm8, %v4818_v51, %v1093_v48  ;;  %4823 = vrsqrt.f32 %v5947_v10 }
 0x382   : > { %v1300_v15 = vmul.f32 %v1097_v14, %v5860_v19  ;;  %v923_v19 = vmul.f32 %v879_v50, %v5582_v37  ;;  %v1988_v14 = vpop.f32.mrf.mxu1 }
 0x383   : > { %v1101_v4 = vmul.f32 0.5, %v1100_v40  ;;  %v871_v11 = vpop.xlane.xlu2 %870 }
 0x384   : > { %v919_v22 = vmul.f32 %v871_v11, %v5582_v37  ;;  %v1336_v55 = vmul.f32 %v5696_v16, %v1300_v15 }
 0x385   : > { %v1102_v23 = vsub.f32 1.5, %v1101_v4 }
 0x386   : > { %v951_v28 = vadd.f32 1e-06, %v919_v22  ;;  %v4822_v33 = vpop.eup %4821  ;;  %v5969_v11 = vadd.f32 %v5704_v25, %v1336_v55 }
 0x387   : > { %v1103_v47 = vmul.f32 %v4820_v7, %v1102_v23  ;;  %v1109_v43 = vmul.f32 %v4822_v33, %v950_v3  ;;  %v5956_v59 = vpop.eup %4823  ;;  %vm1115_vm12 = vweird.f32 %v4822_v33  ;;  %v5973_v23 = vld [vmem:[#allocation2] ss:$0 sm:$0xff] }
 0x388   : > { %4825 = vrsqrt.f32 %v951_v28  ;;  %vm1116_vm14 = vmor %vm1114_vm13, %vm1115_vm12  ;;  %vm1124_vm0 = vweird.f32 %v951_v28  ;;  %vm1135_vm3 = vweird.f32 %v5956_v59 }
 0x389   : > { %v1107_v30 = vsel %vm1106_vm11, %v4820_v7, %v1103_v47  ;;  %v1110_v54 = vmul.f32 %v4822_v33, %v1109_v43  ;;  %v1129_v7 = vmul.f32 %v5956_v59, %v5947_v10  ;;  %v5978_v47 = vadd.f32 1e-06, %v923_v19  ;;  %vm1136_vm8 = vmor %vm1134_vm6, %vm1135_vm3 }
 0x38a   : > { %v1301_v51 = vmul.f32 %v1107_v30, %v5870_v53 }
 0x38b   : > { %v875_v31 = vpop.xlane.xlu2 %874  ;;  %v1111_v34 = vmul.f32 0.5, %v1110_v54  ;;  %v1130_v30 = vmul.f32 %v5956_v59, %v1129_v7  ;;  %vm1164_vm10 = vweird.f32 %v5978_v47 }
 0x38c   : > { %v921_v58 = vmul.f32 %v875_v31, %v5582_v37  ;;  %v1337_v61 = vmul.f32 %v5696_v16, %v1301_v51  ;;  %v5971_v16 = vpop.xlane.xlu0 %723  ;;  %v5341_v31 = vmov 0  }
 0x38d   : > { %v1112_v48 = vsub.f32 1.5, %v1111_v34  ;;  %4761 = vset.pattern.permute.xlu1 %v5341_v31  ;;  %4759 = vset.pattern.permute.xlu0 %v5341_v31  ;;  %v1131_v19 = vmul.f32 0.5, %v1130_v30 }
 0x38e   : > { %v4826_v60 = vpop.eup %4825  ;;  %v5961_v40 = vadd.f32 1e-06, %v921_v58  ;;  %v5964_v53 = vadd.f32 %v5704_v25, %v1337_v61  ;;  %v1989_v25 = vadd.f32 %v5973_v23, %v1988_v14  ;;  %4760 = vset.pattern.permute.xlu2 %v5341_v31  ;;  %v5994_v14 = vld [vmem:[%s7705_s1] ss:$0 sm:$0xff] }
 0x38f   : > { %v1119_v4 = vmul.f32 %v4826_v60, %v951_v28  ;;  %v1113_v22 = vmul.f32 %v4822_v33, %v1112_v48  ;;  %vm1125_vm15 = vweird.f32 %v4826_v60  ;;  %v6006_v31 = vld [vmem:[%s7647_s2] ss:$0 sm:$0xff] }
 0x390   : > { %4827 = vrsqrt.f32 %v5961_v40  ;;  %v1398_v15 = vpack.c.bf16 %v5964_v53, %v5969_v11  ;;  %v2074_v61 = vsub.f32 0.0, %v1989_v25  ;;  %vm1126_vm1 = vmor %vm1124_vm0, %vm1125_vm15  ;;  %vm1144_vm4 = vweird.f32 %v5961_v40 }
 0x391   : > { %v1120_v50 = vmul.f32 %v4826_v60, %v1119_v4  ;;  %v1117_v43 = vsel %vm1116_vm14, %v4822_v33, %v1113_v22  ;;  %4829 = vrsqrt.f32 %v5978_v47 }
 0x392   : > { %1514 = vmatmul.bf16.gmra.mxu0 %v1398_v15  ;;  %v1302_v55 = vmul.f32 %v1117_v43, %v5879_v57  ;;  %v2111_v28 = vmul.f32 1.442695, %v2074_v61  ;;  %v1132_v43 = vsub.f32 1.5, %v1131_v19 }
 0x393   : > { %v1121_v51 = vmul.f32 0.5, %v1120_v50  ;;  %v718_v3 = vpop.xlane.xlu2 %717 }
 0x394   : > { %v766_v54 = vmul.f32 %v5582_v37, %v718_v3  ;;  %v883_v50 = vpop.xlane.xlu0 %882  ;;  %4831 = vpow2.f32 %v2111_v28  ;;  %v1133_v19 = vmul.f32 %v5956_v59, %v1132_v43 }
 0x395   : > { %v1122_v34 = vsub.f32 1.5, %v1121_v51 }
 0x396   : > { %v5986_v33 = vsub.f32 %v5849_v27, %v766_v54  ;;  %v4828_v58 = vpop.eup %4827  ;;  %v1338_v27 = vmul.f32 %v5994_v14, %v1302_v55  ;;  %v925_v54 = vmul.f32 %v883_v50, %v5582_v37 }
 0x397   : > { %v1123_v48 = vmul.f32 %v4826_v60, %v1122_v34  ;;  %v1139_v7 = vmul.f32 %v4828_v58, %v5961_v40  ;;  %v5998_v30 = vpop.eup %4829  ;;  %vm1145_vm2 = vweird.f32 %v4828_v58 }
 0x398   : > { %v830_v4 = vmul.f32 %v5986_v33, %v5986_v33  ;;  %vm1146_vm7 = vmor %vm1144_vm4, %vm1145_vm2  ;;  %vm1165_vm9 = vweird.f32 %v5998_v30 }
 0x399   : > { %v1127_v57 = vsel %vm1126_vm1, %v4826_v60, %v1123_v48  ;;  %v1140_v15 = vmul.f32 %v4828_v58, %v1139_v7  ;;  %v1159_v48 = vmul.f32 %v5998_v30, %v5978_v47  ;;  %vm1166_vm11 = vmor %vm1164_vm10, %vm1165_vm9 }
 0x39a   : > { %v1303_v22 = vmul.f32 %v1127_v57, %v5894_v0  ;;  %884 = vadd.xlane.f32.xlu1 %v830_v4  ;;  %v6009_v0 = vadd.f32 %v6006_v31, %v1338_v27  ;;  %v6027_v57 = vadd.f32 1e-06, %v925_v54  ;;  %v4832_v43 = vpop.eup %4831 }
 0x39b   : > { %v720_v25 = vpop.xlane.xlu2 %719  ;;  %v1141_v51 = vmul.f32 0.5, %v1140_v15  ;;  %v1160_v50 = vmul.f32 %v5998_v30, %v1159_v48  ;;  %v6031_v15 = vpop.trf.xlu1 }
 0x39c   : > { %v767_v60 = vmul.f32 %v5582_v37, %v720_v25  ;;  %v1339_v3 = vmul.f32 %v5994_v14, %v1303_v22  ;;  %v1137_v22 = vsel %vm1136_vm8, %v5956_v59, %v1133_v19  ;;  %4833 = vrsqrt.f32 %v6027_v57 }
 0x39d   : > { %v1142_v55 = vsub.f32 1.5, %v1141_v51  ;;  %v1304_v10 = vmul.f32 %v1137_v22, %v5852_v20  ;;  %v769_v59 = vmul.f32 %v5582_v37, %v5971_v16  ;;  %vm1184_vm0 = vweird.f32 %v6027_v57 }
 0x39e   : > { %v6012_v34 = vsub.f32 %v5862_v36, %v767_v60  ;;  %v6015_v61 = vadd.f32 %v6006_v31, %v1339_v3  ;;  %v2170_v60 = vadd.f32 1.0, %v4832_v43 }
 0x39f   : > { %v1143_v7 = vmul.f32 %v4828_v58, %v1142_v55  ;;  %v1340_v54 = vmul.f32 %v5994_v14, %v1304_v10  ;;  %v6045_v20 = vsub.f32 %v5891_v5, %v769_v59 }
 0x3a0   : > { %v1399_v4 = vpack.c.bf16 %v6015_v61, %v6009_v0  ;;  %v831_v36 = vmul.f32 %v6012_v34, %v6012_v34 }
 0x3a1   : > { %v1147_v27 = vsel %vm1146_vm7, %v4828_v58, %v1143_v7  ;;  %v1161_v58 = vmul.f32 0.5, %v1160_v50 }
 0x3a2   : > { %886 = vadd.xlane.f32.xlu2 %v831_v36  ;;  %1519 = vmatmul.bf16.gmra.mxu0 %v1399_v4  ;;  %v1305_v25 = vmul.f32 %v1147_v27, %v5903_v9  ;;  %v6042_v9 = vpop.eup %4833  ;;  %v6057_v27 = vadd.f32 %v6006_v31, %v1340_v54 }
 0x3a3   : > { %v877_v40 = vpop.xlane.xlu2 %876  ;;  %v1162_v55 = vsub.f32 1.5, %v1161_v58  ;;  %v6048_v7 = vpop.trf.xlu1  ;;  %v1179_v5 = vmul.f32 %v6042_v9, %v6027_v57  ;;  %vm1185_vm15 = vweird.f32 %v6042_v9 }
 0x3a4   : > { %v922_v28 = vmul.f32 %v877_v40, %v5582_v37  ;;  %v1341_v3 = vmul.f32 %v5994_v14, %v1305_v25  ;;  %v833_v40 = vmul.f32 %v6045_v20, %v6045_v20  ;;  %vm1186_vm1 = vmor %vm1184_vm0, %vm1185_vm15 }
 0x3a5   : > { %v1163_v22 = vmul.f32 %v5998_v30, %v1162_v55  ;;  %v1180_v58 = vmul.f32 %v6042_v9, %v1179_v5 }
 0x3a6   : > { %v954_v51 = vadd.f32 1e-06, %v922_v28  ;;  %v6051_v16 = vadd.f32 %v6006_v31, %v1341_v3 }
 0x3a7   : > { %v1167_v10 = vsel %vm1166_vm11, %v5998_v30, %v1163_v22 }
 0x3a8   : > { %4835 = vrsqrt.f32 %v954_v51  ;;  %v1400_v43 = vpack.c.bf16 %v6051_v16, %v6057_v27  ;;  %v1307_v55 = vmul.f32 %v1167_v10, %v5883_v2  ;;  %vm1154_vm13 = vweird.f32 %v954_v51 }
 0x3a9   : > { %4837 = vrcp.f32 %v2170_v60  ;;  %v728_v60 = vpop.xlane.xlu0 %727 }
 0x3aa   : > { %731 = vadd.xlane.f32.xlu2 %v6031_v15  ;;  %v771_v30 = vmul.f32 %v5582_v37, %v728_v60 }
 0x3ab   : > { %v722_v19 = vpop.xlane.xlu2 %721 }
 0x3ac   : > { %v768_v48 = vmul.f32 %v5582_v37, %v722_v19 }
 0x3ae   : > { %v4836_v4 = vpop.eup %4835  ;;  %v6054_v36 = vsub.f32 %v5876_v45, %v768_v48  ;;  %v1181_v48 = vmul.f32 0.5, %v1180_v58 }
 0x3af   : > { %v1149_v50 = vmul.f32 %v4836_v4, %v954_v51  ;;  %v4838_v25 = vpop.eup %4837  ;;  %vm1155_vm12 = vweird.f32 %v4836_v4 }
 0x3b0   : > { %v832_v28 = vmul.f32 %v6054_v36, %v6054_v36  ;;  %vm1156_vm14 = vmor %vm1154_vm13, %vm1155_vm12  ;;  %v1182_v2 = vsub.f32 1.5, %v1181_v48 }
 0x3b1   : > { %v1150_v45 = vmul.f32 %v4836_v4, %v1149_v50  ;;  %v730_v10 = vpop.xlane.xlu0 %729 }
 0x3b2   : > { %890 = vadd.xlane.f32.xlu2 %v833_v40  ;;  %888 = vadd.xlane.f32.xlu0 %v832_v28  ;;  %v6074_v40 = vpop.trf.xlu1  ;;  %v1343_v28 = vmul.f32 %v5994_v14, %v1307_v55 }
 0x3b3   : > { %v1151_v59 = vmul.f32 0.5, %v1150_v45  ;;  %1524 = vmatmul.bf16.gmra.mxu0 %v1400_v43  ;;  %2256 = vperm.xlu1 %4761, %v4838_v25   ;;  %v881_v3 = vpop.xlane.xlu2 %880  ;;  %v6082_v43 = vsub.f32 %v5913_v63, %v771_v30 }
 0x3b4   : > { %v924_v54 = vmul.f32 %v881_v3, %v5582_v37  ;;  %v6093_v60 = vadd.f32 %v6006_v31, %v1343_v28  ;;  %v772_v3 = vmul.f32 %v5582_v37, %v730_v10 }
 0x3b5   : > { %v1152_v47 = vsub.f32 1.5, %v1151_v59  ;;  %v1183_v59 = vmul.f32 %v6042_v9, %v1182_v2 }
 0x3b6   : > { %v956_v19 = vadd.f32 1e-06, %v924_v54  ;;  %7707 = vst [vmem:[#allocation20_spill] sm:$0xff] %v6093_v60  ;;  %v835_v54 = vmul.f32 %v6082_v43, %v6082_v43  ;;  %v6107_v30 = vsub.f32 %v5917_v41, %v772_v3 }
 0x3b7   : > { %v1153_v50 = vmul.f32 %v4836_v4, %v1152_v47  ;;  %v1187_v48 = vsel %vm1186_vm1, %v6042_v9, %v1183_v59  ;;  %v6124_v59 = vpop.f32.mrf.mxu1 }
 0x3b8   : > { %4839 = vrsqrt.f32 %v956_v19  ;;  %vm1174_vm3 = vweird.f32 %v956_v19  ;;  %v836_v57 = vmul.f32 %v6107_v30, %v6107_v30 }
 0x3b9   : > { %v1157_v22 = vsel %vm1156_vm14, %v4836_v4, %v1153_v50 }
 0x3ba   : > { %v1306_v5 = vmul.f32 %v1157_v22, %v5923_v21  ;;  %735 = vadd.xlane.f32.xlu2 %v6074_v40  ;;  %733 = vadd.xlane.f32.xlu0 %v6048_v7 }
 0x3bb   : > { %v726_v45 = vpop.xlane.xlu2 %725 }
 0x3bc   : > { %v770_v51 = vmul.f32 %v5582_v37, %v726_v45  ;;  %v1342_v25 = vmul.f32 %v5994_v14, %v1306_v5  ;;  %v1309_v5 = vmul.f32 %v1187_v48, %v5907_v62 }
 0x3be   : > { %v4840_v58 = vpop.eup %4839  ;;  %v6087_v4 = vsub.f32 %v5900_v8, %v770_v51  ;;  %v6090_v21 = vadd.f32 %v6006_v31, %v1342_v25  ;;  %v1345_v9 = vmul.f32 %v5994_v14, %v1309_v5 }
 0x3bf   : > { %v1169_v63 = vmul.f32 %v4840_v58, %v956_v19  ;;  %vm1175_vm2 = vweird.f32 %v4840_v58 }
 0x3c0   : > { %7706 = vst [vmem:[#allocation19_spill] sm:$0xff] %v6090_v21  ;;  %v1401_v8 = vpack.c.bf16 %v6093_v60, %v6090_v21  ;;  %v834_v47 = vmul.f32 %v6087_v4, %v6087_v4  ;;  %vm1176_vm4 = vmor %vm1174_vm3, %vm1175_vm2  ;;  %v6119_v25 = vadd.f32 %v6006_v31, %v1345_v9  ;;  %v6136_v9 = vpop.f32.mrf.mxu1 }
 0x3c1   : > { %v1170_v55 = vmul.f32 %v4840_v58, %v1169_v63 }
 0x3c2   : > { %894 = vadd.xlane.f32.xlu2 %v835_v54  ;;  %892 = vadd.xlane.f32.xlu0 %v834_v47  ;;  %7709 = vst [vmem:[#allocation22_spill] sm:$0xff] %v6119_v25 }
 0x3c3   : > { %v1171_v50 = vmul.f32 0.5, %v1170_v55  ;;  %1529 = vmatmul.bf16.gmra.mxu0 %v1401_v8  ;;  %v1974_v55 = vadd.f32 %v5973_v23, %v5935_v12 }
 0x3c5   : > { %v1172_v22 = vsub.f32 1.5, %v1171_v50 }
 0x3c7   : > { %v1173_v28 = vmul.f32 %v4840_v58, %v1172_v22 }
 0x3c9   : > { %v1177_v2 = vsel %vm1176_vm4, %v4840_v58, %v1173_v28 }
 0x3ca   : > { %v1308_v45 = vmul.f32 %v1177_v2, %v5930_v24  ;;  %896 = vadd.xlane.f32.xlu0 %v836_v57 }
 0x3cc   : > { %v1344_v51 = vmul.f32 %v5994_v14, %v1308_v45  ;;  %v2069_v45 = vsub.f32 0.0, %v1974_v55  ;;  %v1977_v55 = vadd.f32 %v5973_v23, %v5937_v1 }
 0x3ce   : > { %v6116_v41 = vadd.f32 %v6006_v31, %v1344_v51 }
 0x3d0   : > { %7708 = vst [vmem:[#allocation21_spill] sm:$0xff] %v6116_v41  ;;  %v1402_v62 = vpack.c.bf16 %v6119_v25, %v6116_v41  ;;  %v6161_v25 = vpop.f32.mrf.mxu1 }
 0x3d3   : > { %1534 = vmatmul.bf16.gmra.mxu0 %v1402_v62 }
 0x40d   : > { %v885_v19 = vpop.xlane.xlu1 %884 }
 0x40e   : > { %v926_v10 = vmul.f32 %v885_v19, %v5582_v37 }
 0x40f   : > { %v1515_v24 = vpop.f32.mrf.mxu0 }
 0x410   : > { %v958_v58 = vadd.f32 1e-06, %v926_v10  ;;  %v1516_v63 = vadd.f32 %v5809_v39, %v1515_v24 }
 0x412   : > { %4841 = vrsqrt.f32 %v958_v58  ;;  %v1609_v3 = vmul.f32 0.044715, %v1516_v63  ;;  %vm1194_vm7 = vweird.f32 %v958_v58 }
 0x414   : > { %v1641_v8 = vmul.f32 %v1609_v3, %v1516_v63 }
 0x415   : > { %v887_v54 = vpop.xlane.xlu2 %886 }
 0x416   : > { %v927_v47 = vmul.f32 %v887_v54, %v5582_v37  ;;  %v1673_v48 = vmul.f32 %v1641_v8, %v1516_v63  ;;  %v2101_v54 = vmul.f32 1.442695, %v2069_v45 }
 0x417   : > { %v1517_v5 = vpop.f32.mrf.mxu0 }
 0x418   : > { %v4842_v50 = vpop.eup %4841  ;;  %v6130_v22 = vadd.f32 1e-06, %v927_v47  ;;  %v6133_v57 = vadd.f32 %v5809_v39, %v1517_v5  ;;  %v1705_v2 = vadd.f32 %v1673_v48, %v1516_v63 }
 0x419   : > { %v1189_v28 = vmul.f32 %v4842_v50, %v958_v58  ;;  %vm1195_vm6 = vweird.f32 %v4842_v50 }
 0x41a   : > { %4843 = vrsqrt.f32 %v6130_v22  ;;  %v1610_v62 = vmul.f32 0.044715, %v6133_v57  ;;  %v1737_v19 = vmul.f32 0.7978846, %v1705_v2  ;;  %vm6157_vm8 = vmor %vm1194_vm7, %vm1195_vm6  ;;  %vm1204_vm10 = vweird.f32 %v6130_v22 }
 0x41b   : > { %v1190_v51 = vmul.f32 %v4842_v50, %v1189_v28 }
 0x41c   : > { %4845 = vtanh.f32 %v1737_v19  ;;  %v1642_v24 = vmul.f32 %v1610_v62, %v6133_v57 }
 0x41d   : > { %v1191_v12 = vmul.f32 0.5, %v1190_v51  ;;  %v732_v10 = vpop.xlane.xlu2 %731  ;;  %4847 = vpow2.f32 %v2101_v54 }
 0x41e   : > { %v773_v3 = vmul.f32 %v5582_v37, %v732_v10  ;;  %v1674_v47 = vmul.f32 %v1642_v24, %v6133_v57  ;;  %v1980_v10 = vadd.f32 %v5973_v23, %v5940_v46  ;;  %v1986_v46 = vadd.f32 %v5973_v23, %v5950_v26 }
 0x41f   : > { %v1192_v8 = vsub.f32 1.5, %v1191_v12  ;;  %v1520_v28 = vpop.f32.mrf.mxu0 }
 0x420   : > { %v4844_v48 = vpop.eup %4843  ;;  %v6145_v5 = vsub.f32 %v6031_v15, %v773_v3  ;;  %v6149_v62 = vadd.f32 %v5809_v39, %v1520_v28  ;;  %v1706_v19 = vadd.f32 %v1674_v47, %v6133_v57  ;;  %v1577_v39 = vmul.f32 0.5, %v1516_v63 }
 0x421   : > { %v1193_v2 = vmul.f32 %v4842_v50, %v1192_v8  ;;  %v1199_v51 = vmul.f32 %v4844_v48, %v6130_v22  ;;  %v2070_v28 = vsub.f32 0.0, %v1977_v55  ;;  %vm1205_vm9 = vweird.f32 %v4844_v48 }
 0x422   : > { %v837_v45 = vmul.f32 %v6145_v5, %v6145_v5  ;;  %v4846_v12 = vpop.eup %4845  ;;  %v1611_v15 = vmul.f32 0.044715, %v6149_v62  ;;  %v1738_v8 = vmul.f32 0.7978846, %v1706_v19  ;;  %vm1206_vm11 = vmor %vm1204_vm10, %vm1205_vm9 }
 0x423   : > { %v1200_v1 = vmul.f32 %v4844_v48, %v1199_v51  ;;  %v1801_v3 = vadd.f32 1.0, %v4846_v12  ;;  %v1197_v58 = vsel %vm6157_vm8, %v4842_v50, %v1193_v2  ;;  %v2071_v12 = vsub.f32 0.0, %v1980_v10  ;;  %v4848_v26 = vpop.eup %4847 }
 0x424   : > { %898 = vadd.xlane.f32.xlu2 %v837_v45  ;;  %v1643_v51 = vmul.f32 %v1611_v15, %v6149_v62  ;;  %4849 = vtanh.f32 %v1738_v8  ;;  %v1310_v50 = vmul.f32 %v1197_v58, %v5986_v33  ;;  %v2103_v33 = vmul.f32 1.442695, %v2070_v28 }
 0x425   : > { %v1201_v54 = vmul.f32 0.5, %v1200_v1  ;;  %v889_v47 = vpop.xlane.xlu0 %888  ;;  %v891_v60 = vpop.xlane.xlu2 %890  ;;  %v1833_v45 = vmul.f32 %v1801_v3, %v1577_v39  ;;  %v2073_v39 = vsub.f32 0.0, %v1986_v46 }
 0x426   : > { %v928_v41 = vmul.f32 %v889_v47, %v5582_v37  ;;  %v929_v55 = vmul.f32 %v891_v60, %v5582_v37  ;;  %v1675_v19 = vmul.f32 %v1643_v51, %v6149_v62  ;;  %v6181_v60 = vld [vmem:[%s7653_s8] ss:$0 sm:$0xff]  ;;  %v2105_v51 = vmul.f32 1.442695, %v2071_v12 }
 0x427   : > { %v1202_v63 = vsub.f32 1.5, %v1201_v54  ;;  %v1522_v1 = vpop.f32.mrf.mxu0  ;;  %4405 = vmatmul.msk.f32.gmra.mxu1 %vm1859_vm5, %v1833_v45  ;;  %v1346_v54 = vmul.f32 %v5994_v14, %v1310_v50  ;;  %v1578_v45 = vmul.f32 0.5, %v6133_v57 }
 0x428   : > { %v6172_v2 = vadd.f32 1e-06, %v928_v41  ;;  %v6176_v24 = vadd.f32 1e-06, %v929_v55  ;;  %v6184_v10 = vadd.f32 %v6181_v60, %v1522_v1  ;;  %v1707_v41 = vadd.f32 %v1675_v19, %v6149_v62 }
 0x429   : > { %v1203_v15 = vmul.f32 %v4844_v48, %v1202_v63  ;;  %v6195_v19 = vadd.f32 1.0, %v4848_v26 }
 0x42a   : > { %4851 = vrsqrt.f32 %v6172_v2  ;;  %v1612_v22 = vmul.f32 0.044715, %v6184_v10  ;;  %v4850_v8 = vpop.eup %4849  ;;  %v1739_v47 = vmul.f32 0.7978846, %v1707_v41  ;;  %vm1214_vm12 = vweird.f32 %v6172_v2 }
 0x42b   : > { %v1207_v3 = vsel %vm1206_vm11, %v4844_v48, %v1203_v15  ;;  %4853 = vrsqrt.f32 %v6176_v24  ;;  %v1802_v63 = vadd.f32 1.0, %v4850_v8  ;;  %v6199_v15 = vpop.f32.mrf.mxu1  ;;  %vm1224_vm0 = vweird.f32 %v6176_v24 }
 0x42c   : > { %v1311_v58 = vmul.f32 %v1207_v3, %v6012_v34  ;;  %v1644_v55 = vmul.f32 %v1612_v22, %v6184_v10  ;;  %4855 = vtanh.f32 %v1739_v47  ;;  %v2109_v34 = vmul.f32 1.442695, %v2073_v39 }
 0x42d   : > { %v734_v28 = vpop.xlane.xlu0 %733  ;;  %v736_v46 = vpop.xlane.xlu2 %735  ;;  %4857 = vpow2.f32 %v2103_v33  ;;  %v1834_v50 = vmul.f32 %v1802_v63, %v1578_v45  ;;  %v6208_v3 = vadd.f32 %v6006_v31, %v1346_v54  ;;  %v1983_v54 = vadd.f32 %v5973_v23, %v5943_v35 }
 0x42e   : > { %v774_v48 = vmul.f32 %v5582_v37, %v734_v28  ;;  %v1347_v1 = vmul.f32 %v5994_v14, %v1311_v58  ;;  %v775_v12 = vmul.f32 %v5582_v37, %v736_v46  ;;  %v1676_v33 = vmul.f32 %v1644_v55, %v6184_v10 }
 0x42f   : > { %7712 = vst [vmem:[#allocation23_spill] sm:$0xff] %v6208_v3  ;;  %4859 = vpow2.f32 %v2105_v51  ;;  %4406 = vmatmul.msk.f32.gmra.mxu1 %vm1859_vm5, %v1834_v50  ;;  %v6239_v35 = vadd.f32 %v5973_v23, %v6136_v9  ;;  %v1579_v46 = vmul.f32 0.5, %v6149_v62 }
 0x430   : > { %v6202_v41 = vpop.eup %4851  ;;  %v6205_v57 = vsub.f32 %v6048_v7, %v774_v48  ;;  %v1525_v26 = vpop.f32.mrf.mxu0  ;;  %v6211_v22 = vadd.f32 %v6006_v31, %v1347_v1  ;;  %v6219_v58 = vsub.f32 %v6074_v40, %v775_v12  ;;  %4861 = vpow2.f32 %v2109_v34 }
 0x431   : > { %v6214_v39 = vpop.eup %4853  ;;  %v1209_v8 = vmul.f32 %v6202_v41, %v6172_v2  ;;  %v6222_v7 = vadd.f32 %v6181_v60, %v1525_v26  ;;  %v1708_v1 = vadd.f32 %v1676_v33, %v6184_v10  ;;  %vm1215_vm13 = vweird.f32 %v6202_v41 }
 0x432   : > { %7713 = vst [vmem:[#allocation24_spill] sm:$0xff] %v6211_v22  ;;  %v1219_v47 = vmul.f32 %v6214_v39, %v6176_v24  ;;  %v838_v51 = vmul.f32 %v6205_v57, %v6205_v57  ;;  %v1403_v28 = vpack.c.bf16 %v6211_v22, %v6208_v3  ;;  %v839_v63 = vmul.f32 %v6219_v58, %v6219_v58  ;;  %v4856_v55 = vpop.eup %4855  ;;  %vm1216_vm15 = vmor %vm1214_vm12, %vm1215_vm13 }
 0x433   : > { %v1210_v40 = vmul.f32 %v6202_v41, %v1209_v8  ;;  %v1613_v45 = vmul.f32 0.044715, %v6222_v7  ;;  %v4858_v34 = vpop.eup %4857  ;;  %v1803_v26 = vadd.f32 1.0, %v4856_v55  ;;  %vm1225_vm14 = vweird.f32 %v6214_v39 }
 0x434   : > { %v1220_v48 = vmul.f32 %v6214_v39, %v1219_v47  ;;  %900 = vadd.xlane.f32.xlu0 %v838_v51  ;;  %1539 = vmatmul.bf16.gmra.mxu0 %v1403_v28  ;;  %v1740_v28 = vmul.f32 0.7978846, %v1708_v1  ;;  %vm1226_vm1 = vmor %vm1224_vm0, %vm1225_vm14 }
 0x435   : > { %v1211_v12 = vmul.f32 0.5, %v1210_v40  ;;  %902 = vadd.xlane.f32.xlu2 %v839_v63  ;;  %v893_v50 = vpop.xlane.xlu0 %892  ;;  %v1645_v8 = vmul.f32 %v1613_v45, %v6222_v7  ;;  %v895_v51 = vpop.xlane.xlu2 %894  ;;  %v1835_v3 = vmul.f32 %v1803_v26, %v1579_v46  ;;  %v2072_v26 = vsub.f32 0.0, %v1983_v54 }
 0x436   : > { %v1221_v9 = vmul.f32 0.5, %v1220_v48  ;;  %v930_v47 = vmul.f32 %v893_v50, %v5582_v37  ;;  %v4860_v22 = vpop.eup %4859  ;;  %v931_v33 = vmul.f32 %v895_v51, %v5582_v37  ;;  %4863 = vtanh.f32 %v1740_v28  ;;  %v6253_v48 = vpop.f32.mrf.mxu1 }
 0x437   : > { %v1212_v62 = vsub.f32 1.5, %v1211_v12  ;;  %v1677_v40 = vmul.f32 %v1645_v8, %v6222_v7  ;;  %v4862_v55 = vpop.eup %4861  ;;  %4407 = vmatmul.msk.f32.gmra.mxu1 %vm1859_vm5, %v1835_v3  ;;  %v2076_v54 = vsub.f32 0.0, %v6239_v35  ;;  %v2107_v28 = vmul.f32 1.442695, %v2072_v26 }
 0x438   : > { %v1222_v21 = vsub.f32 1.5, %v1221_v9  ;;  %v6251_v63 = vadd.f32 1e-06, %v930_v47  ;;  %v1527_v45 = vpop.f32.mrf.mxu0  ;;  %v6256_v1 = vadd.f32 1e-06, %v931_v33  ;;  %v2166_v9 = vadd.f32 1.0, %v4858_v34 }
 0x439   : > { %v1213_v50 = vmul.f32 %v6202_v41, %v1212_v62  ;;  %v6259_v12 = vadd.f32 %v6181_v60, %v1527_v45  ;;  %v1709_v46 = vadd.f32 %v1677_v40, %v6222_v7  ;;  %v2001_v33 = vadd.f32 %v5973_v23, %v6199_v15 }
 0x43a   : > { %v1223_v8 = vmul.f32 %v6214_v39, %v1222_v21  ;;  %4865 = vrsqrt.f32 %v6251_v63  ;;  %vm1234_vm4 = vweird.f32 %v6251_v63  ;;  %vm1244_vm7 = vweird.f32 %v6256_v1 }
 0x43b   : > { %v1217_v47 = vsel %vm1216_vm15, %v6202_v41, %v1213_v50  ;;  %4867 = vrsqrt.f32 %v6256_v1  ;;  %v1614_v3 = vmul.f32 0.044715, %v6259_v12  ;;  %v1741_v51 = vmul.f32 0.7978846, %v1709_v46 }
 0x43c   : > { %v1312_v2 = vmul.f32 %v1217_v47, %v6054_v36  ;;  %v1227_v21 = vsel %vm1226_vm1, %v6214_v39, %v1223_v8  ;;  %4869 = vrcp.f32 %v6195_v19  ;;  %v4864_v34 = vpop.eup %4863  ;;  %v1580_v36 = vmul.f32 0.5, %v6184_v10 }
 0x43d   : > { %v1313_v24 = vmul.f32 %v1227_v21, %v6045_v20  ;;  %v1646_v41 = vmul.f32 %v1614_v3, %v6259_v12  ;;  %4871 = vtanh.f32 %v1741_v51  ;;  %v1804_v39 = vadd.f32 1.0, %v4864_v34 }
 0x43e   : > { %v1348_v62 = vmul.f32 %v5994_v14, %v1312_v2  ;;  %4873 = vrcp.f32 %v2166_v9  ;;  %v1992_v20 = vadd.f32 %v5973_v23, %v6124_v59  ;;  %v2115_v19 = vmul.f32 1.442695, %v2076_v54  ;;  %v2006_v2 = vpop.f32.mrf.mxu1 }
 0x43f   : > { %v1349_v35 = vmul.f32 %v5994_v14, %v1313_v24  ;;  %v1678_v50 = vmul.f32 %v1646_v41, %v6259_v12  ;;  %v1836_v10 = vmul.f32 %v1804_v39, %v1580_v36  ;;  %v2167_v9 = vadd.f32 1.0, %v4860_v22 }
 0x440   : > { %v6286_v40 = vpop.eup %4865  ;;  %v1530_v45 = vpop.f32.mrf.mxu0  ;;  %v6299_v8 = vadd.f32 %v6006_v31, %v1348_v62  ;;  %4875 = vpow2.f32 %v2107_v28  ;;  %v2169_v47 = vadd.f32 1.0, %v4862_v55  ;;  %v2078_v54 = vsub.f32 0.0, %v2001_v33 }
 0x441   : > { %v6291_v46 = vpop.eup %4867  ;;  %v1229_v15 = vmul.f32 %v6286_v40, %v6251_v63  ;;  %v6296_v26 = vadd.f32 %v6181_v60, %v1530_v45  ;;  %4408 = vmatmul.msk.f32.gmra.mxu1 %vm1859_vm5, %v1836_v10  ;;  %v6307_v24 = vadd.f32 %v6006_v31, %v1349_v35  ;;  %v2075_v34 = vsub.f32 0.0, %v1992_v20 }
 0x442   : > { %v1239_v59 = vmul.f32 %v6291_v46, %v6256_v1  ;;  %v4870_v3 = vpop.eup %4869  ;;  %4877 = vpow2.f32 %v2115_v19  ;;  %v1710_v55 = vadd.f32 %v1678_v50, %v6259_v12  ;;  %v1581_v33 = vmul.f32 0.5, %v6222_v7 }
 0x443   : > { %v1230_v21 = vmul.f32 %v6286_v40, %v1229_v15  ;;  %v1615_v51 = vmul.f32 0.044715, %v6296_v26  ;;  %7714 = vst [vmem:[#allocation25_spill] sm:$0xff] %v6307_v24  ;;  %v4872_v41 = vpop.eup %4871  ;;  %v1404_v62 = vpack.c.bf16 %v6307_v24, %v6299_v8  ;;  %v2007_v45 = vadd.f32 %v5973_v23, %v2006_v2 }
 0x444   : > { %v1240_v22 = vmul.f32 %v6291_v46, %v1239_v59  ;;  %v1805_v36 = vadd.f32 1.0, %v4872_v41  ;;  %v4874_v39 = vpop.eup %4873  ;;  %v1742_v35 = vmul.f32 0.7978846, %v1710_v55  ;;  %v2119_v20 = vmul.f32 1.442695, %v2078_v54 }
 0x445   : > { %v1231_v28 = vmul.f32 0.5, %v1230_v21  ;;  %v1647_v10 = vmul.f32 %v1615_v51, %v6296_v26  ;;  %vm1235_vm2 = vweird.f32 %v6286_v40  ;;  %1544 = vmatmul.bf16.gmra.mxu0 %v1404_v62  ;;  %vm1245_vm3 = vweird.f32 %v6291_v46 }
 0x446   : > { %v1241_v15 = vmul.f32 0.5, %v1240_v22  ;;  %v1837_v50 = vmul.f32 %v1805_v36, %v1581_v33  ;;  %v4876_v59 = vpop.eup %4875  ;;  %4879 = vtanh.f32 %v1742_v35  ;;  %v2080_v41 = vsub.f32 0.0, %v2007_v45  ;;  %vm1236_vm6 = vmor %vm1234_vm4, %vm1235_vm2 }
 0x447   : > { %v1232_v19 = vsub.f32 1.5, %v1231_v28  ;;  %v1679_v7 = vmul.f32 %v1647_v10, %v6296_v26  ;;  %4881 = vrcp.f32 %v2169_v47  ;;  %v2113_v55 = vmul.f32 1.442695, %v2075_v34  ;;  %vm1246_vm8 = vmor %vm1244_vm7, %vm1245_vm3  ;;  %v2481_v28 = vld [vmem:[%s7648_s3 + $0x78] sm:$0xff] }
 0x448   : > { %v1242_v21 = vsub.f32 1.5, %v1241_v15  ;;  %v1532_v24 = vpop.f32.mrf.mxu0  ;;  %2231 = vperm.xlu0 %4759, %v4870_v3   ;;  %v4878_v51 = vpop.eup %4877  ;;  %v1998_v47 = vadd.f32 %v5973_v23, %v6161_v25  ;;  %4883 = vpow2.f32 %v2119_v20  ;;  %2483 = vmatpush.msrb.mxu1 %v2481_v28  ;;  %v2123_v45 = vmul.f32 1.442695, %v2080_v41  ;;  %v2480_v28 = vld [vmem:[%s7648_s3 + $0x70] sm:$0xff] }
 0x449   : > { %v1233_v2 = vmul.f32 %v6286_v40, %v1232_v19  ;;  %v6322_v54 = vadd.f32 %v6181_v60, %v1532_v24  ;;  %v1711_v3 = vadd.f32 %v1679_v7, %v6296_v26  ;;  %4409 = vmatmul.msk.f32.gmra.mxu1 %vm1859_vm5, %v1837_v50  ;;  %4885 = vrcp.f32 %v2167_v9 }
 0x44a   : > { %v1243_v22 = vmul.f32 %v6291_v46, %v1242_v21  ;;  %v2172_v25 = vadd.f32 1.0, %v4878_v51  ;;  %v2168_v9 = vadd.f32 1.0, %v4876_v59  ;;  %v2077_v19 = vsub.f32 0.0, %v1998_v47  ;;  %2484 = vmatpush.msrb.mxu1 %v2480_v28 }
 0x44b   : > { %v1237_v63 = vsel %vm1236_vm6, %v6286_v40, %v1233_v2  ;;  %v1616_v24 = vmul.f32 0.044715, %v6322_v54  ;;  %v1743_v62 = vmul.f32 0.7978846, %v1711_v3  ;;  %v2004_v3 = vadd.f32 %v5973_v23, %v6253_v48 }
 0x44c   : > { %v1314_v1 = vmul.f32 %v1237_v63, %v6087_v4  ;;  %v1247_v34 = vsel %vm1246_vm8, %v6291_v46, %v1243_v22  ;;  %v4880_v36 = vpop.eup %4879  ;;  %v1582_v4 = vmul.f32 0.5, %v6259_v12  ;;  %v2117_v22 = vmul.f32 1.442695, %v2077_v19 }
 0x44d   : > { %v1315_v40 = vmul.f32 %v1247_v34, %v6082_v43  ;;  %2236 = vperm.xlu2 %4760, %v4874_v39   ;;  %v1648_v33 = vmul.f32 %v1616_v24, %v6322_v54  ;;  %4887 = vtanh.f32 %v1743_v62  ;;  %v4882_v35 = vpop.eup %4881  ;;  %v1806_v46 = vadd.f32 1.0, %v4880_v36 }
 0x44e   : > { %v1350_v15 = vmul.f32 %v5994_v14, %v1314_v1  ;;  %4889 = vpow2.f32 %v2113_v55  ;;  %v4884_v12 = vpop.eup %4883  ;;  %v1583_v47 = vmul.f32 0.5, %v6296_v26  ;;  %v2479_v1 = vld [vmem:[%s7648_s3 + $0x68] sm:$0xff]  ;;  %v2079_v26 = vsub.f32 0.0, %v2004_v3 }
 0x44f   : > { %v1351_v10 = vmul.f32 %v5994_v14, %v1315_v40  ;;  %v1680_v20 = vmul.f32 %v1648_v33, %v6322_v54  ;;  %4891 = vrcp.f32 %v2172_v25  ;;  %v1838_v21 = vmul.f32 %v1806_v46, %v1582_v4  ;;  %v4886_v2 = vpop.eup %4885  ;;  %2485 = vmatpush.msrb.mxu1 %v2479_v1 }
 0x450   : > { %v1535_v43 = vpop.f32.mrf.mxu0  ;;  %2251 = vperm.xlu0 %4759, %v4882_v35   ;;  %v6348_v39 = vadd.f32 %v6006_v31, %v1350_v15  ;;  %4893 = vpow2.f32 %v2123_v45  ;;  %v2174_v55 = vadd.f32 1.0, %v4884_v12  ;;  %v2121_v46 = vmul.f32 1.442695, %v2079_v26  ;;  %v4662_v26 = vld [vmem:[#allocation6 + $0x74] sm:$0xf] }
 0x451   : > { %v6351_v50 = vadd.f32 %v6181_v60, %v1535_v43  ;;  %v6354_v14 = vadd.f32 %v6006_v31, %v1351_v10  ;;  %v1712_v7 = vadd.f32 %v1680_v20, %v6322_v54  ;;  %4410 = vmatmul.msk.f32.gmra.mxu1 %vm1859_vm5, %v1838_v21  ;;  %4895 = vrcp.f32 %v2168_v9 }
 0x452   : > { %v1584_v9 = vmul.f32 0.5, %v6322_v54 }
 0x453   : > { %v1617_v59 = vmul.f32 0.044715, %v6351_v50  ;;  %v1405_v51 = vpack.c.bf16 %v6354_v14, %v6348_v39  ;;  %v4888_v41 = vpop.eup %4887  ;;  %v1744_v31 = vmul.f32 0.7978846, %v1712_v7  ;;  %v1585_v54 = vmul.f32 0.5, %v6351_v50 }
 0x454   : > { %v1807_v63 = vadd.f32 1.0, %v4888_v41  ;;  %v4890_v34 = vpop.eup %4889 }
 0x455   : > { %2241 = vperm.xlu2 %4760, %v4886_v2   ;;  %v1649_v24 = vmul.f32 %v1617_v59, %v6351_v50  ;;  %4897 = vtanh.f32 %v1744_v31  ;;  %v4892_v23 = vpop.eup %4891  ;;  %1549 = vmatmul.bf16.gmra.mxu0 %v1405_v51  ;;  %v2171_v15 = vadd.f32 1.0, %v4890_v34 }
 0x456   : > { %v1839_v48 = vmul.f32 %v1807_v63, %v1583_v47  ;;  %4899 = vpow2.f32 %v2117_v22  ;;  %v4894_v40 = vpop.eup %4893 }
 0x457   : > { %v1681_v62 = vmul.f32 %v1649_v24, %v6351_v50  ;;  %4901 = vrcp.f32 %v2174_v55  ;;  %v4896_v45 = vpop.eup %4895  ;;  %v2176_v20 = vadd.f32 1.0, %v4894_v40 }
 0x458   : > { %v1537_v25 = vpop.f32.mrf.mxu0  ;;  %2266 = vperm.xlu0 %4759, %v4892_v23  }
 0x459   : > { %v1538_v33 = vadd.f32 %v6181_v60, %v1537_v25  ;;  %v1713_v36 = vadd.f32 %v1681_v62, %v6351_v50  ;;  %4411 = vmatmul.msk.f32.gmra.mxu1 %vm1859_vm5, %v1839_v48  ;;  %v897_v50 = vpop.xlane.xlu0 %896  ;;  %v4486_v25 = vld [vmem:[#allocation6 + $0x78] sm:$0xf0] }
 0x45a   : > { %v932_v40 = vmul.f32 %v897_v50, %v5582_v37  ;;  %v2477_v50 = vld [vmem:[%s7648_s3 + $0x58] sm:$0xff] }
 0x45b   : > { %v1618_v35 = vmul.f32 0.044715, %v1538_v33  ;;  %v1745_v10 = vmul.f32 0.7978846, %v1713_v36  ;;  %v4898_v4 = vpop.eup %4897  ;;  %v1586_v23 = vmul.f32 0.5, %v1538_v33  ;;  %v4489_v36 = vor.u32 %v4662_v26, %v4486_v25 }
 0x45c   : > { %v1808_v19 = vadd.f32 1.0, %v4898_v4  ;;  %v4900_v21 = vpop.eup %4899  ;;  %v4658_v4 = vld [vmem:[#allocation6 + $0x54] sm:$0xf] }
 0x45d   : > { %2246 = vperm.xlu2 %4760, %v4896_v45   ;;  %4903 = vtanh.f32 %v1745_v10  ;;  %v1650_v43 = vmul.f32 %v1618_v35, %v1538_v33  ;;  %v4902_v12 = vpop.eup %4901  ;;  %v2173_v51 = vadd.f32 1.0, %v4900_v21  ;;  %2809 = vmatpush.bf16.msra.mxu2 %v4489_v36  ;;  %v4660_v45 = vld [vmem:[#allocation6 + $0x64] sm:$0xf]  ;;  %v964_v35 = vadd.f32 1e-06, %v932_v40 }
 0x45e   : > { %4905 = vrcp.f32 %v2171_v15  ;;  %v1840_v7 = vmul.f32 %v1808_v19, %v1584_v9  ;;  %v4478_v15 = vld [vmem:[#allocation6 + $0x68] sm:$0xf0]  ;;  %v2478_v21 = vld [vmem:[%s7648_s3 + $0x60] sm:$0xff] }
 0x45f   : > { %v1682_v2 = vmul.f32 %v1650_v43, %v1538_v33  ;;  %4907 = vpow2.f32 %v2121_v46  ;;  %v4481_v10 = vor.u32 %v4660_v45, %v4478_v15  ;;  %v4462_v9 = vld [vmem:[#allocation6 + $0x48] sm:$0xf0]  ;;  %2486 = vmatpush.msrb.mxu1 %v2478_v21  ;;  %vm1254_vm10 = vweird.f32 %v964_v35  ;;  %v6388_v45 = vld [vmem:[#allocation2] ss:$0 sm:$0xff] }
 0x460   : > { %2276 = vperm.xlu0 %4759, %v4902_v12   ;;  %4909 = vrcp.f32 %v2176_v20  ;;  %v4656_v20 = vld [vmem:[#allocation6 + $0x44] sm:$0xf]  ;;  %v4654_v12 = vld [vmem:[#allocation6 + $0x34] sm:$0xf] }
 0x461   : > { %v1714_v59 = vadd.f32 %v1682_v2, %v1538_v33  ;;  %4412 = vmatmul.msk.f32.gmra.mxu1 %vm1859_vm5, %v1840_v7  ;;  %2810 = vmatpush.bf16.msra.mxu2 %v4481_v10  ;;  %v4470_v33 = vld [vmem:[#allocation6 + $0x58] sm:$0xf0]  ;;  %v4465_v19 = vor.u32 %v4656_v20, %v4462_v9  ;;  %v2476_v10 = vld [vmem:[%s7648_s3 + $0x50] sm:$0xff] }
 0x462   : > { %v4473_v46 = vor.u32 %v4658_v4, %v4470_v33  ;;  %v4454_v7 = vld [vmem:[#allocation6 + $0x38] sm:$0xf0]  ;;  %2487 = vmatpush.msrb.mxu1 %v2477_v50 }
 0x463   : > { %v4904_v41 = vpop.eup %4903  ;;  %v1746_v22 = vmul.f32 0.7978846, %v1714_v59  ;;  %v4457_v2 = vor.u32 %v4654_v12, %v4454_v7 }
 0x464   : > { %v4906_v3 = vpop.eup %4905  ;;  %v1809_v31 = vadd.f32 1.0, %v4904_v41  ;;  %v4446_v41 = vld [vmem:[#allocation6 + $0x28] sm:$0xf0]  ;;  %2488 = vmatpush.msrb.mxu1 %v2476_v10 }
 0x465   : > { %2261 = vperm.xlu2 %4760, %v4906_v3   ;;  %4911 = vtanh.f32 %v1746_v22  ;;  %v4908_v55 = vpop.eup %4907  ;;  %2811 = vmatpush.bf16.msra.mxu2 %v4473_v46 }
 0x466   : > { %4913 = vrcp.f32 %v2173_v51  ;;  %v4910_v47 = vpop.eup %4909  ;;  %v1841_v63 = vmul.f32 %v1809_v31, %v1585_v54  ;;  %v2175_v24 = vadd.f32 1.0, %v4908_v55  ;;  %v4652_v51 = vld [vmem:[#allocation6 + $0x24] sm:$0xf]  ;;  %v4650_v55 = vld [vmem:[#allocation6 + $0x14] sm:$0xf] }
 0x467   : > { %v4449_v22 = vor.u32 %v4652_v51, %v4446_v41  ;;  %v6405_v41 = vld [vmem:[%s7705_s1] ss:$0 sm:$0xff] }
 0x468   : > { %2286 = vperm.xlu0 %4759, %v4910_v47   ;;  %4915 = vrcp.f32 %v2175_v24  ;;  %v4438_v47 = vld [vmem:[#allocation6 + $0x18] sm:$0xf0] }
 0x469   : > { %4413 = vmatmul.msk.f32.gmra.mxu1 %vm1859_vm5, %v1841_v63  ;;  %4917 = vrsqrt.f32 %v964_v35  ;;  %2812 = vmatpush.bf16.msra.mxu2 %v4465_v19  ;;  %v4441_v24 = vor.u32 %v4650_v55, %v4438_v47 }
 0x46b   : > { %v4912_v28 = vpop.eup %4911 }
 0x46c   : > { %v4914_v1 = vpop.eup %4913  ;;  %v1810_v34 = vadd.f32 1.0, %v4912_v28 }
 0x46d   : > { %2271 = vperm.xlu2 %4760, %v4914_v1   ;;  %2813 = vmatpush.bf16.msra.mxu2 %v4457_v2  ;;  %v4648_v1 = vld [vmem:[#allocation6 + $0x4] sm:$0xf] }
 0x46e   : > { %v1842_v48 = vmul.f32 %v1810_v34, %v1586_v23  ;;  %v4916_v62 = vpop.eup %4915  ;;  %v4430_v34 = vld [vmem:[#allocation6 + $0x8] sm:$0xf0] }
 0x46f   : > { %v4918_v43 = vpop.eup %4917  ;;  %v4433_v23 = vor.u32 %v4648_v1, %v4430_v34 }
 0x470   : > { %v1249_v59 = vmul.f32 %v4918_v43, %v964_v35  ;;  %vm1255_vm9 = vweird.f32 %v4918_v43 }
 0x471   : > { %4414 = vmatmul.msk.f32.gmra.mxu1 %vm1859_vm5, %v1842_v48  ;;  %2814 = vmatpush.bf16.msra.mxu2 %v4449_v22  ;;  %vm1256_vm11 = vmor %vm1254_vm10, %vm1255_vm9 }
 0x472   : > { %v1250_v3 = vmul.f32 %v4918_v43, %v1249_v59 }
 0x474   : > { %v1251_v28 = vmul.f32 0.5, %v1250_v3 }
 0x475   : > { %2281 = vperm.xlu2 %4760, %v4916_v62   ;;  %2815 = vmatpush.bf16.msra.mxu2 %v4441_v24 }
 0x476   : > { %v1252_v48 = vsub.f32 1.5, %v1251_v28  ;;  %v6418_v28 = vld [vmem:[%s7647_s2] ss:$0 sm:$0xff] }
 0x478   : > { %v1253_v26 = vmul.f32 %v4918_v43, %v1252_v48 }
 0x479   : > { %2816 = vmatpush.bf16.msra.mxu2 %v4433_v23 }
 0x47a   : > { %v1257_v4 = vsel %vm1256_vm11, %v4918_v43, %v1253_v26 }
 0x47b   : > { %v1316_v12 = vmul.f32 %v1257_v4, %v6107_v30 }
 0x497   : > { %v899_v31 = vpop.xlane.xlu2 %898 }
 0x498   : > { %v933_v54 = vmul.f32 %v899_v31, %v5582_v37 }
 0x49a   : > { %v965_v63 = vadd.f32 1e-06, %v933_v54 }
 0x49c   : > { %4919 = vrsqrt.f32 %v965_v63  ;;  %vm1264_vm13 = vweird.f32 %v965_v63 }
 0x4a2   : > { %v4920_v62 = vpop.eup %4919 }
 0x4a3   : > { %v1259_v25 = vmul.f32 %v4920_v62, %v965_v63  ;;  %vm1265_vm12 = vweird.f32 %v4920_v62 }
 0x4a4   : > { %v2009_v36 = vpop.f32.mrf.mxu1  ;;  %vm1266_vm14 = vmor %vm1264_vm13, %vm1265_vm12 }
 0x4a5   : > { %v1260_v40 = vmul.f32 %v4920_v62, %v1259_v25  ;;  %v2010_v15 = vadd.f32 %v6388_v45, %v2009_v36 }
 0x4a7   : > { %v1261_v33 = vmul.f32 0.5, %v1260_v40  ;;  %v901_v46 = vpop.xlane.xlu0 %900  ;;  %v2081_v20 = vsub.f32 0.0, %v2010_v15 }
 0x4a8   : > { %v934_v9 = vmul.f32 %v901_v46, %v5582_v37  ;;  %v903_v19 = vpop.xlane.xlu2 %902 }
 0x4a9   : > { %v1262_v35 = vsub.f32 1.5, %v1261_v33  ;;  %v935_v21 = vmul.f32 %v903_v19, %v5582_v37  ;;  %v2125_v7 = vmul.f32 1.442695, %v2081_v20  ;;  %v1352_v37 = vmul.f32 %v6405_v41, %v1316_v12 }
 0x4aa   : > { %v6397_v2 = vadd.f32 1e-06, %v934_v9  ;;  %v2475_v9 = vld [vmem:[%s7648_s3 + $0x48] sm:$0xff] }
 0x4ab   : > { %v1263_v59 = vmul.f32 %v4920_v62, %v1262_v35  ;;  %v6399_v51 = vadd.f32 1e-06, %v935_v21  ;;  %4921 = vpow2.f32 %v2125_v7  ;;  %2489 = vmatpush.msrb.mxu1 %v2475_v9 }
 0x4ac   : > { %4923 = vrsqrt.f32 %v6397_v2  ;;  %v2012_v22 = vpop.f32.mrf.mxu1  ;;  %vm1274_vm15 = vweird.f32 %v6397_v2 }
 0x4ad   : > { %v1267_v43 = vsel %vm1266_vm14, %v4920_v62, %v1263_v59  ;;  %4925 = vrsqrt.f32 %v6399_v51  ;;  %v2013_v3 = vadd.f32 %v6388_v45, %v2012_v22  ;;  %vm1284_vm2 = vweird.f32 %v6399_v51 }
 0x4ae   : > { %v1317_v30 = vmul.f32 %v1267_v43, %v6145_v5  ;;  %v6421_v5 = vadd.f32 %v6418_v28, %v1352_v37 }
 0x4af   : > { %v2082_v54 = vsub.f32 0.0, %v2013_v3 }
 0x4b0   : > { %v1353_v31 = vmul.f32 %v6405_v41, %v1317_v30  ;;  %v2237_v63 = vpop.permute.xlu2 %2236 }
 0x4b1   : > { %v1540_v55 = vpop.f32.mrf.mxu0  ;;  %v4922_v47 = vpop.eup %4921  ;;  %v2127_v48 = vmul.f32 1.442695, %v2082_v54  ;;  %v2390_v35 = vmul.f32 %v2237_v63, %v5712_v38 }
 0x4b2   : > { %v6413_v24 = vadd.f32 %v6181_v60, %v1540_v55  ;;  %v6424_v1 = vadd.f32 %v6418_v28, %v1353_v31  ;;  %v4924_v34 = vpop.eup %4923  ;;  %v2177_v23 = vadd.f32 1.0, %v4922_v47 }
 0x4b3   : > { %v4926_v62 = vpop.eup %4925  ;;  %v1269_v50 = vmul.f32 %v4924_v34, %v6397_v2  ;;  %vm1275_vm0 = vweird.f32 %v4924_v34 }
 0x4b4   : > { %v1619_v26 = vmul.f32 0.044715, %v6413_v24  ;;  %v1406_v25 = vpack.c.bf16 %v6424_v1, %v6421_v5  ;;  %4927 = vrcp.f32 %v2177_v23  ;;  %v1279_v40 = vmul.f32 %v4926_v62, %v6399_v51  ;;  %v2015_v15 = vpop.f32.mrf.mxu1  ;;  %vm1276_vm3 = vmor %vm1274_vm15, %vm1275_vm0 }
 0x4b5   : > { %v1270_v36 = vmul.f32 %v4924_v34, %v1269_v50  ;;  %4929 = vpow2.f32 %v2127_v48  ;;  %v2016_v33 = vadd.f32 %v6388_v45, %v2015_v15  ;;  %vm1285_vm1 = vweird.f32 %v4926_v62 }
 0x4b6   : > { %1554 = vmatmul.bf16.gmra.mxu0 %v1406_v25  ;;  %v1651_v10 = vmul.f32 %v1619_v26, %v6413_v24  ;;  %v1280_v4 = vmul.f32 %v4926_v62, %v1279_v40  ;;  %vm1286_vm4 = vmor %vm1284_vm2, %vm1285_vm1 }
 0x4b7   : > { %v1271_v46 = vmul.f32 0.5, %v1270_v36  ;;  %v2083_v21 = vsub.f32 0.0, %v2016_v33 }
 0x4b8   : > { %v1683_v20 = vmul.f32 %v1651_v10, %v6413_v24  ;;  %v1281_v19 = vmul.f32 0.5, %v1280_v4  ;;  %v2242_v47 = vpop.permute.xlu2 %2241 }
 0x4b9   : > { %v1542_v12 = vpop.f32.mrf.mxu0  ;;  %v1272_v7 = vsub.f32 1.5, %v1271_v46  ;;  %v2129_v3 = vmul.f32 1.442695, %v2083_v21 }
 0x4ba   : > { %v6440_v59 = vadd.f32 %v6181_v60, %v1542_v12  ;;  %v2232_v43 = vpop.permute.xlu0 %2231  ;;  %v1715_v37 = vadd.f32 %v1683_v20, %v6413_v24  ;;  %v4928_v30 = vpop.eup %4927  ;;  %v1282_v22 = vsub.f32 1.5, %v1281_v19 }
 0x4bb   : > { %v2389_v31 = vmul.f32 %v2232_v43, %v5709_v44  ;;  %v4930_v54 = vpop.eup %4929  ;;  %v1273_v55 = vmul.f32 %v4924_v34, %v1272_v7  ;;  %2291 = vperm.xlu1 %4761, %v4928_v30   ;;  %4931 = vpow2.f32 %v2129_v3 }
 0x4bc   : > { %v1620_v63 = vmul.f32 0.044715, %v6440_v59  ;;  %v1747_v23 = vmul.f32 0.7978846, %v1715_v37  ;;  %v1283_v48 = vmul.f32 %v4926_v62, %v1282_v22  ;;  %v2178_v50 = vadd.f32 1.0, %v4930_v54  ;;  %v2474_v54 = vld [vmem:[%s7648_s3 + $0x40] sm:$0xff] }
 0x4bd   : > { %v6449_v26 = vpack.c.bf16 %v2390_v35, %v2389_v31  ;;  %v1277_v25 = vsel %vm1276_vm3, %v4924_v34, %v1273_v55  ;;  %2490 = vmatpush.msrb.mxu1 %v2474_v54 }
 0x4be   : > { %4933 = vtanh.f32 %v1747_v23  ;;  %v1652_v51 = vmul.f32 %v1620_v63, %v6440_v59  ;;  %v1318_v40 = vmul.f32 %v1277_v25, %v6205_v57  ;;  %v1287_v36 = vsel %vm1286_vm4, %v4926_v62, %v1283_v48  ;;  %v2018_v15 = vpop.f32.mrf.mxu1 }
 0x4bf   : > { %4935 = vrcp.f32 %v2178_v50  ;;  %2817 = vmatmul.bf16.vlgmr.msra.gmra.mxu2 %v6449_v26  ;;  %v1319_v2 = vmul.f32 %v1287_v36, %v6219_v58  ;;  %v2019_v34 = vadd.f32 %v6388_v45, %v2018_v15  ;;  %v2391_v23 = vmul.f32 %v2242_v47, %v5727_v13 }
 0x4c0   : > { %v1684_v10 = vmul.f32 %v1652_v51, %v6440_v59  ;;  %v1354_v4 = vmul.f32 %v6405_v41, %v1318_v40  ;;  %v2247_v30 = vpop.permute.xlu2 %2246 }
 0x4c1   : > { %v1355_v33 = vmul.f32 %v6405_v41, %v1319_v2  ;;  %v4932_v20 = vpop.eup %4931  ;;  %v2084_v9 = vsub.f32 0.0, %v2019_v34  ;;  %v1587_v41 = vmul.f32 0.5, %v6413_v24  ;;  %v2392_v24 = vmul.f32 %v2247_v30, %v5730_v52 }
 0x4c2   : > { %v1716_v46 = vadd.f32 %v1684_v10, %v6440_v59  ;;  %v6462_v57 = vadd.f32 %v6418_v28, %v1354_v4  ;;  %v2179_v19 = vadd.f32 1.0, %v4932_v20  ;;  %v1545_v35 = vpop.f32.mrf.mxu0 }
 0x4c3   : > { %v6465_v58 = vadd.f32 %v6418_v28, %v1355_v33  ;;  %v2131_v7 = vmul.f32 1.442695, %v2084_v9  ;;  %v6468_v43 = vadd.f32 %v6181_v60, %v1545_v35  ;;  %v6486_v15 = vpack.c.bf16 %v2392_v24, %v2391_v23 }
 0x4c4   : > { %v4934_v62 = vpop.eup %4933  ;;  %v1748_v21 = vmul.f32 0.7978846, %v1716_v46  ;;  %4937 = vrcp.f32 %v2179_v19  ;;  %v1588_v33 = vmul.f32 0.5, %v6440_v59 }
 0x4c5   : > { %7715 = vst [vmem:[#allocation26_spill] sm:$0xff] %v6465_v58  ;;  %v4936_v12 = vpop.eup %4935  ;;  %v1811_v37 = vadd.f32 1.0, %v4934_v62  ;;  %v1407_v22 = vpack.c.bf16 %v6465_v58, %v6462_v57  ;;  %4939 = vpow2.f32 %v2131_v7  ;;  %v1621_v3 = vmul.f32 0.044715, %v6468_v43 }
 0x4c6   : > { %2296 = vperm.xlu2 %4760, %v4936_v12   ;;  %v2021_v31 = vpop.f32.mrf.mxu1  ;;  %4941 = vtanh.f32 %v1748_v21 }
 0x4c7   : > { %v1843_v28 = vmul.f32 %v1811_v37, %v1587_v41  ;;  %1559 = vmatmul.bf16.gmra.mxu0 %v1407_v22  ;;  %v1653_v55 = vmul.f32 %v1621_v3, %v6468_v43  ;;  %v2022_v63 = vadd.f32 %v6388_v45, %v2021_v31  ;;  %v2252_v41 = vpop.permute.xlu0 %2251 }
 0x4c9   : > { %4415 = vmatmul.msk.f32.gmra.mxu1 %vm1859_vm5, %v1843_v28  ;;  %v1685_v48 = vmul.f32 %v1653_v55, %v6468_v43  ;;  %v2085_v50 = vsub.f32 0.0, %v2022_v63  ;;  %v2257_v55 = vpop.permute.xlu1 %2256  ;;  %v2393_v63 = vmul.f32 %v2252_v41, %v5744_v56  ;;  %v2472_v41 = vld [vmem:[%s7648_s3 + $0x30] sm:$0xff] }
 0x4ca   : > { %v4938_v25 = vpop.eup %4937  ;;  %v1547_v51 = vpop.f32.mrf.mxu0 }
 0x4cb   : > { %v4940_v40 = vpop.eup %4939  ;;  %v2133_v36 = vmul.f32 1.442695, %v2085_v50  ;;  %v6484_v2 = vadd.f32 %v6181_v60, %v1547_v51  ;;  %2301 = vperm.xlu0 %4759, %v4938_v25   ;;  %v1717_v10 = vadd.f32 %v1685_v48, %v6468_v43  ;;  %v1589_v25 = vmul.f32 0.5, %v6468_v43 }
 0x4cc   : > { %v4942_v4 = vpop.eup %4941  ;;  %v2180_v34 = vadd.f32 1.0, %v4940_v40  ;;  %v2394_v40 = vmul.f32 %v2257_v55, %v5747_v49 }
 0x4cd   : > { %4943 = vpow2.f32 %v2133_v36  ;;  %v1622_v47 = vmul.f32 0.044715, %v6484_v2  ;;  %v1812_v46 = vadd.f32 1.0, %v4942_v4  ;;  %v1749_v20 = vmul.f32 0.7978846, %v1717_v10 }
 0x4ce   : > { %4945 = vrcp.f32 %v2180_v34  ;;  %v2024_v9 = vpop.f32.mrf.mxu1  ;;  %v6517_v43 = vpack.c.bf16 %v2394_v40, %v2393_v63 }
 0x4cf   : > { %2822 = vmatmul.bf16.gmra.mxu2 %v6486_v15  ;;  %v1654_v62 = vmul.f32 %v1622_v47, %v6484_v2  ;;  %v2025_v19 = vadd.f32 %v6388_v45, %v2024_v9  ;;  %v1844_v35 = vmul.f32 %v1812_v46, %v1588_v33  ;;  %4947 = vtanh.f32 %v1749_v20  ;;  %v6513_v46 = vld [vmem:[%s7653_s8] ss:$0 sm:$0xff] }
 0x4d1   : > { %v2086_v21 = vsub.f32 0.0, %v2025_v19  ;;  %4416 = vmatmul.msk.f32.gmra.mxu1 %vm1859_vm5, %v1844_v35  ;;  %v1686_v59 = vmul.f32 %v1654_v62, %v6484_v2 }
 0x4d2   : > { %v1550_v12 = vpop.f32.mrf.mxu0 }
 0x4d3   : > { %v4944_v7 = vpop.eup %4943  ;;  %v2135_v37 = vmul.f32 1.442695, %v2086_v21  ;;  %v6497_v30 = vadd.f32 %v6181_v60, %v1550_v12  ;;  %v1718_v22 = vadd.f32 %v1686_v59, %v6484_v2  ;;  %v2473_v60 = vld [vmem:[%s7648_s3 + $0x38] sm:$0xff] }
 0x4d4   : > { %v4946_v3 = vpop.eup %4945  ;;  %v2181_v28 = vadd.f32 1.0, %v4944_v7  ;;  %2491 = vmatpush.msrb.mxu1 %v2473_v60  ;;  %v1590_v7 = vmul.f32 0.5, %v6484_v2  ;;  %v2267_v2 = vpop.permute.xlu0 %2266 }
 0x4d5   : > { %4949 = vpow2.f32 %v2135_v37  ;;  %v1623_v31 = vmul.f32 0.044715, %v6497_v30  ;;  %2306 = vperm.xlu1 %4761, %v4946_v3   ;;  %v1750_v54 = vmul.f32 0.7978846, %v1718_v22  ;;  %v4948_v24 = vpop.eup %4947 }
 0x4d6   : > { %4951 = vrcp.f32 %v2181_v28  ;;  %v2027_v23 = vpop.f32.mrf.mxu1  ;;  %v1813_v51 = vadd.f32 1.0, %v4948_v24  ;;  %2492 = vmatpush.msrb.mxu1 %v2472_v41 }
 0x4d7   : > { %v1655_v48 = vmul.f32 %v1623_v31, %v6497_v30  ;;  %v2028_v50 = vadd.f32 %v6388_v45, %v2027_v23  ;;  %4953 = vtanh.f32 %v1750_v54 }
 0x4d8   : > { %v1845_v4 = vmul.f32 %v1813_v51, %v1589_v25  ;;  %v2471_v25 = vld [vmem:[%s7648_s3 + $0x28] sm:$0xff]  ;;  %v2262_v51 = vpop.permute.xlu2 %2261 }
 0x4d9   : > { %v1687_v36 = vmul.f32 %v1655_v48, %v6497_v30  ;;  %v2087_v10 = vsub.f32 0.0, %v2028_v50  ;;  %2493 = vmatpush.msrb.mxu1 %v2471_v25 }
 0x4da   : > { %v1552_v34 = vpop.f32.mrf.mxu0  ;;  %4417 = vmatmul.msk.f32.gmra.mxu1 %vm1859_vm5, %v1845_v4  ;;  %v2396_v4 = vmul.f32 %v2267_v2, %v5766_v6 }
 0x4db   : > { %v4950_v33 = vpop.eup %4949  ;;  %v2137_v47 = vmul.f32 1.442695, %v2087_v10  ;;  %v1553_v20 = vadd.f32 %v6513_v46, %v1552_v34  ;;  %v1719_v9 = vadd.f32 %v1687_v36, %v6497_v30  ;;  %v1591_v36 = vmul.f32 0.5, %v6497_v30 }
 0x4dc   : > { %v4952_v62 = vpop.eup %4951  ;;  %v2182_v19 = vadd.f32 1.0, %v4950_v33 }
 0x4dd   : > { %4955 = vpow2.f32 %v2137_v47  ;;  %v1624_v35 = vmul.f32 0.044715, %v1553_v20  ;;  %2311 = vperm.xlu2 %4760, %v4952_v62   ;;  %v1751_v21 = vmul.f32 0.7978846, %v1719_v9  ;;  %v4954_v59 = vpop.eup %4953  ;;  %v2395_v47 = vmul.f32 %v2262_v51, %v5763_v42  ;;  %v2469_v51 = vld [vmem:[%s7648_s3 + $0x18] sm:$0xff] }
 0x4de   : > { %4957 = vrcp.f32 %v2182_v19  ;;  %v2030_v12 = vpop.f32.mrf.mxu1  ;;  %v1814_v3 = vadd.f32 1.0, %v4954_v59  ;;  %v1592_v41 = vmul.f32 0.5, %v1553_v20 }
 0x4df   : > { %2827 = vmatmul.bf16.gmra.mxu2 %v6517_v43  ;;  %v1656_v37 = vmul.f32 %v1624_v35, %v1553_v20  ;;  %v2031_v22 = vadd.f32 %v6388_v45, %v2030_v12  ;;  %4959 = vtanh.f32 %v1751_v21  ;;  %v6535_v35 = vpack.c.bf16 %v2396_v4, %v2395_v47  ;;  %v2470_v12 = vld [vmem:[%s7648_s3 + $0x20] sm:$0xff] }
 0x4e0   : > { %v1846_v31 = vmul.f32 %v1814_v3, %v1590_v7  ;;  %2494 = vmatpush.msrb.mxu1 %v2470_v12 }
 0x4e1   : > { %v2088_v28 = vsub.f32 0.0, %v2031_v22  ;;  %v1688_v54 = vmul.f32 %v1656_v37, %v1553_v20 }
 0x4e2   : > { %4418 = vmatmul.msk.f32.gmra.mxu1 %vm1859_vm5, %v1846_v31 }
 0x4e3   : > { %v4956_v24 = vpop.eup %4955  ;;  %v2139_v55 = vmul.f32 1.442695, %v2088_v28  ;;  %v1720_v63 = vadd.f32 %v1688_v54, %v1553_v20  ;;  %2495 = vmatpush.msrb.mxu1 %v2469_v51 }
 0x4e4   : > { %v4958_v23 = vpop.eup %4957  ;;  %v2183_v60 = vadd.f32 1.0, %v4956_v24 }
 0x4e5   : > { %v4960_v48 = vpop.eup %4959  ;;  %4961 = vpow2.f32 %v2139_v55  ;;  %2316 = vperm.xlu0 %4759, %v4958_v23   ;;  %v1752_v50 = vmul.f32 0.7978846, %v1720_v63  ;;  %v2277_v55 = vpop.permute.xlu0 %2276 }
 0x4e6   : > { %4963 = vrcp.f32 %v2183_v60  ;;  %v2033_v40 = vpop.f32.mrf.mxu1  ;;  %v1815_v10 = vadd.f32 1.0, %v4960_v48  ;;  %v2272_v23 = vpop.permute.xlu2 %2271  ;;  %v2398_v2 = vmul.f32 %v2277_v55, %v5780_v18 }
 0x4e7   : > { %v2034_v34 = vadd.f32 %v6388_v45, %v2033_v40  ;;  %4965 = vtanh.f32 %v1752_v50  ;;  %v2397_v20 = vmul.f32 %v2272_v23, %v5777_v17  ;;  %v2421_v40 = vadd.f32 %v5712_v38, %v5709_v44 }
 0x4e8   : > { %v1847_v33 = vmul.f32 %v1815_v10, %v1591_v36 }
 0x4e9   : > { %v2089_v9 = vsub.f32 0.0, %v2034_v34  ;;  %v6545_v48 = vpack.c.bf16 %v2398_v2, %v2397_v20  ;;  %v2422_v4 = vadd.f32 %v2421_v40, %v5727_v13  ;;  %v7718_v40 = vld [vmem:[#allocation21_spill] sm:$0xff] }
 0x4ea   : > { %4419 = vmatmul.msk.f32.gmra.mxu1 %vm1859_vm5, %v1847_v33 }
 0x4eb   : > { %v4962_v62 = vpop.eup %4961  ;;  %v2141_v19 = vmul.f32 1.442695, %v2089_v9  ;;  %v2423_v33 = vadd.f32 %v2422_v4, %v5730_v52 }
 0x4ec   : > { %v4964_v21 = vpop.eup %4963  ;;  %v2184_v59 = vadd.f32 1.0, %v4962_v62 }
 0x4ed   : > { %v4966_v30 = vpop.eup %4965  ;;  %4967 = vpow2.f32 %v2141_v19  ;;  %2321 = vperm.xlu1 %4761, %v4964_v21   ;;  %v2287_v10 = vpop.permute.xlu0 %2286  ;;  %v2424_v9 = vadd.f32 %v2423_v33, %v5744_v56  ;;  %v7719_v33 = vld [vmem:[#allocation22_spill] sm:$0xff] }
 0x4ee   : > { %4969 = vrcp.f32 %v2184_v59  ;;  %v2036_v7 = vpop.f32.mrf.mxu1  ;;  %v1816_v37 = vadd.f32 1.0, %v4966_v30  ;;  %v2282_v34 = vpop.permute.xlu2 %2281  ;;  %v2400_v47 = vmul.f32 %v2287_v10, %v5793_v32 }
 0x4ef   : > { %2832 = vmatmul.bf16.gmra.mxu2 %v6535_v35  ;;  %v2037_v22 = vadd.f32 %v6388_v45, %v2036_v7  ;;  %v2399_v62 = vmul.f32 %v2282_v34, %v5790_v29  ;;  %v2425_v19 = vadd.f32 %v2424_v9, %v5747_v49 }
 0x4f0   : > { %v1848_v3 = vmul.f32 %v1816_v37, %v1592_v41 }
 0x4f1   : > { %v2090_v28 = vsub.f32 0.0, %v2037_v22  ;;  %v6559_v21 = vpack.c.bf16 %v2400_v47, %v2399_v62  ;;  %v2426_v59 = vadd.f32 %v2425_v19, %v5763_v42  ;;  %v2467_v62 = vld [vmem:[%s7648_s3 + $0x8] sm:$0xff] }
 0x4f2   : > { %4420 = vmatmul.msk.f32.gmra.mxu1 %vm1859_vm5, %v1848_v3  ;;  %v7720_v19 = vld [vmem:[#allocation23_spill] sm:$0xff] }
 0x4f3   : > { %v4968_v31 = vpop.eup %4967  ;;  %v2143_v54 = vmul.f32 1.442695, %v2090_v28  ;;  %v2427_v30 = vadd.f32 %v2426_v59, %v5766_v6  ;;  %v2468_v28 = vld [vmem:[%s7648_s3 + $0x10] sm:$0xff] }
 0x4f4   : > { %v4970_v24 = vpop.eup %4969  ;;  %v2185_v63 = vadd.f32 1.0, %v4968_v31  ;;  %2496 = vmatpush.msrb.mxu1 %v2468_v28 }
 0x4f5   : > { %4971 = vpow2.f32 %v2143_v54  ;;  %2326 = vperm.xlu2 %4760, %v4970_v24   ;;  %v2428_v12 = vadd.f32 %v2427_v30, %v5777_v17 }
 0x4f6   : > { %4973 = vrcp.f32 %v2185_v63  ;;  %v7716_v63 = vld [vmem:[#allocation19_spill] sm:$0xff]  ;;  %2497 = vmatpush.msrb.mxu1 %v2467_v62 }
 0x4f7   : > { %v2429_v7 = vadd.f32 %v2428_v12, %v5780_v18  ;;  %v7721_v12 = vld [vmem:[#allocation24_spill] sm:$0xff] }
 0x4f9   : > { %v2430_v41 = vadd.f32 %v2429_v7, %v5790_v29 }
 0x4fb   : > { %v4972_v60 = vpop.eup %4971  ;;  %v2431_v37 = vadd.f32 %v2430_v41, %v5793_v32 }
 0x4fc   : > { %v4974_v50 = vpop.eup %4973  ;;  %v2186_v25 = vadd.f32 1.0, %v4972_v60  ;;  %v7717_v60 = vld [vmem:[#allocation20_spill] sm:$0xff] }
 0x4fd   : > { %2331 = vperm.xlu0 %4759, %v4974_v50   ;;  %v2432_v22 = vadd.f32 %v2431_v37, %v5969_v11 }
 0x4fe   : > { %4975 = vrcp.f32 %v2186_v25 }
 0x4ff   : > { %2837 = vmatmul.bf16.gmra.mxu2 %v6545_v48  ;;  %v2433_v3 = vadd.f32 %v2432_v22, %v5964_v53 }
 0x501   : > { %v2434_v31 = vadd.f32 %v2433_v3, %v6009_v0 }
 0x503   : > { %v2435_v54 = vadd.f32 %v2434_v31, %v6015_v61 }
 0x504   : > { %v4976_v36 = vpop.eup %4975 }
 0x505   : > { %2336 = vperm.xlu1 %4761, %v4976_v36   ;;  %v2436_v24 = vadd.f32 %v2435_v54, %v6057_v27 }
 0x507   : > { %v2437_v55 = vadd.f32 %v2436_v24, %v6051_v16  ;;  %v7722_v24 = vld [vmem:[#allocation25_spill] sm:$0xff] }
 0x509   : > { %v2438_v23 = vadd.f32 %v2437_v55, %v7716_v63 }
 0x50b   : > { %v2439_v50 = vadd.f32 %v2438_v23, %v7717_v60 }
 0x50d   : > { %v2440_v36 = vadd.f32 %v2439_v50, %v7718_v40 }
 0x50f   : > { %2842 = vmatmul.bf16.gmra.mxu2 %v6559_v21  ;;  %v2441_v47 = vadd.f32 %v2440_v36, %v7719_v33 }
 0x511   : > { %v2442_v59 = vadd.f32 %v2441_v47, %v7720_v19 }
 0x513   : > { %v2443_v7 = vadd.f32 %v2442_v59, %v7721_v12 }
 0x515   : > { %v2444_v37 = vadd.f32 %v2443_v7, %v6299_v8 }
 0x517   : > { %v2445_v55 = vadd.f32 %v2444_v37, %v7722_v24 }
 0x520   : > { %v2297_v2 = vpop.permute.xlu2 %2296 }
 0x521   : > { %v2402_v25 = vmul.f32 %v2297_v2, %v5964_v53  ;;  %v2446_v2 = vadd.f32 %v2445_v55, %v6348_v39 }
 0x52d   : > { %v2292_v20 = vpop.permute.xlu1 %2291 }
 0x52e   : > { %v2401_v51 = vmul.f32 %v2292_v20, %v5969_v11 }
 0x530   : > { %v6582_v10 = vpack.c.bf16 %v2402_v25, %v2401_v51  ;;  %v2447_v25 = vadd.f32 %v2446_v2, %v6354_v14 }
 0x532   : > { %2847 = vmatmul.bf16.gmra.mxu2 %v6582_v10  ;;  %v2448_v62 = vadd.f32 %v2447_v25, %v6421_v5 }
 0x533   : > { %v1555_v4 = vpop.f32.mrf.mxu0 }
 0x534   : > { %v1556_v34 = vadd.f32 %v6513_v46, %v1555_v4 }
 0x536   : > { %v1625_v9 = vmul.f32 0.044715, %v1556_v34  ;;  %v1593_v7 = vmul.f32 0.5, %v1556_v34 }
 0x538   : > { %v1657_v30 = vmul.f32 %v1625_v9, %v1556_v34 }
 0x53a   : > { %v1689_v41 = vmul.f32 %v1657_v30, %v1556_v34 }
 0x53b   : > { %v1557_v22 = vpop.f32.mrf.mxu0 }
 0x53c   : > { %v1558_v3 = vadd.f32 %v6513_v46, %v1557_v22  ;;  %v1721_v28 = vadd.f32 %v1689_v41, %v1556_v34 }
 0x53d   : > { %v2302_v59 = vpop.permute.xlu0 %2301 }
 0x53e   : > { %v1626_v31 = vmul.f32 0.044715, %v1558_v3  ;;  %v1753_v54 = vmul.f32 0.7978846, %v1721_v28  ;;  %v2403_v55 = vmul.f32 %v2302_v59, %v6009_v0  ;;  %v1594_v59 = vmul.f32 0.5, %v1558_v3 }
 0x540   : > { %v1658_v23 = vmul.f32 %v1626_v31, %v1558_v3  ;;  %4977 = vtanh.f32 %v1753_v54  ;;  %v2449_v54 = vadd.f32 %v2448_v62, %v6424_v1 }
 0x542   : > { %v1690_v20 = vmul.f32 %v1658_v23, %v1558_v3  ;;  %v2450_v34 = vadd.f32 %v2449_v54, %v6462_v57 }
 0x544   : > { %v1722_v50 = vadd.f32 %v1690_v20, %v1558_v3  ;;  %v1560_v51 = vpop.f32.mrf.mxu0  ;;  %v2466_v20 = vld [vmem:[%s7648_s3] sm:$0xff] }
 0x545   : > { %v1561_v4 = vadd.f32 %v6513_v46, %v1560_v51  ;;  %2498 = vmatpush.msrb.mxu1 %v2466_v20 }
 0x546   : > { %v4978_v36 = vpop.eup %4977  ;;  %v2039_v47 = vpop.f32.mrf.mxu1  ;;  %v1754_v9 = vmul.f32 0.7978846, %v1722_v50 }
 0x547   : > { %v2040_v30 = vadd.f32 %v6388_v45, %v2039_v47  ;;  %v1817_v41 = vadd.f32 1.0, %v4978_v36  ;;  %v1627_v37 = vmul.f32 0.044715, %v1561_v4  ;;  %v2307_v22 = vpop.permute.xlu1 %2306 }
 0x548   : > { %4979 = vtanh.f32 %v1754_v9  ;;  %v2404_v2 = vmul.f32 %v2307_v22, %v6015_v61 }
 0x549   : > { %v2091_v28 = vsub.f32 0.0, %v2040_v30  ;;  %v1849_v31 = vmul.f32 %v1817_v41, %v1593_v7  ;;  %v1659_v23 = vmul.f32 %v1627_v37, %v1561_v4  ;;  %v2451_v7 = vadd.f32 %v2450_v34, %v6465_v58 }
 0x54a   : > { %v6608_v51 = vpack.c.bf16 %v2404_v2, %v2403_v55  ;;  %v5342_v41 = vmov 256.0  }
 0x54b   : > { %v2145_v50 = vmul.f32 1.442695, %v2091_v28  ;;  %4421 = vmatmul.msk.f32.gmra.mxu1 %vm1859_vm5, %v1849_v31  ;;  %v1691_v25 = vmul.f32 %v1659_v23, %v1561_v4 }
 0x54c   : > { %v1562_v36 = vpop.f32.mrf.mxu0  ;;  %2852 = vmatmul.bf16.gmra.mxu2 %v6608_v51 }
 0x54d   : > { %4981 = vpow2.f32 %v2145_v50  ;;  %v1563_v9 = vadd.f32 %v6513_v46, %v1562_v36  ;;  %v1723_v62 = vadd.f32 %v1691_v25, %v1561_v4  ;;  %v2452_v46 = vrot.slane %v2451_v7, 4  ;;  %v2312_v36 = vpop.permute.xlu2 %2311 }
 0x54e   : > { %v4980_v47 = vpop.eup %4979  ;;  %4983 = vrcp.f32 %v5342_v41  ;;  %v2042_v22 = vpop.f32.mrf.mxu1 }
 0x54f   : > { %v1818_v30 = vadd.f32 1.0, %v4980_v47  ;;  %v1628_v37 = vmul.f32 0.044715, %v1563_v9  ;;  %v1755_v28 = vmul.f32 0.7978846, %v1723_v62  ;;  %v2043_v31 = vadd.f32 %v6388_v45, %v2042_v22 }
 0x550   : > { %v2453_v47 = vadd.f32 %v2452_v46, %v2451_v7 }
 0x551   : > { %v1850_v54 = vmul.f32 %v1818_v30, %v1594_v59  ;;  %v1660_v55 = vmul.f32 %v1628_v37, %v1563_v9  ;;  %4985 = vtanh.f32 %v1755_v28  ;;  %v2092_v2 = vsub.f32 0.0, %v2043_v31 }
 0x552   : > { %v1595_v30 = vmul.f32 0.5, %v1561_v4  ;;  %v2405_v28 = vmul.f32 %v2312_v36, %v6057_v27 }
 0x553   : > { %v4982_v23 = vpop.eup %4981  ;;  %4422 = vmatmul.msk.f32.gmra.mxu1 %vm1859_vm5, %v1850_v54  ;;  %v1692_v3 = vmul.f32 %v1660_v55, %v1563_v9  ;;  %v2147_v25 = vmul.f32 1.442695, %v2092_v2  ;;  %v2454_v2 = vrot.slane %v2453_v47, 2 }
 0x554   : > { %v2187_v20 = vadd.f32 1.0, %v4982_v23  ;;  %v4984_v50 = vpop.eup %4983 }
 0x555   : > { %v1724_v34 = vadd.f32 %v1692_v3, %v1563_v9  ;;  %v2459_v22 = vmul.f32 256.0, %v4984_v50  ;;  %v2455_v36 = vadd.f32 %v2454_v2, %v2453_v47  ;;  %vm2463_vm6 = vweird.f32 %v4984_v50  ;;  %v2327_v47 = vpop.permute.xlu2 %2326 }
 0x556   : > { %4987 = vrcp.f32 %v2187_v20 }
 0x557   : > { %4989 = vpow2.f32 %v2147_v25  ;;  %v4986_v62 = vpop.eup %4985  ;;  %v1756_v41 = vmul.f32 0.7978846, %v1724_v34  ;;  %v2317_v59 = vpop.permute.xlu0 %2316  ;;  %v2460_v7 = vsub.f32 1.0, %v2459_v22 }
 0x558   : > { %v1819_v37 = vadd.f32 1.0, %v4986_v62  ;;  %v2406_v31 = vmul.f32 %v2317_v59, %v6051_v16  ;;  %v2045_v54 = vpop.f32.mrf.mxu1  ;;  %v1596_v59 = vmul.f32 0.5, %v1563_v9 }
 0x559   : > { %4991 = vtanh.f32 %v1756_v41  ;;  %v2046_v55 = vadd.f32 %v6388_v45, %v2045_v54  ;;  %v2461_v41 = vmul.f32 %v4984_v50, %v2460_v7 }
 0x55a   : > { %v1851_v23 = vmul.f32 %v1819_v37, %v1595_v30  ;;  %v6618_v3 = vpack.c.bf16 %v2406_v31, %v2405_v28  ;;  %v2456_v31 = vrot.slane %v2455_v36, 1 }
 0x55b   : > { %v2093_v25 = vsub.f32 0.0, %v2046_v55  ;;  %v2462_v54 = vadd.f32 %v4984_v50, %v2461_v41 }
 0x55c   : > { %v4988_v20 = vpop.eup %4987  ;;  %4423 = vmatmul.msk.f32.gmra.mxu1 %vm1859_vm5, %v1851_v23  ;;  %2857 = vmatmul.bf16.gmra.mxu2 %v6618_v3  ;;  %v2457_v7 = vadd.f32 %v2456_v31, %v2455_v36 }
 0x55d   : > { %v4990_v46 = vpop.eup %4989  ;;  %2341 = vperm.xlu2 %4760, %v4988_v20   ;;  %v2149_v34 = vmul.f32 1.442695, %v2093_v25 }
 0x55e   : > { %v2188_v4 = vadd.f32 1.0, %v4990_v46 }
 0x55f   : > { %v4992_v62 = vpop.eup %4991  ;;  %v2322_v55 = vpop.permute.xlu1 %2321 }
 0x560   : > { %4993 = vrcp.f32 %v2188_v4  ;;  %v1820_v30 = vadd.f32 1.0, %v4992_v62  ;;  %v2048_v37 = vpop.f32.mrf.mxu1  ;;  %v2407_v9 = vmul.f32 %v2322_v55, %v7716_v63  ;;  %v2464_v4 = vsel %vm2463_vm6, %v4984_v50, %v2462_v54 }
 0x561   : > { %4995 = vpow2.f32 %v2149_v34  ;;  %v2049_v28 = vadd.f32 %v6388_v45, %v2048_v37  ;;  %v2408_v34 = vmul.f32 %v2327_v47, %v7717_v60 }
 0x562   : > { %v1852_v22 = vmul.f32 %v1820_v30, %v1596_v59  ;;  %v2465_v59 = vmul.f32 %v2464_v4, %v2457_v7  ;;  %v4646_v4 = vld [vmem:[%s7656_s11 + $0x74] sm:$0xf] }
 0x563   : > { %v2094_v23 = vsub.f32 0.0, %v2049_v28  ;;  %v6627_v30 = vpack.c.bf16 %v2408_v34, %v2407_v9  ;;  %v4550_v34 = vld [vmem:[%s7656_s11 + $0x78] sm:$0xf0] }
 0x564   : > { %4424 = vmatmul.msk.f32.gmra.mxu1 %vm1859_vm5, %v1852_v22 }
 0x565   : > { %v2151_v2 = vmul.f32 1.442695, %v2094_v23 }
 0x566   : > { %v4994_v20 = vpop.eup %4993 }
 0x567   : > { %v4996_v46 = vpop.eup %4995  ;;  %2346 = vperm.xlu0 %4759, %v4994_v20   ;;  %4997 = vpow2.f32 %v2151_v2 }
 0x568   : > { %v2189_v25 = vadd.f32 1.0, %v4996_v46  ;;  %v2051_v62 = vpop.f32.mrf.mxu1 }
 0x569   : > { %v2052_v41 = vadd.f32 %v6388_v45, %v2051_v62  ;;  %v4553_v62 = vor.u32 %v4646_v4, %v4550_v34  ;;  %v4661_v4 = vld [vmem:[#allocation6 + $0x64] sm:$0xf0] }
 0x56a   : > { %4999 = vrcp.f32 %v2189_v25 }
 0x56b   : > { %v2095_v37 = vsub.f32 0.0, %v2052_v41  ;;  %3067 = vmatpush.bf16.msrb.mxu0 %v4553_v62 }
 0x56c   : > { %2499 = vmatmul.f32.vlgmr.msrb.gmra.mxu1 %v2465_v59  ;;  %2862 = vmatmul.bf16.gmra.mxu2 %v6627_v30 }
 0x56d   : > { %v4998_v28 = vpop.eup %4997  ;;  %v2153_v36 = vmul.f32 1.442695, %v2095_v37 }
 0x56e   : > { %v2190_v31 = vadd.f32 1.0, %v4998_v28 }
 0x56f   : > { %5001 = vpow2.f32 %v2153_v36  ;;  %v2332_v20 = vpop.permute.xlu0 %2331 }
 0x570   : > { %v5000_v22 = vpop.eup %4999  ;;  %5003 = vrcp.f32 %v2190_v31  ;;  %v2054_v50 = vpop.f32.mrf.mxu1  ;;  %v2409_v25 = vmul.f32 %v2332_v20, %v7718_v40  ;;  %v4542_v31 = vld [vmem:[%s7656_s11 + $0x68] sm:$0xf0]  ;;  %v4484_v20 = vld [vmem:[#allocation6 + $0x70] sm:$0xf] }
 0x571   : > { %2351 = vperm.xlu1 %4761, %v5000_v22   ;;  %v2055_v54 = vadd.f32 %v6388_v45, %v2054_v50  ;;  %v4644_v22 = vld [vmem:[%s7656_s11 + $0x64] sm:$0xf] }
 0x572   : > { %v4545_v50 = vor.u32 %v4644_v22, %v4542_v31 }
 0x573   : > { %v2096_v55 = vsub.f32 0.0, %v2055_v54 }
 0x574   : > { %3068 = vmatpush.bf16.msrb.mxu0 %v4545_v50  ;;  %v4659_v50 = vld [vmem:[#allocation6 + $0x54] sm:$0xf0] }
 0x575   : > { %v5002_v23 = vpop.eup %5001  ;;  %v2155_v46 = vmul.f32 1.442695, %v2096_v55 }
 0x576   : > { %v5004_v47 = vpop.eup %5003  ;;  %v2191_v2 = vadd.f32 1.0, %v5002_v23  ;;  %v2513_v23 = vld [vmem:[%s7650_s5 + $0x8] sm:$0xff] }
 0x577   : > { %5005 = vpow2.f32 %v2155_v46  ;;  %v2337_v7 = vpop.permute.xlu1 %2336  ;;  %2356 = vperm.xlu2 %4760, %v5004_v47   ;;  %2532 = vmatpush.msra.mxu3 %v2513_v23  ;;  %v4663_v46 = vld [vmem:[#allocation6 + $0x74] sm:$0xf0]  ;;  %v4657_v23 = vld [vmem:[#allocation6 + $0x44] sm:$0xf0] }
 0x578   : > { %5007 = vrcp.f32 %v2191_v2  ;;  %v2410_v9 = vmul.f32 %v2337_v7, %v7719_v33  ;;  %v2512_v2 = vld [vmem:[%s7650_s5] sm:$0xff]  ;;  %v4485_v7 = vor.u32 %v4663_v46, %v4484_v20 }
 0x579   : > { %2533 = vmatpush.msra.mxu3 %v2512_v2 }
 0x57a   : > { %v6639_v41 = vpack.c.bf16 %v2410_v9, %v2409_v25  ;;  %v4476_v9 = vld [vmem:[#allocation6 + $0x60] sm:$0xf] }
 0x57b   : > { %2720 = vmatpush.bf16.msrb.mxu3 %v4485_v7  ;;  %v4477_v34 = vor.u32 %v4661_v4, %v4476_v9 }
 0x57c   : > { %2867 = vmatmul.bf16.gmra.mxu2 %v6639_v41 }
 0x57d   : > { %v5006_v59 = vpop.eup %5005 }
 0x57e   : > { %v5008_v37 = vpop.eup %5007  ;;  %v2192_v28 = vadd.f32 1.0, %v5006_v59 }
 0x57f   : > { %2361 = vperm.xlu0 %4759, %v5008_v37   ;;  %2721 = vmatpush.bf16.msrb.mxu3 %v4477_v34  ;;  %v4642_v37 = vld [vmem:[%s7656_s11 + $0x54] sm:$0xf] }
 0x580   : > { %5009 = vrcp.f32 %v2192_v28  ;;  %v4534_v28 = vld [vmem:[%s7656_s11 + $0x58] sm:$0xf0]  ;;  %v4452_v34 = vld [vmem:[#allocation6 + $0x30] sm:$0xf] }
 0x581   : > { %v4537_v31 = vor.u32 %v4642_v37, %v4534_v28 }
 0x583   : > { %3069 = vmatpush.bf16.msrb.mxu0 %v4537_v31 }
 0x586   : > { %v5010_v36 = vpop.eup %5009 }
 0x587   : > { %2366 = vperm.xlu1 %4761, %v5010_v36   ;;  %v4468_v36 = vld [vmem:[#allocation6 + $0x50] sm:$0xf] }
 0x5b7   : > { %v2342_v2 = vpop.permute.xlu2 %2341 }
 0x5c8   : > { %v2057_v54 = vpop.f32.mrf.mxu1 }
 0x5c9   : > { %v2058_v55 = vadd.f32 %v6388_v45, %v2057_v54  ;;  %v4469_v54 = vor.u32 %v4659_v50, %v4468_v36 }
 0x5cb   : > { %v2097_v47 = vsub.f32 0.0, %v2058_v55  ;;  %v4460_v55 = vld [vmem:[#allocation6 + $0x40] sm:$0xf]  ;;  %2722 = vmatpush.bf16.msrb.mxu3 %v4469_v54 }
 0x5cd   : > { %v2157_v25 = vmul.f32 1.442695, %v2097_v47  ;;  %v4461_v47 = vor.u32 %v4657_v23, %v4460_v55  ;;  %v4444_v55 = vld [vmem:[#allocation6 + $0x20] sm:$0xf]  ;;  %v4653_v23 = vld [vmem:[#allocation6 + $0x24] sm:$0xf0] }
 0x5cf   : > { %5011 = vpow2.f32 %v2157_v25  ;;  %v2411_v25 = vmul.f32 %v2342_v2, %v7720_v19  ;;  %2723 = vmatpush.bf16.msrb.mxu3 %v4461_v47  ;;  %v4436_v2 = vld [vmem:[#allocation6 + $0x10] sm:$0xf] }
 0x5d0   : > { %v2060_v62 = vpop.f32.mrf.mxu1 }
 0x5d1   : > { %v2061_v59 = vadd.f32 %v6388_v45, %v2060_v62  ;;  %v4655_v62 = vld [vmem:[#allocation6 + $0x34] sm:$0xf0] }
 0x5d2   : > { %v4453_v28 = vor.u32 %v4655_v62, %v4452_v34  ;;  %v4526_v34 = vld [vmem:[%s7656_s11 + $0x48] sm:$0xf0]  ;;  %v4428_v62 = vld [vmem:[#allocation6] sm:$0xf] }
 0x5d3   : > { %v2098_v22 = vsub.f32 0.0, %v2061_v59  ;;  %v5168_v59 = vld [vmem:[#allocation2] ss:$0 sm:$0xff] }
 0x5d4   : > { %2724 = vmatpush.bf16.msrb.mxu3 %v4453_v28 }
 0x5d5   : > { %v5012_v20 = vpop.eup %5011  ;;  %v2159_v46 = vmul.f32 1.442695, %v2098_v22 }
 0x5d6   : > { %v2193_v45 = vadd.f32 1.0, %v5012_v20 }
 0x5d7   : > { %5013 = vpow2.f32 %v2159_v46  ;;  %v4445_v46 = vor.u32 %v4653_v23, %v4444_v55  ;;  %v2357_v23 = vpop.permute.xlu2 %2356 }
 0x5d8   : > { %5015 = vrcp.f32 %v2193_v45  ;;  %v6667_v45 = vpop.f32.mrf.mxu2 }
 0x5d9   : > { %v2347_v7 = vpop.permute.xlu0 %2346  ;;  %v2063_v4 = vpop.f32.mrf.mxu1  ;;  %2725 = vmatpush.bf16.msrb.mxu3 %v4445_v46 }
 0x5da   : > { %v2412_v9 = vmul.f32 %v2347_v7, %v7721_v12  ;;  %v2064_v37 = vadd.f32 %v5168_v59, %v2063_v4  ;;  %v4651_v7 = vld [vmem:[#allocation6 + $0x14] sm:$0xf0] }
 0x5db   : > { %v4437_v4 = vor.u32 %v4651_v7, %v4436_v2  ;;  %v2414_v2 = vmul.f32 %v2357_v23, %v7722_v24 }
 0x5dc   : > { %v6664_v36 = vpack.c.bf16 %v2412_v9, %v2411_v25  ;;  %v2099_v31 = vsub.f32 0.0, %v2064_v37  ;;  %v4640_v25 = vld [vmem:[%s7656_s11 + $0x44] sm:$0xf]  ;;  %v4649_v37 = vld [vmem:[#allocation6 + $0x4] sm:$0xf0] }
 0x5dd   : > { %v5014_v22 = vpop.eup %5013  ;;  %v4529_v28 = vor.u32 %v4640_v25, %v4526_v34  ;;  %2726 = vmatpush.bf16.msrb.mxu3 %v4437_v4 }
 0x5de   : > { %v5016_v50 = vpop.eup %5015  ;;  %v2194_v54 = vadd.f32 1.0, %v5014_v22  ;;  %2872 = vmatmul.bf16.gmra.mxu2 %v6664_v36  ;;  %v2161_v20 = vmul.f32 1.442695, %v2099_v31 }
 0x5df   : > { %2371 = vperm.xlu2 %4760, %v5016_v50   ;;  %3070 = vmatpush.bf16.msrb.mxu0 %v4529_v28 }
 0x5e0   : > { %5017 = vrcp.f32 %v2194_v54  ;;  %v4429_v54 = vor.u32 %v4649_v37, %v4428_v62 }
 0x5e1   : > { %5019 = vpow2.f32 %v2161_v20  ;;  %v2066_v47 = vpop.f32.mrf.mxu1 }
 0x5e2   : > { %v2067_v9 = vadd.f32 %v5168_v59, %v2066_v47  ;;  %v2482_v47 = vld [vmem:[%s7649_s4] sm:$0x1]  ;;  %2727 = vmatpush.bf16.msrb.mxu3 %v4429_v54 }
 0x5e3   : > { %v2352_v22 = vpop.permute.xlu1 %2351 }
 0x5e4   : > { %v2100_v31 = vsub.f32 0.0, %v2067_v9  ;;  %v2413_v59 = vmul.f32 %v2352_v22, %v6299_v8  ;;  %v6680_v9 = vpop.f32.mrf.mxu2 }
 0x5e6   : > { %v5018_v50 = vpop.eup %5017  ;;  %v2163_v20 = vmul.f32 1.442695, %v2100_v31  ;;  %v6682_v4 = vpack.c.bf16 %v2414_v2, %v2413_v59  ;;  %v4518_v59 = vld [vmem:[%s7656_s11 + $0x38] sm:$0xf0] }
 0x5e7   : > { %v5020_v55 = vpop.eup %5019  ;;  %2376 = vperm.xlu0 %4759, %v5018_v50  }
 0x5e8   : > { %v2195_v46 = vadd.f32 1.0, %v5020_v55  ;;  %5021 = vpow2.f32 %v2163_v20 }
 0x5e9   : > { %v2500_v7 = vpop.f32.mrf.mxu1 }
 0x5ea   : > { %5023 = vrcp.f32 %v2195_v46  ;;  %v2501_v25 = vadd.f32 %v2500_v7, %v2482_v47  ;;  %v4638_v46 = vld [vmem:[%s7656_s11 + $0x34] sm:$0xf] }
 0x5eb   : > { %v4521_v2 = vor.u32 %v4638_v46, %v4518_v59  ;;  %v4679_v46 = vld [vmem:[#allocation8 + $0x78] sm:$0xff] }
 0x5ec   : > { %v2504_v34 = vmul.f32 0.044715, %v2501_v25  ;;  %v6685_v23 = vpop.f32.mrf.mxu2  ;;  %4055 = vmatpush.bf16.msrb.mxu2 %v4679_v46  ;;  %v4502_v59 = vld [vmem:[%s7656_s11 + $0x18] sm:$0xf0] }
 0x5ed   : > { %3071 = vmatpush.bf16.msrb.mxu0 %v4521_v2 }
 0x5ee   : > { %2877 = vmatmul.bf16.gmra.mxu2 %v6682_v4  ;;  %v5022_v62 = vpop.eup %5021  ;;  %v2505_v37 = vmul.f32 %v2504_v34, %v2501_v25 }
 0x5ef   : > { %v2196_v22 = vadd.f32 1.0, %v5022_v62 }
 0x5f0   : > { %v5024_v28 = vpop.eup %5023  ;;  %v2506_v31 = vmul.f32 %v2505_v37, %v2501_v25 }
 0x5f1   : > { %2381 = vperm.xlu1 %4761, %v5024_v28   ;;  %5025 = vrcp.f32 %v2196_v22  ;;  %v2362_v20 = vpop.permute.xlu0 %2361  ;;  %v2503_v28 = vmul.f32 0.5, %v2501_v25 }
 0x5f2   : > { %v2507_v50 = vadd.f32 %v2506_v31, %v2501_v25  ;;  %v2415_v7 = vmul.f32 %v2362_v20, %v6348_v39  ;;  %v4510_v25 = vld [vmem:[%s7656_s11 + $0x28] sm:$0xf0] }
 0x5f4   : > { %v2508_v55 = vmul.f32 0.7978846, %v2507_v50  ;;  %v6697_v31 = vpop.f32.mrf.mxu2 }
 0x5f6   : > { %5027 = vtanh.f32 %v2508_v55  ;;  %v4671_v55 = vld [vmem:[#allocation8 + $0x38] sm:$0xff] }
 0x5f7   : > { %v5026_v54 = vpop.eup %5025 }
 0x5f8   : > { %2386 = vperm.xlu2 %4760, %v5026_v54   ;;  %v4636_v54 = vld [vmem:[%s7656_s11 + $0x24] sm:$0xf] }
 0x5f9   : > { %v2367_v47 = vpop.permute.xlu1 %2366  ;;  %v4513_v20 = vor.u32 %v4636_v54, %v4510_v25  ;;  %v4669_v54 = vld [vmem:[#allocation8 + $0x28] sm:$0xff] }
 0x5fa   : > { %v2416_v34 = vmul.f32 %v2367_v47, %v6354_v14  ;;  %v4678_v47 = vld [vmem:[#allocation8 + $0x70] sm:$0xff]  ;;  %v4494_v25 = vld [vmem:[%s7656_s11 + $0x8] sm:$0xf0] }
 0x5fb   : > { %3072 = vmatpush.bf16.msrb.mxu0 %v4513_v20  ;;  %4056 = vmatpush.bf16.msrb.mxu2 %v4678_v47 }
 0x5fc   : > { %v5028_v62 = vpop.eup %5027  ;;  %v6695_v37 = vpack.c.bf16 %v2416_v34, %v2415_v7  ;;  %v6718_v7 = vpop.f32.mrf.mxu2 }
 0x5fd   : > { %v2510_v22 = vadd.f32 1.0, %v5028_v62 }
 0x5fe   : > { %2882 = vmatmul.bf16.gmra.mxu2 %v6695_v37 }
 0x5ff   : > { %v2511_v50 = vmul.f32 %v2510_v22, %v2503_v28 }
 0x601   : > { %4425 = vmatmul.msk.f32.vlgmr.msra.gmra.mxu3 %vm1859_vm5, %v2511_v50  ;;  %v4647_v50 = vld [vmem:[%s7656_s11 + $0x74] sm:$0xf0] }
 0x602   : > { %3966 = vmatpush.bf16.msra.mxu3 %v4671_v55 }
 0x604   : > { %v6720_v34 = vpop.f32.mrf.mxu2 }
 0x609   : > { %2728 = vmatmul.bf16.vlgmr.msrb.gmra.mxu3 %v6449_v26  ;;  %v4670_v26 = vld [vmem:[#allocation8 + $0x30] sm:$0xff] }
 0x60a   : > { %3967 = vmatpush.bf16.msra.mxu3 %v4670_v26 }
 0x60c   : > { %v6740_v20 = vpop.f32.mrf.mxu2 }
 0x60e   : > { %3968 = vmatpush.bf16.msra.mxu3 %v4669_v54  ;;  %v4641_v54 = vld [vmem:[%s7656_s11 + $0x44] sm:$0xf0] }
 0x619   : > { %2733 = vmatmul.bf16.gmra.mxu3 %v6486_v15  ;;  %v4634_v15 = vld [vmem:[%s7656_s11 + $0x14] sm:$0xf] }
 0x61a   : > { %v4505_v2 = vor.u32 %v4634_v15, %v4502_v59  ;;  %v4540_v15 = vld [vmem:[%s7656_s11 + $0x60] sm:$0xf]  ;;  %v4645_v59 = vld [vmem:[%s7656_s11 + $0x64] sm:$0xf0] }
 0x61c   : > { %3073 = vmatpush.bf16.msrb.mxu0 %v4505_v2  ;;  %v4541_v2 = vor.u32 %v4645_v59, %v4540_v15  ;;  %v4508_v15 = vld [vmem:[%s7656_s11 + $0x20] sm:$0xf]  ;;  %v4637_v59 = vld [vmem:[%s7656_s11 + $0x24] sm:$0xf0] }
 0x629   : > { %2738 = vmatmul.bf16.gmra.mxu3 %v6517_v43 }
 0x639   : > { %2743 = vmatmul.bf16.gmra.mxu3 %v6535_v35  ;;  %v2372_v43 = vpop.permute.xlu2 %2371 }
 0x63a   : > { %v2417_v62 = vmul.f32 %v2372_v43, %v6421_v5 }
 0x649   : > { %2748 = vmatmul.bf16.gmra.mxu3 %v6545_v48  ;;  %v4548_v48 = vld [vmem:[%s7656_s11 + $0x70] sm:$0xf] }
 0x64a   : > { %v4549_v55 = vor.u32 %v4647_v50, %v4548_v48 }
 0x64c   : > { %2978 = vmatpush.bf16.msra.mxu1 %v4549_v55  ;;  %v6759_v55 = vpop.f32.mrf.mxu2 }
 0x650   : > { %2979 = vmatpush.bf16.msra.mxu1 %v4541_v2  ;;  %v4500_v2 = vld [vmem:[%s7656_s11 + $0x10] sm:$0xf] }
 0x652   : > { %v2387_v47 = vpop.permute.xlu2 %2386 }
 0x659   : > { %v2377_v35 = vpop.permute.xlu0 %2376  ;;  %2753 = vmatmul.bf16.gmra.mxu3 %v6559_v21  ;;  %v4632_v21 = vld [vmem:[%s7656_s11 + $0x4] sm:$0xf] }
 0x65a   : > { %v2418_v28 = vmul.f32 %v2377_v35, %v6424_v1  ;;  %v4497_v46 = vor.u32 %v4632_v21, %v4494_v25  ;;  %v2420_v35 = vmul.f32 %v2387_v47, %v6465_v58  ;;  %v4516_v25 = vld [vmem:[%s7656_s11 + $0x30] sm:$0xf]  ;;  %v4509_v47 = vor.u32 %v4637_v59, %v4508_v15 }
 0x65c   : > { %v6725_v22 = vpack.c.bf16 %v2418_v28, %v2417_v62  ;;  %3074 = vmatpush.bf16.msrb.mxu0 %v4497_v46  ;;  %v4532_v62 = vld [vmem:[%s7656_s11 + $0x50] sm:$0xf]  ;;  %v4643_v28 = vld [vmem:[%s7656_s11 + $0x54] sm:$0xf0] }
 0x65d   : > { %v4533_v48 = vor.u32 %v4643_v28, %v4532_v62  ;;  %v4639_v46 = vld [vmem:[%s7656_s11 + $0x34] sm:$0xf0]  ;;  %v4677_v62 = vld [vmem:[#allocation8 + $0x68] sm:$0xff]  ;;  %v4492_v28 = vld [vmem:[%s7656_s11] sm:$0xf] }
 0x65e   : > { %2887 = vmatmul.bf16.gmra.mxu2 %v6725_v22 }
 0x65f   : > { %2980 = vmatpush.bf16.msra.mxu1 %v4533_v48  ;;  %v4633_v48 = vld [vmem:[%s7656_s11 + $0x4] sm:$0xf0]  ;;  %4057 = vmatpush.bf16.msrb.mxu2 %v4677_v62 }
 0x663   : > { %v2382_v26 = vpop.permute.xlu1 %2381 }
 0x664   : > { %v2419_v43 = vmul.f32 %v2382_v26, %v6462_v57  ;;  %v4517_v26 = vor.u32 %v4639_v46, %v4516_v25  ;;  %v4676_v25 = vld [vmem:[#allocation8 + $0x60] sm:$0xff] }
 0x665   : > { %4058 = vmatpush.bf16.msrb.mxu2 %v4676_v25 }
 0x666   : > { %v6757_v50 = vpack.c.bf16 %v2420_v35, %v2419_v43  ;;  %v4635_v43 = vld [vmem:[%s7656_s11 + $0x14] sm:$0xf0] }
 0x667   : > { %v4501_v35 = vor.u32 %v4635_v43, %v4500_v2 }
 0x669   : > { %2758 = vmatmul.bf16.gmra.mxu3 %v6582_v10  ;;  %v4524_v10 = vld [vmem:[%s7656_s11 + $0x40] sm:$0xf] }
 0x66a   : > { %v4525_v21 = vor.u32 %v4641_v54, %v4524_v10  ;;  %v4668_v10 = vld [vmem:[#allocation8 + $0x20] sm:$0xff]  ;;  %v2514_v54 = vld [vmem:[%s7651_s6] sm:$0x1] }
 0x66b   : > { %3969 = vmatpush.bf16.msra.mxu3 %v4668_v10  ;;  %v4667_v10 = vld [vmem:[#allocation8 + $0x18] sm:$0xff] }
 0x66c   : > { %2981 = vmatpush.bf16.msra.mxu1 %v4525_v21 }
 0x66e   : > { %2892 = vmatmul.bf16.gmra.mxu2 %v6757_v50 }
 0x66f   : > { %3970 = vmatpush.bf16.msra.mxu3 %v4667_v10  ;;  %v4673_v10 = vld [vmem:[#allocation8 + $0x48] sm:$0xff] }
 0x670   : > { %2982 = vmatpush.bf16.msra.mxu1 %v4517_v26 }
 0x674   : > { %2983 = vmatpush.bf16.msra.mxu1 %v4509_v47 }
 0x678   : > { %2984 = vmatpush.bf16.msra.mxu1 %v4501_v35 }
 0x679   : > { %2763 = vmatmul.bf16.gmra.mxu3 %v6608_v51  ;;  %v4493_v51 = vor.u32 %v4633_v48, %v4492_v28 }
 0x67c   : > { %2985 = vmatpush.bf16.msra.mxu1 %v4493_v51 }
 0x684   : > { %v2535_v21 = vpop.f32.mrf.mxu3 }
 0x685   : > { %v2536_v46 = vadd.f32 %v2535_v21, %v2514_v54  ;;  %v4675_v54 = vld [vmem:[#allocation8 + $0x58] sm:$0xff] }
 0x686   : > { %4059 = vmatpush.bf16.msrb.mxu2 %v4675_v54 }
 0x687   : > { %v2538_v26 = vsub.f32 0.0, %v2536_v46 }
 0x689   : > { %v2539_v15 = vmul.f32 1.442695, %v2538_v26  ;;  %2768 = vmatmul.bf16.gmra.mxu3 %v6618_v3 }
 0x68b   : > { %5029 = vpow2.f32 %v2539_v15 }
 0x68c   : > { %v6797_v59 = vpop.f32.mrf.mxu3 }
 0x691   : > { %v5030_v47 = vpop.eup %5029 }
 0x692   : > { %v2541_v2 = vadd.f32 1.0, %v5030_v47  ;;  %v4674_v47 = vld [vmem:[#allocation8 + $0x50] sm:$0xff] }
 0x693   : > { %4060 = vmatpush.bf16.msrb.mxu2 %v4674_v47  ;;  %v4664_v47 = vld [vmem:[#allocation8] sm:$0xff] }
 0x694   : > { %5031 = vrcp.f32 %v2541_v2  ;;  %v6799_v43 = vpop.f32.mrf.mxu3 }
 0x697   : > { %4061 = vmatpush.bf16.msrb.mxu2 %v4673_v10 }
 0x699   : > { %2773 = vmatmul.bf16.gmra.mxu3 %v6627_v30 }
 0x69a   : > { %v5032_v35 = vpop.eup %5031 }
 0x69b   : > { %v6802_v62 = vperm.slane %v5032_v35, 0 }
 0x69c   : > { %v6804_v28 = vpop.f32.mrf.mxu3 }
 0x69d   : > { %v2544_v48 = vmul.f32 %v6802_v62, %v5709_v44  ;;  %v2545_v3 = vmul.f32 %v6802_v62, %v5712_v38  ;;  %v2546_v30 = vmul.f32 %v6802_v62, %v5727_v13  ;;  %v2547_v44 = vmul.f32 %v6802_v62, %v5730_v52  ;;  %v4666_v13 = vld [vmem:[#allocation8 + $0x10] sm:$0xff] }
 0x69e   : > { %v2548_v26 = vmul.f32 %v6802_v62, %v5744_v56  ;;  %3971 = vmatpush.bf16.msra.mxu3 %v4666_v13  ;;  %v2551_v56 = vmul.f32 %v6802_v62, %v5766_v6  ;;  %v4665_v6 = vld [vmem:[#allocation8 + $0x8] sm:$0xff] }
 0x69f   : > { %v2576_v51 = vpack.c.bf16 %v2545_v3, %v2544_v48  ;;  %v2577_v38 = vpack.c.bf16 %v2547_v44, %v2546_v30  ;;  %v2552_v48 = vmul.f32 %v6802_v62, %v5777_v17  ;;  %v6842_v3 = vpop.f32.mrf.mxu2  ;;  %v2554_v17 = vmul.f32 %v6802_v62, %v5790_v29 }
 0x6a1   : > { %2986 = vmatmul.bf16.vlgmr.msra.gmra.mxu1 %v2576_v51  ;;  %3075 = vmatmul.bf16.vlgmr.msrb.gmra.mxu0 %v2576_v51 }
 0x6a2   : > { %3972 = vmatpush.bf16.msra.mxu3 %v4665_v6 }
 0x6a4   : > { %v6810_v21 = vpop.f32.mrf.mxu3 }
 0x6a6   : > { %3973 = vmatpush.bf16.msra.mxu3 %v4664_v47 }
 0x6a7   : > { %v6846_v54 = vpop.f32.mrf.mxu2 }
 0x6a9   : > { %2778 = vmatmul.bf16.gmra.mxu3 %v6639_v41  ;;  %v2549_v41 = vmul.f32 %v6802_v62, %v5747_v49 }
 0x6ab   : > { %v2578_v15 = vpack.c.bf16 %v2549_v41, %v2548_v26  ;;  %v2557_v26 = vmul.f32 %v6802_v62, %v5964_v53 }
 0x6ac   : > { %v6817_v25 = vpop.f32.mrf.mxu3 }
 0x6af   : > { %v6855_v44 = vpop.f32.mrf.mxu2 }
 0x6b1   : > { %2991 = vmatmul.bf16.gmra.mxu1 %v2577_v38  ;;  %3080 = vmatmul.bf16.gmra.mxu0 %v2577_v38 }
 0x6b4   : > { %v6819_v46 = vpop.f32.mrf.mxu3 }
 0x6b7   : > { %v6864_v41 = vpop.f32.mrf.mxu2 }
 0x6b9   : > { %2783 = vmatmul.bf16.gmra.mxu3 %v6664_v36  ;;  %v2550_v36 = vmul.f32 %v6802_v62, %v5763_v42 }
 0x6bb   : > { %v2579_v49 = vpack.c.bf16 %v2551_v56, %v2550_v36  ;;  %v4672_v36 = vld [vmem:[#allocation8 + $0x40] sm:$0xff] }
 0x6bc   : > { %v6826_v52 = vpop.f32.mrf.mxu3  ;;  %4062 = vmatpush.bf16.msrb.mxu2 %v4672_v36 }
 0x6c1   : > { %2996 = vmatmul.bf16.gmra.mxu1 %v2578_v15  ;;  %3085 = vmatmul.bf16.gmra.mxu0 %v2578_v15  ;;  %v6868_v15 = vpop.f32.mrf.mxu2 }
 0x6c4   : > { %v6833_v2 = vpop.f32.mrf.mxu3 }
 0x6c9   : > { %2788 = vmatmul.bf16.gmra.mxu3 %v6682_v4  ;;  %v2553_v4 = vmul.f32 %v6802_v62, %v5780_v18  ;;  %v2555_v18 = vmul.f32 %v6802_v62, %v5793_v32  ;;  %v6876_v53 = vpop.f32.mrf.mxu2 }
 0x6ca   : > { %7724 = vst [vmem:[#allocation20_spill] sm:$0xff] %v6876_v53 }
 0x6cb   : > { %v2580_v42 = vpack.c.bf16 %v2553_v4, %v2552_v48  ;;  %v2581_v30 = vpack.c.bf16 %v2555_v18, %v2554_v17  ;;  %v2561_v4 = vmul.f32 %v6802_v62, %v6051_v16 }
 0x6cc   : > { %v6835_v35 = vpop.f32.mrf.mxu3 }
 0x6d1   : > { %3001 = vmatmul.bf16.gmra.mxu1 %v2579_v49  ;;  %3090 = vmatmul.bf16.gmra.mxu0 %v2579_v49  ;;  %v6880_v48 = vpop.f32.mrf.mxu2 }
 0x6d2   : > { %7726 = vst [vmem:[#allocation22_spill] sm:$0xff] %v6880_v48 }
 0x6d4   : > { %v6844_v51 = vpop.f32.mrf.mxu3 }
 0x6d9   : > { %2793 = vmatmul.bf16.gmra.mxu3 %v6695_v37 }
 0x6dc   : > { %v6849_v37 = vpop.f32.mrf.mxu3 }
 0x6e1   : > { %3006 = vmatmul.bf16.gmra.mxu1 %v2580_v42  ;;  %3095 = vmatmul.bf16.gmra.mxu0 %v2580_v42 }
 0x6e4   : > { %v6857_v38 = vpop.f32.mrf.mxu3 }
 0x6e9   : > { %2798 = vmatmul.bf16.gmra.mxu3 %v6725_v22  ;;  %v2556_v22 = vmul.f32 %v6802_v62, %v5969_v11  ;;  %v2559_v11 = vmul.f32 %v6802_v62, %v6015_v61  ;;  %v2560_v61 = vmul.f32 %v6802_v62, %v6057_v27 }
 0x6eb   : > { %v2582_v32 = vpack.c.bf16 %v2557_v26, %v2556_v22  ;;  %v2584_v26 = vpack.c.bf16 %v2561_v4, %v2560_v61 }
 0x6ec   : > { %v6866_v29 = vpop.f32.mrf.mxu3 }
 0x6f1   : > { %3011 = vmatmul.bf16.gmra.mxu1 %v2581_v30  ;;  %3100 = vmatmul.bf16.gmra.mxu0 %v2581_v30 }
 0x6f4   : > { %v6870_v13 = vpop.f32.mrf.mxu3 }
 0x6f5   : > { %7723 = vst [vmem:[#allocation19_spill] sm:$0xff] %v6870_v13 }
 0x6f9   : > { %2803 = vmatmul.bf16.gmra.mxu3 %v6757_v50  ;;  %v2558_v50 = vmul.f32 %v6802_v62, %v6009_v0  ;;  %v3156_v0 = vld [vmem:[%s7658_s13] sm:$0x3] }
 0x6fa   : > { %v6891_v6 = vperm.slane %v3156_v0, 0  ;;  %v6893_v10 = vperm.slane %v3156_v0, 1 }
 0x6fb   : > { %v2583_v56 = vpack.c.bf16 %v2559_v11, %v2558_v50 }
 0x6fc   : > { %v6878_v49 = vpop.f32.mrf.mxu3 }
 0x6fd   : > { %7725 = vst [vmem:[#allocation21_spill] sm:$0xff] %v6878_v49 }
 0x701   : > { %3016 = vmatmul.bf16.gmra.mxu1 %v2582_v32  ;;  %3105 = vmatmul.bf16.gmra.mxu0 %v2582_v32  ;;  %v6897_v32 = vpop.f32.mrf.mxu2 }
 0x702   : > { %7728 = vst [vmem:[#allocation24_spill] sm:$0xff] %v6897_v32 }
 0x704   : > { %v6889_v42 = vpop.f32.mrf.mxu3 }
 0x705   : > { %7727 = vst [vmem:[#allocation23_spill] sm:$0xff] %v6889_v42 }
 0x711   : > { %3021 = vmatmul.bf16.gmra.mxu1 %v2583_v56  ;;  %3110 = vmatmul.bf16.gmra.mxu0 %v2583_v56  ;;  %v6909_v56 = vpop.f32.mrf.mxu3 }
 0x712   : > { %7729 = vst [vmem:[#allocation25_spill] sm:$0xff] %v6909_v56 }
 0x719   : > { %v6927_v48 = vpop.f32.mrf.mxu3 }
 0x71a   : > { %7731 = vst [vmem:[#allocation28_spill] sm:$0xff] %v6927_v48 }
 0x71e   : > { %v2987_v17 = vpop.f32.mrf.mxu1  ;;  %v3076_v18 = vpop.f32.mrf.mxu0 }
 0x71f   : > { %v2988_v30 = vadd.f32 %v2987_v17, %v6797_v59  ;;  %v3077_v22 = vadd.f32 %v3076_v18, %v6667_v45 }
 0x721   : > { %v6900_v27 = vadd.f32 %v6891_v6, %v2988_v30  ;;  %v6903_v16 = vadd.f32 %v6893_v10, %v3077_v22  ;;  %3026 = vmatmul.bf16.gmra.mxu1 %v2584_v26  ;;  %3115 = vmatmul.bf16.gmra.mxu0 %v2584_v26 }
 0x723   : > { %v3290_v50 = vmul.f32 0.044715, %v6900_v27  ;;  %v3291_v11 = vmul.f32 0.044715, %v6903_v16 }
 0x725   : > { %v3354_v47 = vmul.f32 %v3290_v50, %v6900_v27  ;;  %v3355_v59 = vmul.f32 %v3291_v11, %v6903_v16  ;;  %v2562_v50 = vmul.f32 %v6802_v62, %v7716_v63  ;;  %v2563_v11 = vmul.f32 %v6802_v62, %v7717_v60 }
 0x726   : > { %v2989_v45 = vpop.f32.mrf.mxu1  ;;  %v3078_v36 = vpop.f32.mrf.mxu0 }
 0x727   : > { %v3418_v0 = vmul.f32 %v3354_v47, %v6900_v27  ;;  %v3419_v61 = vmul.f32 %v3355_v59, %v6903_v16  ;;  %v2990_v4 = vadd.f32 %v2989_v45, %v6799_v43  ;;  %v3079_v17 = vadd.f32 %v3078_v36, %v6680_v9  ;;  %v6923_v47 = vpop.f32.mrf.mxu2 }
 0x728   : > { %7730 = vst [vmem:[#allocation27_spill] sm:$0xff] %v6923_v47  ;;  %v2585_v32 = vpack.c.bf16 %v2563_v11, %v2562_v50 }
 0x729   : > { %v3482_v18 = vadd.f32 %v3418_v0, %v6900_v27  ;;  %v3164_v30 = vadd.f32 %v6891_v6, %v2990_v4  ;;  %v3165_v22 = vadd.f32 %v6893_v10, %v3079_v17  ;;  %v3483_v26 = vadd.f32 %v3419_v61, %v6903_v16 }
 0x72b   : > { %v3292_v59 = vmul.f32 0.044715, %v3164_v30  ;;  %v3293_v43 = vmul.f32 0.044715, %v3165_v22  ;;  %v3546_v45 = vmul.f32 0.7978846, %v3482_v18 }
 0x72c   : > { %v3547_v0 = vmul.f32 0.7978846, %v3483_v26 }
 0x72d   : > { %v3356_v9 = vmul.f32 %v3292_v59, %v3164_v30  ;;  %v3357_v36 = vmul.f32 %v3293_v43, %v3165_v22  ;;  %5033 = vtanh.f32 %v3546_v45 }
 0x72e   : > { %v2992_v56 = vpop.f32.mrf.mxu1  ;;  %v3081_v4 = vpop.f32.mrf.mxu0  ;;  %5035 = vtanh.f32 %v3547_v0 }
 0x72f   : > { %v3420_v17 = vmul.f32 %v3356_v9, %v3164_v30  ;;  %v2993_v61 = vadd.f32 %v2992_v56, %v6804_v28  ;;  %v3082_v42 = vadd.f32 %v3081_v4, %v6685_v23  ;;  %v3421_v63 = vmul.f32 %v3357_v36, %v3165_v22  ;;  %v6937_v11 = vpop.f32.mrf.mxu2 }
 0x730   : > { %7732 = vst [vmem:[#allocation29_spill] sm:$0xff] %v6937_v11 }
 0x731   : > { %v3484_v60 = vadd.f32 %v3420_v17, %v3164_v30  ;;  %v6930_v47 = vadd.f32 %v6891_v6, %v2993_v61  ;;  %v6933_v18 = vadd.f32 %v6893_v10, %v3082_v42  ;;  %3031 = vmatmul.bf16.gmra.mxu1 %v2585_v32  ;;  %3120 = vmatmul.bf16.gmra.mxu0 %v2585_v32 }
 0x732   : > { %v3485_v26 = vadd.f32 %v3421_v63, %v3165_v22  ;;  %v2564_v32 = vmul.f32 %v6802_v62, %v7718_v40  ;;  %v2565_v17 = vmul.f32 %v6802_v62, %v7719_v33  ;;  %v3226_v33 = vmul.f32 0.5, %v6900_v27 }
 0x733   : > { %v3548_v50 = vmul.f32 0.7978846, %v3484_v60  ;;  %v3294_v28 = vmul.f32 0.044715, %v6930_v47  ;;  %v3295_v23 = vmul.f32 0.044715, %v6933_v18  ;;  %v5034_v45 = vpop.eup %5033 }
 0x734   : > { %v3549_v56 = vmul.f32 0.7978846, %v3485_v26  ;;  %v5036_v36 = vpop.eup %5035 }
 0x735   : > { %5037 = vtanh.f32 %v3548_v50  ;;  %v3358_v59 = vmul.f32 %v3294_v28, %v6930_v47  ;;  %v3359_v43 = vmul.f32 %v3295_v23, %v6933_v18  ;;  %v3674_v50 = vadd.f32 1.0, %v5034_v45  ;;  %v6957_v23 = vpop.f32.mrf.mxu3 }
 0x736   : > { %v2994_v42 = vpop.f32.mrf.mxu1  ;;  %v3083_v9 = vpop.f32.mrf.mxu0  ;;  %5039 = vtanh.f32 %v3549_v56  ;;  %v3675_v28 = vadd.f32 1.0, %v5036_v36  ;;  %7733 = vst [vmem:[#allocation30_spill] sm:$0xff] %v6957_v23 }
 0x737   : > { %v2995_v0 = vadd.f32 %v2994_v42, %v6810_v21  ;;  %v3084_v4 = vadd.f32 %v3083_v9, %v6697_v31  ;;  %v3422_v61 = vmul.f32 %v3358_v59, %v6930_v47  ;;  %v3423_v63 = vmul.f32 %v3359_v43, %v6933_v18  ;;  %v6965_v13 = vpop.f32.mrf.mxu2 }
 0x738   : > { %v2586_v43 = vpack.c.bf16 %v2565_v17, %v2564_v32  ;;  %v3228_v9 = vmul.f32 0.5, %v3164_v30  ;;  %v3738_v27 = vmul.f32 %v3674_v50, %v3226_v33 }
 0x739   : > { %v6950_v60 = vadd.f32 %v6891_v6, %v2995_v0  ;;  %v6953_v26 = vadd.f32 %v6893_v10, %v3084_v4  ;;  %v3486_v40 = vadd.f32 %v3422_v61, %v6930_v47  ;;  %v3487_v21 = vadd.f32 %v3423_v63, %v6933_v18 }
 0x73a   : > { %v3227_v4 = vmul.f32 0.5, %v6903_v16  ;;  %v3229_v61 = vmul.f32 0.5, %v3165_v22 }
 0x73b   : > { %v5038_v31 = vpop.eup %5037  ;;  %v3296_v56 = vmul.f32 0.044715, %v6950_v60  ;;  %v3297_v59 = vmul.f32 0.044715, %v6953_v26  ;;  %v3550_v63 = vmul.f32 0.7978846, %v3486_v40 }
 0x73c   : > { %v5040_v42 = vpop.eup %5039  ;;  %v3676_v0 = vadd.f32 1.0, %v5038_v31  ;;  %v3739_v58 = vmul.f32 %v3675_v28, %v3227_v4  ;;  %v3551_v53 = vmul.f32 0.7978846, %v3487_v21 }
 0x73d   : > { %v3677_v45 = vadd.f32 1.0, %v5040_v42  ;;  %v3360_v36 = vmul.f32 %v3296_v56, %v6950_v60  ;;  %v3361_v11 = vmul.f32 %v3297_v59, %v6953_v26  ;;  %5041 = vtanh.f32 %v3550_v63 }
 0x73e   : > { %v2997_v23 = vpop.f32.mrf.mxu1  ;;  %v3086_v48 = vpop.f32.mrf.mxu0  ;;  %v3740_v49 = vmul.f32 %v3676_v0, %v3228_v9  ;;  %5043 = vtanh.f32 %v3551_v53  ;;  %v2567_v53 = vmul.f32 %v6802_v62, %v7721_v12 }
 0x73f   : > { %v2998_v30 = vadd.f32 %v2997_v23, %v6817_v25  ;;  %v3087_v32 = vadd.f32 %v3086_v48, %v6718_v7  ;;  %v3741_v16 = vmul.f32 %v3677_v45, %v3229_v61  ;;  %v3424_v22 = vmul.f32 %v3360_v36, %v6950_v60  ;;  %v6981_v23 = vpop.f32.mrf.mxu3  ;;  %v6993_v36 = vpop.f32.mrf.mxu2 }
 0x740   : > { %v3802_v17 = vpack.c.bf16 %v3740_v49, %v3738_v27  ;;  %v3425_v40 = vmul.f32 %v3361_v11, %v6953_v26 }
 0x741   : > { %v6972_v31 = vadd.f32 %v6891_v6, %v2998_v30  ;;  %v6975_v50 = vadd.f32 %v6893_v10, %v3087_v32  ;;  %3036 = vmatmul.bf16.gmra.mxu1 %v2586_v43  ;;  %3125 = vmatmul.bf16.gmra.mxu0 %v2586_v43  ;;  %v3803_v28 = vpack.c.bf16 %v3741_v16, %v3739_v58 }
 0x742   : > { %3974 = vmatmul.bf16.vlgmr.msra.gmra.mxu3 %v3802_v17  ;;  %v3488_v25 = vadd.f32 %v3424_v22, %v6950_v60  ;;  %v3489_v7 = vadd.f32 %v3425_v40, %v6953_v26  ;;  %v2566_v43 = vmul.f32 %v6802_v62, %v7720_v19  ;;  %v3230_v22 = vmul.f32 0.5, %v6930_v47 }
 0x743   : > { %v3298_v48 = vmul.f32 0.044715, %v6972_v31  ;;  %v3299_v49 = vmul.f32 0.044715, %v6975_v50  ;;  %4063 = vmatmul.bf16.vlgmr.msrb.gmra.mxu2 %v3803_v28  ;;  %v5042_v42 = vpop.eup %5041  ;;  %v3232_v17 = vmul.f32 0.5, %v6950_v60  ;;  %v3231_v40 = vmul.f32 0.5, %v6933_v18 }
 0x744   : > { %v3552_v11 = vmul.f32 0.7978846, %v3488_v25  ;;  %v3553_v21 = vmul.f32 0.7978846, %v3489_v7  ;;  %v5044_v45 = vpop.eup %5043  ;;  %v2587_v32 = vpack.c.bf16 %v2567_v53, %v2566_v43 }
 0x745   : > { %v3362_v33 = vmul.f32 %v3298_v48, %v6972_v31  ;;  %v3363_v58 = vmul.f32 %v3299_v49, %v6975_v50  ;;  %v3679_v28 = vadd.f32 1.0, %v5044_v45 }
 0x746   : > { %v2999_v56 = vpop.f32.mrf.mxu1  ;;  %v3088_v59 = vpop.f32.mrf.mxu0  ;;  %5045 = vtanh.f32 %v3552_v11 }
 0x747   : > { %v3000_v9 = vadd.f32 %v2999_v56, %v6819_v46  ;;  %v3089_v0 = vadd.f32 %v3088_v59, %v6720_v34  ;;  %5047 = vtanh.f32 %v3553_v21  ;;  %v3426_v4 = vmul.f32 %v3362_v33, %v6972_v31  ;;  %v7011_v47 = vpop.f32.mrf.mxu3 }
 0x748   : > { %v3427_v61 = vmul.f32 %v3363_v58, %v6975_v50  ;;  %v3678_v46 = vadd.f32 1.0, %v5042_v42  ;;  %v3233_v56 = vmul.f32 0.5, %v6953_v26 }
 0x749   : > { %v6996_v63 = vadd.f32 %v6891_v6, %v3000_v9  ;;  %v6999_v19 = vadd.f32 %v6893_v10, %v3089_v0  ;;  %v3490_v34 = vadd.f32 %v3426_v4, %v6972_v31  ;;  %v3743_v0 = vmul.f32 %v3679_v28, %v3231_v40 }
 0x74a   : > { %v3491_v27 = vadd.f32 %v3427_v61, %v6975_v50  ;;  %v3742_v58 = vmul.f32 %v3678_v46, %v3230_v22  ;;  %v2568_v28 = vmul.f32 %v6802_v62, %v6299_v8 }
 0x74b   : > { %v3300_v12 = vmul.f32 0.044715, %v6996_v63  ;;  %v3301_v30 = vmul.f32 0.044715, %v6999_v19  ;;  %v3554_v49 = vmul.f32 0.7978846, %v3490_v34  ;;  %v7025_v34 = vpop.f32.mrf.mxu2 }
 0x74c   : > { %v5046_v16 = vpop.eup %5045  ;;  %v3555_v43 = vmul.f32 0.7978846, %v3491_v27 }
 0x74d   : > { %v5048_v25 = vpop.eup %5047  ;;  %v3680_v7 = vadd.f32 1.0, %v5046_v16  ;;  %v3364_v48 = vmul.f32 %v3300_v12, %v6996_v63  ;;  %v3365_v11 = vmul.f32 %v3301_v30, %v6999_v19  ;;  %5049 = vtanh.f32 %v3554_v49 }
 0x74e   : > { %v3002_v21 = vpop.f32.mrf.mxu1  ;;  %v3091_v33 = vpop.f32.mrf.mxu0  ;;  %v3681_v59 = vadd.f32 1.0, %v5048_v25  ;;  %5051 = vtanh.f32 %v3555_v43  ;;  %v2569_v49 = vmul.f32 %v6802_v62, %v7722_v24 }
 0x74f   : > { %v3003_v60 = vadd.f32 %v3002_v21, %v6826_v52  ;;  %v3092_v18 = vadd.f32 %v3091_v33, %v6740_v20  ;;  %v3744_v42 = vmul.f32 %v3680_v7, %v3232_v17  ;;  %v3428_v9 = vmul.f32 %v3364_v48, %v6996_v63 }
 0x750   : > { %v3745_v53 = vmul.f32 %v3681_v59, %v3233_v56  ;;  %v3429_v4 = vmul.f32 %v3365_v11, %v6999_v19 }
 0x751   : > { %v7018_v61 = vadd.f32 %v6891_v6, %v3003_v60  ;;  %v7021_v26 = vadd.f32 %v6893_v10, %v3092_v18  ;;  %3041 = vmatmul.bf16.gmra.mxu1 %v2587_v32  ;;  %3130 = vmatmul.bf16.gmra.mxu0 %v2587_v32  ;;  %v3804_v45 = vpack.c.bf16 %v3744_v42, %v3742_v58  ;;  %v7039_v58 = vpop.f32.mrf.mxu3  ;;  %v3234_v42 = vmul.f32 0.5, %v6972_v31 }
 0x752   : > { %v3805_v52 = vpack.c.bf16 %v3745_v53, %v3743_v0  ;;  %v3492_v20 = vadd.f32 %v3428_v9, %v6996_v63  ;;  %v3493_v46 = vadd.f32 %v3429_v4, %v6999_v19  ;;  %v2588_v60 = vpack.c.bf16 %v2569_v49, %v2568_v28 }
 0x753   : > { %v3302_v27 = vmul.f32 0.044715, %v7018_v61  ;;  %v3303_v12 = vmul.f32 0.044715, %v7021_v26  ;;  %3979 = vmatmul.bf16.gmra.mxu3 %v3804_v45  ;;  %v5050_v25 = vpop.eup %5049  ;;  %v3236_v9 = vmul.f32 0.5, %v6996_v63  ;;  %v3235_v0 = vmul.f32 0.5, %v6975_v50  ;;  %v7054_v45 = vpop.f32.mrf.mxu2 }
 0x754   : > { %4068 = vmatmul.bf16.gmra.mxu2 %v3805_v52  ;;  %v3556_v30 = vmul.f32 0.7978846, %v3492_v20  ;;  %v3557_v16 = vmul.f32 0.7978846, %v3493_v46  ;;  %v5052_v33 = vpop.eup %5051 }
 0x755   : > { %v3366_v32 = vmul.f32 %v3302_v27, %v7018_v61  ;;  %v3367_v22 = vmul.f32 %v3303_v12, %v7021_v26  ;;  %v3683_v53 = vadd.f32 1.0, %v5052_v33 }
 0x756   : > { %v3004_v17 = vpop.f32.mrf.mxu1  ;;  %v3093_v40 = vpop.f32.mrf.mxu0  ;;  %5053 = vtanh.f32 %v3556_v30 }
 0x757   : > { %v3005_v7 = vadd.f32 %v3004_v17, %v6833_v2  ;;  %v3094_v48 = vadd.f32 %v3093_v40, %v6759_v55  ;;  %5055 = vtanh.f32 %v3557_v16  ;;  %v3430_v11 = vmul.f32 %v3366_v32, %v7018_v61 }
 0x758   : > { %v3431_v21 = vmul.f32 %v3367_v22, %v7021_v26  ;;  %v3682_v2 = vadd.f32 1.0, %v5050_v25  ;;  %v3237_v32 = vmul.f32 0.5, %v6999_v19  ;;  %v3747_v28 = vmul.f32 %v3683_v53, %v3235_v0 }
 0x759   : > { %v7042_v56 = vadd.f32 %v6891_v6, %v3005_v7  ;;  %v7045_v8 = vadd.f32 %v6893_v10, %v3094_v48  ;;  %v3494_v55 = vadd.f32 %v3430_v11, %v7018_v61 }
 0x75a   : > { %v3495_v59 = vadd.f32 %v3431_v21, %v7021_v26  ;;  %v3746_v16 = vmul.f32 %v3682_v2, %v3234_v42  ;;  %v7071_v21 = vpop.f32.mrf.mxu3 }
 0x75b   : > { %v3304_v24 = vmul.f32 0.044715, %v7042_v56  ;;  %v3305_v43 = vmul.f32 0.044715, %v7045_v8  ;;  %v3558_v46 = vmul.f32 0.7978846, %v3494_v55 }
 0x75c   : > { %v5054_v18 = vpop.eup %5053  ;;  %v3559_v22 = vmul.f32 0.7978846, %v3495_v59 }
 0x75d   : > { %v5056_v4 = vpop.eup %5055  ;;  %v3684_v52 = vadd.f32 1.0, %v5054_v18  ;;  %v3368_v20 = vmul.f32 %v3304_v24, %v7042_v56  ;;  %v3369_v27 = vmul.f32 %v3305_v43, %v7045_v8  ;;  %5057 = vtanh.f32 %v3558_v46  ;;  %v7075_v24 = vpop.f32.mrf.mxu2 }
 0x75e   : > { %v3007_v12 = vpop.f32.mrf.mxu1  ;;  %v3096_v30 = vpop.f32.mrf.mxu0  ;;  %v3685_v31 = vadd.f32 1.0, %v5056_v4  ;;  %5059 = vtanh.f32 %v3559_v22  ;;  %v3238_v22 = vmul.f32 0.5, %v7018_v61 }
 0x75f   : > { %v3008_v63 = vadd.f32 %v3007_v12, %v6835_v35  ;;  %v3097_v50 = vadd.f32 %v3096_v30, %v6842_v3  ;;  %v3748_v17 = vmul.f32 %v3684_v52, %v3236_v9  ;;  %v3432_v40 = vmul.f32 %v3368_v20, %v7042_v56 }
 0x760   : > { %v3749_v25 = vmul.f32 %v3685_v31, %v3237_v32  ;;  %v3433_v7 = vmul.f32 %v3369_v27, %v7045_v8  ;;  %v2570_v9 = vmul.f32 %v6802_v62, %v6348_v39  ;;  %v2571_v52 = vmul.f32 %v6802_v62, %v6354_v14 }
 0x761   : > { %v7064_v48 = vadd.f32 %v6891_v6, %v3008_v63  ;;  %v7067_v49 = vadd.f32 %v6893_v10, %v3097_v50  ;;  %3046 = vmatmul.bf16.gmra.mxu1 %v2588_v60  ;;  %3135 = vmatmul.bf16.gmra.mxu0 %v2588_v60  ;;  %v3806_v19 = vpack.c.bf16 %v3748_v17, %v3746_v16  ;;  %v3240_v63 = vmul.f32 0.5, %v7042_v56 }
 0x762   : > { %v3807_v35 = vpack.c.bf16 %v3749_v25, %v3747_v28  ;;  %v3496_v3 = vadd.f32 %v3432_v40, %v7042_v56  ;;  %v3497_v11 = vadd.f32 %v3433_v7, %v7045_v8  ;;  %v2589_v32 = vpack.c.bf16 %v2571_v52, %v2570_v9  ;;  %v7100_v28 = vpop.f32.mrf.mxu3 }
 0x763   : > { %v3306_v33 = vmul.f32 0.044715, %v7064_v48  ;;  %v3307_v2 = vmul.f32 0.044715, %v7067_v49  ;;  %3984 = vmatmul.bf16.gmra.mxu3 %v3806_v19  ;;  %v5058_v0 = vpop.eup %5057  ;;  %v3239_v50 = vmul.f32 0.5, %v7021_v26 }
 0x764   : > { %4073 = vmatmul.bf16.gmra.mxu2 %v3807_v35  ;;  %v3560_v55 = vmul.f32 0.7978846, %v3496_v3  ;;  %v3561_v59 = vmul.f32 0.7978846, %v3497_v11  ;;  %v5060_v27 = vpop.eup %5059  ;;  %v3686_v30 = vadd.f32 1.0, %v5058_v0 }
 0x765   : > { %v3370_v43 = vmul.f32 %v3306_v33, %v7064_v48  ;;  %v3371_v60 = vmul.f32 %v3307_v2, %v7067_v49  ;;  %v3687_v17 = vadd.f32 1.0, %v5060_v27  ;;  %v3241_v2 = vmul.f32 0.5, %v7045_v8  ;;  %v7105_v56 = vpop.f32.mrf.mxu2 }
 0x766   : > { %v3009_v18 = vpop.f32.mrf.mxu1  ;;  %v3098_v42 = vpop.f32.mrf.mxu0  ;;  %5061 = vtanh.f32 %v3560_v55  ;;  %v3750_v33 = vmul.f32 %v3686_v30, %v3238_v22 }
 0x767   : > { %v3010_v53 = vadd.f32 %v3009_v18, %v6844_v51  ;;  %v3099_v4 = vadd.f32 %v3098_v42, %v6846_v54  ;;  %5063 = vtanh.f32 %v3561_v59  ;;  %v3434_v20 = vmul.f32 %v3370_v43, %v7064_v48 }
 0x768   : > { %v3435_v46 = vmul.f32 %v3371_v60, %v7067_v49  ;;  %v3751_v18 = vmul.f32 %v3687_v17, %v3239_v50  ;;  %v2573_v50 = vmul.f32 %v6802_v62, %v6424_v1 }
 0x769   : > { %v7088_v12 = vadd.f32 %v6891_v6, %v3010_v53  ;;  %v7091_v39 = vadd.f32 %v6893_v10, %v3099_v4  ;;  %v3498_v51 = vadd.f32 %v3434_v20, %v7064_v48 }
 0x76a   : > { %v3499_v54 = vadd.f32 %v3435_v46, %v7067_v49 }
 0x76b   : > { %v3308_v16 = vmul.f32 0.044715, %v7088_v12  ;;  %v3309_v14 = vmul.f32 0.044715, %v7091_v39  ;;  %v3562_v19 = vmul.f32 0.7978846, %v3498_v51 }
 0x76c   : > { %v5062_v31 = vpop.eup %5061  ;;  %v3563_v55 = vmul.f32 0.7978846, %v3499_v54 }
 0x76d   : > { %v5064_v40 = vpop.eup %5063  ;;  %v3688_v25 = vadd.f32 1.0, %v5062_v31  ;;  %v3372_v7 = vmul.f32 %v3308_v16, %v7088_v12  ;;  %v3373_v35 = vmul.f32 %v3309_v14, %v7091_v39  ;;  %5065 = vtanh.f32 %v3562_v19  ;;  %v7125_v31 = vpop.f32.mrf.mxu3 }
 0x76e   : > { %v3012_v3 = vpop.f32.mrf.mxu1  ;;  %v3101_v11 = vpop.f32.mrf.mxu0  ;;  %v3689_v61 = vadd.f32 1.0, %v5064_v40  ;;  %5067 = vtanh.f32 %v3563_v55  ;;  %v2572_v14 = vmul.f32 %v6802_v62, %v6421_v5  ;;  %v3243_v55 = vmul.f32 0.5, %v7067_v49 }
 0x76f   : > { %v3013_v26 = vadd.f32 %v3012_v3, %v6849_v37  ;;  %v3102_v59 = vadd.f32 %v3101_v11, %v6855_v44  ;;  %v3752_v43 = vmul.f32 %v3688_v25, %v3240_v63  ;;  %v3436_v60 = vmul.f32 %v3372_v7, %v7088_v12  ;;  %v7133_v7 = vpop.f32.mrf.mxu2 }
 0x770   : > { %v3753_v42 = vmul.f32 %v3689_v61, %v3241_v2  ;;  %v3437_v9 = vmul.f32 %v3373_v35, %v7091_v39  ;;  %v2590_v11 = vpack.c.bf16 %v2573_v50, %v2572_v14  ;;  %v3242_v2 = vmul.f32 0.5, %v7064_v48 }
 0x771   : > { %v7112_v0 = vadd.f32 %v6891_v6, %v3013_v26  ;;  %v7115_v8 = vadd.f32 %v6893_v10, %v3102_v59  ;;  %3051 = vmatmul.bf16.gmra.mxu1 %v2589_v32  ;;  %3140 = vmatmul.bf16.gmra.mxu0 %v2589_v32  ;;  %v3808_v53 = vpack.c.bf16 %v3752_v43, %v3750_v33  ;;  %v3244_v61 = vmul.f32 0.5, %v7088_v12 }
 0x772   : > { %v3809_v37 = vpack.c.bf16 %v3753_v42, %v3751_v18  ;;  %v3500_v44 = vadd.f32 %v3436_v60, %v7088_v12  ;;  %v3501_v4 = vadd.f32 %v3437_v9, %v7091_v39 }
 0x773   : > { %v3310_v52 = vmul.f32 0.044715, %v7112_v0  ;;  %v3311_v20 = vmul.f32 0.044715, %v7115_v8  ;;  %3989 = vmatmul.bf16.gmra.mxu3 %v3808_v53  ;;  %v5066_v32 = vpop.eup %5065 }
 0x774   : > { %4078 = vmatmul.bf16.gmra.mxu2 %v3809_v37  ;;  %v3564_v46 = vmul.f32 0.7978846, %v3500_v44  ;;  %v3565_v27 = vmul.f32 0.7978846, %v3501_v4  ;;  %v5068_v25 = vpop.eup %5067  ;;  %v3245_v44 = vmul.f32 0.5, %v7091_v39 }
 0x775   : > { %v3374_v30 = vmul.f32 %v3310_v52, %v7112_v0  ;;  %v3375_v51 = vmul.f32 %v3311_v20, %v7115_v8  ;;  %v3691_v26 = vadd.f32 1.0, %v5068_v25 }
 0x776   : > { %v3014_v54 = vpop.f32.mrf.mxu1  ;;  %v3103_v16 = vpop.f32.mrf.mxu0  ;;  %5069 = vtanh.f32 %v3564_v46 }
 0x777   : > { %v3015_v22 = vadd.f32 %v3014_v54, %v6857_v38  ;;  %v3104_v63 = vadd.f32 %v3103_v16, %v6864_v41  ;;  %5071 = vtanh.f32 %v3565_v27  ;;  %v3438_v17 = vmul.f32 %v3374_v30, %v7112_v0 }
 0x778   : > { %v3439_v40 = vmul.f32 %v3375_v51, %v7115_v8  ;;  %v3690_v38 = vadd.f32 1.0, %v5066_v32  ;;  %v3755_v46 = vmul.f32 %v3691_v26, %v3243_v55  ;;  %v7155_v51 = vpop.f32.mrf.mxu3  ;;  %v7165_v32 = vpop.f32.mrf.mxu2 }
 0x779   : > { %v7136_v5 = vadd.f32 %v6891_v6, %v3015_v22  ;;  %v7139_v19 = vadd.f32 %v6893_v10, %v3104_v63  ;;  %v3502_v41 = vadd.f32 %v3438_v17, %v7112_v0 }
 0x77a   : > { %v3503_v35 = vadd.f32 %v3439_v40, %v7115_v8  ;;  %v3754_v37 = vmul.f32 %v3690_v38, %v3242_v2 }
 0x77b   : > { %v3312_v1 = vmul.f32 0.044715, %v7136_v5  ;;  %v3313_v3 = vmul.f32 0.044715, %v7139_v19  ;;  %v3566_v18 = vmul.f32 0.7978846, %v3502_v41 }
 0x77c   : > { %v5070_v33 = vpop.eup %5069  ;;  %v3567_v52 = vmul.f32 0.7978846, %v3503_v35  ;;  %v2574_v35 = vmul.f32 %v6802_v62, %v6462_v57 }
 0x77d   : > { %v5072_v59 = vpop.eup %5071  ;;  %v3692_v43 = vadd.f32 1.0, %v5070_v33  ;;  %v3376_v60 = vmul.f32 %v3312_v1, %v7136_v5  ;;  %v3377_v42 = vmul.f32 %v3313_v3, %v7139_v19  ;;  %5073 = vtanh.f32 %v3566_v18  ;;  %v7734_v3 = vld [vmem:[#allocation19_spill] sm:$0xff]  ;;  %v7735_v33 = vld [vmem:[#allocation20_spill] sm:$0xff] }
 0x77e   : > { %v3017_v9 = vpop.f32.mrf.mxu1  ;;  %v3106_v53 = vpop.f32.mrf.mxu0  ;;  %v3693_v4 = vadd.f32 1.0, %v5072_v59  ;;  %5075 = vtanh.f32 %v3567_v52  ;;  %v3246_v52 = vmul.f32 0.5, %v7112_v0 }
 0x77f   : > { %v3018_v48 = vadd.f32 %v3017_v9, %v6866_v29  ;;  %v3107_v12 = vadd.f32 %v3106_v53, %v6868_v15  ;;  %v3756_v49 = vmul.f32 %v3692_v43, %v3244_v61  ;;  %v3440_v20 = vmul.f32 %v3376_v60, %v7136_v5  ;;  %v7736_v61 = vld [vmem:[#allocation26_spill] sm:$0xff] }
 0x780   : > { %v3757_v27 = vmul.f32 %v3693_v4, %v3245_v44  ;;  %v3441_v30 = vmul.f32 %v3377_v42, %v7139_v19  ;;  %v2575_v55 = vmul.f32 %v6802_v62, %v7736_v61  ;;  %v7187_v53 = vpop.f32.mrf.mxu3 }
 0x781   : > { %v7158_v54 = vadd.f32 %v6891_v6, %v3018_v48  ;;  %v7161_v39 = vadd.f32 %v6893_v10, %v3107_v12  ;;  %3056 = vmatmul.bf16.gmra.mxu1 %v2590_v11  ;;  %3145 = vmatmul.bf16.gmra.mxu0 %v2590_v11  ;;  %v3810_v29 = vpack.c.bf16 %v3756_v49, %v3754_v37  ;;  %v3248_v48 = vmul.f32 0.5, %v7136_v5 }
 0x782   : > { %v3811_v15 = vpack.c.bf16 %v3757_v27, %v3755_v46  ;;  %v3504_v16 = vadd.f32 %v3440_v20, %v7136_v5  ;;  %v3505_v14 = vadd.f32 %v3441_v30, %v7139_v19  ;;  %v2591_v44 = vpack.c.bf16 %v2575_v55, %v2574_v35  ;;  %v7194_v46 = vpop.f32.mrf.mxu2  ;;  %v7737_v5 = vld [vmem:[#allocation21_spill] sm:$0xff] }
 0x783   : > { %v3314_v22 = vmul.f32 0.044715, %v7158_v54  ;;  %v3315_v63 = vmul.f32 0.044715, %v7161_v39  ;;  %3994 = vmatmul.bf16.gmra.mxu3 %v3810_v29  ;;  %v5074_v1 = vpop.eup %5073  ;;  %v3247_v12 = vmul.f32 0.5, %v7115_v8  ;;  %v7738_v8 = vld [vmem:[#allocation22_spill] sm:$0xff] }
 0x784   : > { %4083 = vmatmul.bf16.gmra.mxu2 %v3811_v15  ;;  %v3568_v50 = vmul.f32 0.7978846, %v3504_v16  ;;  %v3569_v17 = vmul.f32 0.7978846, %v3505_v14  ;;  %v5076_v43 = vpop.eup %5075  ;;  %v3694_v18 = vadd.f32 1.0, %v5074_v1 }
 0x785   : > { %v3378_v40 = vmul.f32 %v3314_v22, %v7158_v54  ;;  %v3379_v25 = vmul.f32 %v3315_v63, %v7161_v39  ;;  %v3695_v49 = vadd.f32 1.0, %v5076_v43  ;;  %v3249_v63 = vmul.f32 0.5, %v7139_v19 }
 0x786   : > { %v3019_v38 = vpop.f32.mrf.mxu1  ;;  %v3108_v41 = vpop.f32.mrf.mxu0  ;;  %5077 = vtanh.f32 %v3568_v50  ;;  %v3758_v22 = vmul.f32 %v3694_v18, %v3246_v52  ;;  %v7739_v52 = vld [vmem:[#allocation23_spill] sm:$0xff] }
 0x787   : > { %v3020_v11 = vadd.f32 %v3019_v38, %v7734_v3  ;;  %v3109_v2 = vadd.f32 %v3108_v41, %v7735_v33  ;;  %5079 = vtanh.f32 %v3569_v17  ;;  %v3442_v26 = vmul.f32 %v3378_v40, %v7158_v54 }
 0x788   : > { %v3443_v59 = vmul.f32 %v3379_v25, %v7161_v39  ;;  %v3759_v41 = vmul.f32 %v3695_v49, %v3247_v12  ;;  %v7213_v18 = vpop.f32.mrf.mxu3  ;;  %v7740_v12 = vld [vmem:[#allocation24_spill] sm:$0xff] }
 0x789   : > { %v7180_v60 = vadd.f32 %v6891_v6, %v3020_v11  ;;  %v7183_v57 = vadd.f32 %v6893_v10, %v3109_v2  ;;  %v3506_v42 = vadd.f32 %v3442_v26, %v7158_v54 }
 0x78a   : > { %v3507_v9 = vadd.f32 %v3443_v59, %v7161_v39 }
 0x78b   : > { %v3316_v62 = vmul.f32 0.044715, %v7180_v60  ;;  %v3317_v37 = vmul.f32 0.044715, %v7183_v57  ;;  %v3570_v29 = vmul.f32 0.7978846, %v3506_v42 }
 0x78c   : > { %v5078_v4 = vpop.eup %5077  ;;  %v3571_v50 = vmul.f32 0.7978846, %v3507_v9 }
 0x78d   : > { %v5080_v20 = vpop.eup %5079  ;;  %v3696_v27 = vadd.f32 1.0, %v5078_v4  ;;  %v3380_v30 = vmul.f32 %v3316_v62, %v7180_v60  ;;  %v3381_v15 = vmul.f32 %v3317_v37, %v7183_v57  ;;  %5081 = vtanh.f32 %v3570_v29  ;;  %v7217_v4 = vpop.f32.mrf.mxu2 }
 0x78e   : > { %v3022_v16 = vpop.f32.mrf.mxu1  ;;  %v3111_v14 = vpop.f32.mrf.mxu0  ;;  %v3697_v0 = vadd.f32 1.0, %v5080_v20  ;;  %5083 = vtanh.f32 %v3571_v50  ;;  %v3250_v50 = vmul.f32 0.5, %v7158_v54 }
 0x78f   : > { %v3023_v17 = vadd.f32 %v3022_v16, %v7737_v5  ;;  %v3112_v40 = vadd.f32 %v3111_v14, %v7738_v8  ;;  %v3760_v25 = vmul.f32 %v3696_v27, %v3248_v48  ;;  %v3444_v38 = vmul.f32 %v3380_v30, %v7180_v60 }
 0x790   : > { %v3761_v35 = vmul.f32 %v3697_v0, %v3249_v63  ;;  %v3445_v1 = vmul.f32 %v3381_v15, %v7183_v57 }
 0x791   : > { %v7204_v3 = vadd.f32 %v6891_v6, %v3023_v17  ;;  %v7207_v11 = vadd.f32 %v6893_v10, %v3112_v40  ;;  %3061 = vmatmul.bf16.gmra.mxu1 %v2591_v44  ;;  %3150 = vmatmul.bf16.gmra.mxu0 %v2591_v44  ;;  %v3812_v19 = vpack.c.bf16 %v3760_v25, %v3758_v22  ;;  %v3251_v17 = vmul.f32 0.5, %v7161_v39  ;;  %v7241_v39 = vpop.f32.mrf.mxu3 }
 0x792   : > { %v3813_v33 = vpack.c.bf16 %v3761_v35, %v3759_v41  ;;  %v3508_v2 = vadd.f32 %v3444_v38, %v7180_v60  ;;  %v3509_v61 = vadd.f32 %v3445_v1, %v7183_v57  ;;  %v3252_v41 = vmul.f32 0.5, %v7180_v60 }
 0x793   : > { %v3318_v55 = vmul.f32 0.044715, %v7204_v3  ;;  %v3319_v26 = vmul.f32 0.044715, %v7207_v11  ;;  %3999 = vmatmul.bf16.gmra.mxu3 %v3812_v19  ;;  %v5082_v44 = vpop.eup %5081 }
 0x794   : > { %4088 = vmatmul.bf16.gmra.mxu2 %v3813_v33  ;;  %v3572_v59 = vmul.f32 0.7978846, %v3508_v2  ;;  %v3573_v43 = vmul.f32 0.7978846, %v3509_v61  ;;  %v5084_v30 = vpop.eup %5083  ;;  %v3698_v16 = vadd.f32 1.0, %v5082_v44 }
 0x795   : > { %v3382_v42 = vmul.f32 %v3318_v55, %v7204_v3  ;;  %v3383_v9 = vmul.f32 %v3319_v26, %v7207_v11  ;;  %v3699_v8 = vadd.f32 1.0, %v5084_v30  ;;  %v3253_v55 = vmul.f32 0.5, %v7183_v57  ;;  %v7239_v26 = vpop.f32.mrf.mxu2 }
 0x796   : > { %v3024_v62 = vpop.f32.mrf.mxu1  ;;  %v3113_v37 = vpop.f32.mrf.mxu0  ;;  %5085 = vtanh.f32 %v3572_v59  ;;  %v3762_v61 = vmul.f32 %v3698_v16, %v3250_v50  ;;  %v7741_v59 = vld [vmem:[#allocation25_spill] sm:$0xff] }
 0x797   : > { %v3025_v48 = vadd.f32 %v3024_v62, %v7739_v52  ;;  %v3114_v49 = vadd.f32 %v3113_v37, %v7740_v12  ;;  %5087 = vtanh.f32 %v3573_v43  ;;  %v3446_v20 = vmul.f32 %v3382_v42, %v7204_v3  ;;  %v7742_v42 = vld [vmem:[#allocation27_spill] sm:$0xff] }
 0x798   : > { %v3447_v27 = vmul.f32 %v3383_v9, %v7207_v11  ;;  %v3763_v37 = vmul.f32 %v3699_v8, %v3251_v17 }
 0x799   : > { %v7224_v29 = vadd.f32 %v6891_v6, %v3025_v48  ;;  %v7227_v15 = vadd.f32 %v6893_v10, %v3114_v49  ;;  %v3510_v14 = vadd.f32 %v3446_v20, %v7204_v3 }
 0x79a   : > { %v3511_v22 = vadd.f32 %v3447_v27, %v7207_v11 }
 0x79b   : > { %v3320_v63 = vmul.f32 0.044715, %v7224_v29  ;;  %v3321_v0 = vmul.f32 0.044715, %v7227_v15  ;;  %v3574_v40 = vmul.f32 0.7978846, %v3510_v14 }
 0x79c   : > { %v5086_v5 = vpop.eup %5085  ;;  %v3575_v25 = vmul.f32 0.7978846, %v3511_v22 }
 0x79d   : > { %v5088_v38 = vpop.eup %5087  ;;  %v3700_v35 = vadd.f32 1.0, %v5086_v5  ;;  %v3384_v1 = vmul.f32 %v3320_v63, %v7224_v29  ;;  %v3385_v19 = vmul.f32 %v3321_v0, %v7227_v15  ;;  %5089 = vtanh.f32 %v3574_v40  ;;  %v7743_v40 = vld [vmem:[#allocation28_spill] sm:$0xff] }
 0x79e   : > { %v3027_v33 = vpop.f32.mrf.mxu1  ;;  %v3116_v2 = vpop.f32.mrf.mxu0  ;;  %v3701_v54 = vadd.f32 1.0, %v5088_v38  ;;  %5091 = vtanh.f32 %v3575_v25  ;;  %v7744_v38 = vld [vmem:[#allocation29_spill] sm:$0xff] }
 0x79f   : > { %v3028_v43 = vadd.f32 %v3027_v33, %v7741_v59  ;;  %v3117_v60 = vadd.f32 %v3116_v2, %v7742_v42  ;;  %v3764_v9 = vmul.f32 %v3700_v35, %v3252_v41  ;;  %v3448_v62 = vmul.f32 %v3384_v1, %v7224_v29  ;;  %v7265_v33 = vpop.f32.mrf.mxu3 }
 0x7a0   : > { %v3765_v44 = vmul.f32 %v3701_v54, %v3253_v55  ;;  %v3449_v52 = vmul.f32 %v3385_v19, %v7227_v15  ;;  %v7263_v19 = vpop.f32.mrf.mxu2 }
 0x7a1   : > { %v7248_v57 = vadd.f32 %v6891_v6, %v3028_v43  ;;  %v7251_v48 = vadd.f32 %v6893_v10, %v3117_v60  ;;  %v3814_v12 = vpack.c.bf16 %v3764_v9, %v3762_v61  ;;  %v3512_v49 = vadd.f32 %v3448_v62, %v7224_v29 }
 0x7a2   : > { %v3815_v20 = vpack.c.bf16 %v3765_v44, %v3763_v37  ;;  %v3513_v27 = vadd.f32 %v3449_v52, %v7227_v15  ;;  %v3254_v62 = vmul.f32 0.5, %v7204_v3  ;;  %v3255_v37 = vmul.f32 0.5, %v7207_v11  ;;  %v7745_v11 = vld [vmem:[#allocation30_spill] sm:$0xff] }
 0x7a3   : > { %v3322_v30 = vmul.f32 0.044715, %v7248_v57  ;;  %v3323_v16 = vmul.f32 0.044715, %v7251_v48  ;;  %4004 = vmatmul.bf16.gmra.mxu3 %v3814_v12  ;;  %v3576_v14 = vmul.f32 0.7978846, %v3512_v49  ;;  %v5090_v22 = vpop.eup %5089 }
 0x7a4   : > { %4093 = vmatmul.bf16.gmra.mxu2 %v3815_v20  ;;  %v3577_v63 = vmul.f32 0.7978846, %v3513_v27  ;;  %v5092_v5 = vpop.eup %5091  ;;  %v3702_v55 = vadd.f32 1.0, %v5090_v22  ;;  %v3256_v52 = vmul.f32 0.5, %v7224_v29  ;;  %v3257_v27 = vmul.f32 0.5, %v7227_v15 }
 0x7a5   : > { %5093 = vtanh.f32 %v3576_v14  ;;  %v3386_v0 = vmul.f32 %v3322_v30, %v7248_v57  ;;  %v3387_v50 = vmul.f32 %v3323_v16, %v7251_v48  ;;  %v3703_v54 = vadd.f32 1.0, %v5092_v5 }
 0x7a6   : > { %v3029_v17 = vpop.f32.mrf.mxu1  ;;  %v3118_v8 = vpop.f32.mrf.mxu0  ;;  %5095 = vtanh.f32 %v3577_v63 }
 0x7a7   : > { %v3030_v25 = vadd.f32 %v3029_v17, %v7743_v40  ;;  %v3119_v41 = vadd.f32 %v3118_v8, %v7744_v38  ;;  %v3450_v35 = vmul.f32 %v3386_v0, %v7248_v57  ;;  %v3451_v1 = vmul.f32 %v3387_v50, %v7251_v48 }
 0x7a8   : > { %v3766_v0 = vmul.f32 %v3702_v55, %v3254_v62  ;;  %v3767_v3 = vmul.f32 %v3703_v54, %v3255_v37  ;;  %v7295_v55 = vpop.f32.mrf.mxu2 }
 0x7a9   : > { %v7268_v2 = vadd.f32 %v6891_v6, %v3030_v25  ;;  %v7271_v61 = vadd.f32 %v6893_v10, %v3119_v41  ;;  %v3514_v59 = vadd.f32 %v3450_v35, %v7248_v57  ;;  %v3515_v43 = vadd.f32 %v3451_v1, %v7251_v48 }
 0x7ab   : > { %v5094_v42 = vpop.eup %5093  ;;  %v3324_v60 = vmul.f32 0.044715, %v7268_v2  ;;  %v3325_v9 = vmul.f32 0.044715, %v7271_v61  ;;  %v3578_v49 = vmul.f32 0.7978846, %v3514_v59 }
 0x7ac   : > { %v5096_v44 = vpop.eup %5095  ;;  %v3704_v12 = vadd.f32 1.0, %v5094_v42  ;;  %v3579_v20 = vmul.f32 0.7978846, %v3515_v43 }
 0x7ad   : > { %v3705_v30 = vadd.f32 1.0, %v5096_v44  ;;  %v3388_v16 = vmul.f32 %v3324_v60, %v7268_v2  ;;  %v3389_v14 = vmul.f32 %v3325_v9, %v7271_v61  ;;  %5097 = vtanh.f32 %v3578_v49 }
 0x7ae   : > { %v3032_v22 = vpop.f32.mrf.mxu1  ;;  %v3121_v63 = vpop.f32.mrf.mxu0  ;;  %v3768_v50 = vmul.f32 %v3704_v12, %v3256_v52  ;;  %5099 = vtanh.f32 %v3579_v20 }
 0x7af   : > { %v3033_v5 = vadd.f32 %v3032_v22, %v7745_v11  ;;  %v3122_v29 = vadd.f32 %v3121_v63, %v6965_v13  ;;  %v3769_v17 = vmul.f32 %v3705_v30, %v3257_v27  ;;  %v3452_v8 = vmul.f32 %v3388_v16, %v7268_v2  ;;  %v7297_v13 = vpop.f32.mrf.mxu3 }
 0x7b0   : > { %v3816_v40 = vpack.c.bf16 %v3768_v50, %v3766_v0  ;;  %v3453_v15 = vmul.f32 %v3389_v14, %v7271_v61  ;;  %v3259_v11 = vmul.f32 0.5, %v7251_v48 }
 0x7b1   : > { %v7288_v25 = vadd.f32 %v6891_v6, %v3033_v5  ;;  %v7291_v38 = vadd.f32 %v6893_v10, %v3122_v29  ;;  %v3817_v41 = vpack.c.bf16 %v3769_v17, %v3767_v3  ;;  %v3516_v35 = vadd.f32 %v3452_v8, %v7268_v2 }
 0x7b2   : > { %v3517_v1 = vadd.f32 %v3453_v15, %v7271_v61  ;;  %v3258_v3 = vmul.f32 0.5, %v7248_v57  ;;  %v3260_v29 = vmul.f32 0.5, %v7268_v2  ;;  %v7320_v15 = vpop.f32.mrf.mxu2 }
 0x7b3   : > { %v3326_v54 = vmul.f32 0.044715, %v7288_v25  ;;  %v3327_v59 = vmul.f32 0.044715, %v7291_v38  ;;  %4009 = vmatmul.bf16.gmra.mxu3 %v3816_v40  ;;  %v3580_v43 = vmul.f32 0.7978846, %v3516_v35  ;;  %v5098_v42 = vpop.eup %5097 }
 0x7b4   : > { %4098 = vmatmul.bf16.gmra.mxu2 %v3817_v41  ;;  %v3581_v60 = vmul.f32 0.7978846, %v3517_v1  ;;  %v5100_v37 = vpop.eup %5099  ;;  %v3706_v14 = vadd.f32 1.0, %v5098_v42  ;;  %v3261_v35 = vmul.f32 0.5, %v7271_v61 }
 0x7b5   : > { %5101 = vtanh.f32 %v3580_v43  ;;  %v3390_v9 = vmul.f32 %v3326_v54, %v7288_v25  ;;  %v3391_v62 = vmul.f32 %v3327_v59, %v7291_v38  ;;  %v3707_v22 = vadd.f32 1.0, %v5100_v37 }
 0x7b6   : > { %v3034_v44 = vpop.f32.mrf.mxu1  ;;  %v3123_v52 = vpop.f32.mrf.mxu0  ;;  %5103 = vtanh.f32 %v3581_v60  ;;  %v3770_v48 = vmul.f32 %v3706_v14, %v3258_v3 }
 0x7b7   : > { %v3035_v12 = vadd.f32 %v3034_v44, %v6981_v23  ;;  %v3124_v49 = vadd.f32 %v3123_v52, %v6993_v36  ;;  %v3454_v20 = vmul.f32 %v3390_v9, %v7288_v25  ;;  %v3455_v27 = vmul.f32 %v3391_v62, %v7291_v38  ;;  %v7322_v41 = vpop.f32.mrf.mxu3 }
 0x7b8   : > { %v3771_v60 = vmul.f32 %v3707_v22, %v3259_v11 }
 0x7b9   : > { %v7308_v30 = vadd.f32 %v6891_v6, %v3035_v12  ;;  %v7311_v16 = vadd.f32 %v6893_v10, %v3124_v49  ;;  %v3518_v63 = vadd.f32 %v3454_v20, %v7288_v25  ;;  %v3519_v0 = vadd.f32 %v3455_v27, %v7291_v38 }
 0x7bb   : > { %v5102_v50 = vpop.eup %5101  ;;  %v3328_v23 = vmul.f32 0.044715, %v7308_v30  ;;  %v3329_v36 = vmul.f32 0.044715, %v7311_v16  ;;  %v3582_v8 = vmul.f32 0.7978846, %v3518_v63 }
 0x7bc   : > { %v5104_v5 = vpop.eup %5103  ;;  %v3708_v17 = vadd.f32 1.0, %v5102_v50  ;;  %v3583_v40 = vmul.f32 0.7978846, %v3519_v0 }
 0x7bd   : > { %v3709_v1 = vadd.f32 1.0, %v5104_v5  ;;  %v3392_v54 = vmul.f32 %v3328_v23, %v7308_v30  ;;  %v3393_v59 = vmul.f32 %v3329_v36, %v7311_v16  ;;  %5105 = vtanh.f32 %v3582_v8 }
 0x7be   : > { %v3037_v57 = vpop.f32.mrf.mxu1  ;;  %v3126_v43 = vpop.f32.mrf.mxu0  ;;  %v3772_v42 = vmul.f32 %v3708_v17, %v3260_v29  ;;  %5107 = vtanh.f32 %v3583_v40 }
 0x7bf   : > { %v3038_v2 = vadd.f32 %v3037_v57, %v7011_v47  ;;  %v3127_v9 = vadd.f32 %v3126_v43, %v7025_v34  ;;  %v3773_v62 = vmul.f32 %v3709_v1, %v3261_v35  ;;  %v3456_v37 = vmul.f32 %v3392_v54, %v7308_v30  ;;  %v7341_v47 = vld [vmem:[%s7660_s15] ss:$0 sm:$0xff] }
 0x7c0   : > { %v3818_v44 = vpack.c.bf16 %v3772_v42, %v3770_v48  ;;  %v3457_v61 = vmul.f32 %v3393_v59, %v7311_v16 }
 0x7c1   : > { %v7332_v52 = vadd.f32 %v6891_v6, %v3038_v2  ;;  %v7335_v12 = vadd.f32 %v6893_v10, %v3127_v9  ;;  %v3819_v49 = vpack.c.bf16 %v3773_v62, %v3771_v60  ;;  %v3520_v20 = vadd.f32 %v3456_v37, %v7308_v30 }
 0x7c2   : > { %v3521_v34 = vadd.f32 %v3457_v61, %v7311_v16  ;;  %v3263_v9 = vmul.f32 0.5, %v7291_v38  ;;  %v3264_v61 = vmul.f32 0.5, %v7308_v30 }
 0x7c3   : > { %v3330_v27 = vmul.f32 0.044715, %v7332_v52  ;;  %v3331_v14 = vmul.f32 0.044715, %v7335_v12  ;;  %4014 = vmatmul.bf16.gmra.mxu3 %v3818_v44  ;;  %v3584_v22 = vmul.f32 0.7978846, %v3520_v20  ;;  %v5106_v63 = vpop.eup %5105 }
 0x7c4   : > { %4103 = vmatmul.bf16.gmra.mxu2 %v3819_v49  ;;  %v3585_v0 = vmul.f32 0.7978846, %v3521_v34  ;;  %v5108_v3 = vpop.eup %5107  ;;  %v3710_v57 = vadd.f32 1.0, %v5106_v63  ;;  %v3265_v20 = vmul.f32 0.5, %v7311_v16 }
 0x7c5   : > { %v3975_v50 = vpop.f32.mrf.mxu3  ;;  %5109 = vtanh.f32 %v3584_v22  ;;  %v3394_v23 = vmul.f32 %v3330_v27, %v7332_v52  ;;  %v3395_v36 = vmul.f32 %v3331_v14, %v7335_v12  ;;  %v3711_v42 = vadd.f32 1.0, %v5108_v3 }
 0x7c6   : > { %v3976_v11 = vadd.f32 %v7341_v47, %v3975_v50  ;;  %v4064_v5 = vpop.f32.mrf.mxu2  ;;  %v3039_v29 = vpop.f32.mrf.mxu1  ;;  %5111 = vtanh.f32 %v3585_v0 }
 0x7c7   : > { %v3040_v17 = vadd.f32 %v3039_v29, %v7039_v58  ;;  %v3128_v8 = vpop.f32.mrf.mxu0  ;;  %v3458_v40 = vmul.f32 %v3394_v23, %v7332_v52  ;;  %v3459_v54 = vmul.f32 %v3395_v36, %v7335_v12  ;;  %v3775_v23 = vmul.f32 %v3711_v42, %v3263_v9 }
 0x7c8   : > { %v4065_v35 = vadd.f32 %v4064_v5, %v3976_v11  ;;  %v3129_v1 = vadd.f32 %v3128_v8, %v7054_v45  ;;  %v3262_v45 = vmul.f32 0.5, %v7288_v25 }
 0x7c9   : > { %v7354_v59 = vadd.f32 %v6891_v6, %v3040_v17  ;;  %v3522_v43 = vadd.f32 %v3458_v40, %v7332_v52  ;;  %v3523_v58 = vadd.f32 %v3459_v54, %v7335_v12 }
 0x7ca   : > { %v7358_v48 = vadd.f32 %v6893_v10, %v3129_v1  ;;  %4144 = vxpose.xlu0.b32.start [1/16] %v4065_v35, 128  ;;  %v3774_v27 = vmul.f32 %v3710_v57, %v3262_v45 }
 0x7cb   : > { %v5110_v60 = vpop.eup %5109  ;;  %v3332_v2 = vmul.f32 0.044715, %v7354_v59  ;;  %v3586_v62 = vmul.f32 0.7978846, %v3522_v43  ;;  %v3587_v63 = vmul.f32 0.7978846, %v3523_v58 }
 0x7cc   : > { %v5112_v37 = vpop.eup %5111  ;;  %v3333_v44 = vmul.f32 0.044715, %v7358_v48  ;;  %v3712_v49 = vadd.f32 1.0, %v5110_v60 }
 0x7cd   : > { %v3977_v34 = vpop.f32.mrf.mxu3  ;;  %v3713_v14 = vadd.f32 1.0, %v5112_v37  ;;  %v3396_v22 = vmul.f32 %v3332_v2, %v7354_v59  ;;  %5113 = vtanh.f32 %v3586_v62 }
 0x7ce   : > { %v3978_v0 = vadd.f32 %v7341_v47, %v3977_v34  ;;  %v4066_v25 = vpop.f32.mrf.mxu2  ;;  %v3042_v50 = vpop.f32.mrf.mxu1  ;;  %v3776_v38 = vmul.f32 %v3712_v49, %v3264_v61  ;;  %v3397_v36 = vmul.f32 %v3333_v44, %v7358_v48  ;;  %5115 = vtanh.f32 %v3587_v63 }
 0x7cf   : > { %v3043_v3 = vadd.f32 %v3042_v50, %v7071_v21  ;;  %v3131_v30 = vpop.f32.mrf.mxu0  ;;  %v3777_v11 = vmul.f32 %v3713_v14, %v3265_v20  ;;  %v3460_v16 = vmul.f32 %v3396_v22, %v7354_v59 }
 0x7d0   : > { %v4067_v5 = vadd.f32 %v4066_v25, %v3978_v0  ;;  %v3132_v29 = vadd.f32 %v3131_v30, %v7075_v24  ;;  %v3820_v17 = vpack.c.bf16 %v3776_v38, %v3774_v27  ;;  %v3461_v8 = vmul.f32 %v3397_v36, %v7358_v48 }
 0x7d1   : > { %v7375_v40 = vadd.f32 %v6891_v6, %v3043_v3  ;;  %v3821_v35 = vpack.c.bf16 %v3777_v11, %v3775_v23  ;;  %v3524_v1 = vadd.f32 %v3460_v16, %v7354_v59  ;;  %v3267_v36 = vmul.f32 0.5, %v7335_v12 }
 0x7d2   : > { %v7379_v21 = vadd.f32 %v6893_v10, %v3132_v29  ;;  %4145 = vxpose.xlu0.b32.cont [2/16] %v4067_v5, 128  ;;  %v3525_v54 = vadd.f32 %v3461_v8, %v7358_v48  ;;  %v3268_v16 = vmul.f32 0.5, %v7354_v59  ;;  %v3269_v8 = vmul.f32 0.5, %v7358_v48 }
 0x7d3   : > { %v3334_v57 = vmul.f32 0.044715, %v7375_v40  ;;  %4019 = vmatmul.bf16.gmra.mxu3 %v3820_v17  ;;  %v3588_v24 = vmul.f32 0.7978846, %v3524_v1  ;;  %v5114_v58 = vpop.eup %5113 }
 0x7d4   : > { %v3335_v43 = vmul.f32 0.044715, %v7379_v21  ;;  %4108 = vmatmul.bf16.gmra.mxu2 %v3821_v35  ;;  %v3589_v42 = vmul.f32 0.7978846, %v3525_v54  ;;  %v5116_v62 = vpop.eup %5115  ;;  %v3714_v63 = vadd.f32 1.0, %v5114_v58 }
 0x7d5   : > { %5117 = vtanh.f32 %v3588_v24  ;;  %v3398_v60 = vmul.f32 %v3334_v57, %v7375_v40  ;;  %v3715_v50 = vadd.f32 1.0, %v5116_v62 }
 0x7d6   : > { %v3980_v2 = vpop.f32.mrf.mxu3  ;;  %v3044_v45 = vpop.f32.mrf.mxu1  ;;  %5119 = vtanh.f32 %v3589_v42  ;;  %v3399_v9 = vmul.f32 %v3335_v43, %v7379_v21 }
 0x7d7   : > { %v3981_v37 = vadd.f32 %v7341_v47, %v3980_v2  ;;  %v4069_v44 = vpop.f32.mrf.mxu2  ;;  %v3045_v61 = vadd.f32 %v3044_v45, %v7100_v28  ;;  %v3133_v49 = vpop.f32.mrf.mxu0  ;;  %v3462_v20 = vmul.f32 %v3398_v60, %v7375_v40 }
 0x7d8   : > { %v3134_v34 = vadd.f32 %v3133_v49, %v7105_v56  ;;  %v3463_v27 = vmul.f32 %v3399_v9, %v7379_v21  ;;  %v3266_v56 = vmul.f32 0.5, %v7332_v52  ;;  %v3779_v52 = vmul.f32 %v3715_v50, %v3267_v36 }
 0x7d9   : > { %v4070_v14 = vadd.f32 %v4069_v44, %v3981_v37  ;;  %v7392_v22 = vadd.f32 %v6891_v6, %v3045_v61  ;;  %v3526_v0 = vadd.f32 %v3462_v20, %v7375_v40 }
 0x7da   : > { %v7396_v25 = vadd.f32 %v6893_v10, %v3134_v34  ;;  %v3527_v28 = vadd.f32 %v3463_v27, %v7379_v21  ;;  %v3778_v17 = vmul.f32 %v3714_v63, %v3266_v56 }
 0x7db   : > { %v5118_v38 = vpop.eup %5117  ;;  %v3336_v23 = vmul.f32 0.044715, %v7392_v22  ;;  %4146 = vxpose.xlu0.b32.cont [3/16] %v4070_v14, 128  ;;  %v3590_v3 = vmul.f32 0.7978846, %v3526_v0 }
 0x7dc   : > { %v5120_v30 = vpop.eup %5119  ;;  %v3337_v11 = vmul.f32 0.044715, %v7396_v25  ;;  %v3716_v5 = vadd.f32 1.0, %v5118_v38  ;;  %v3591_v29 = vmul.f32 0.7978846, %v3527_v28 }
 0x7dd   : > { %v3717_v35 = vadd.f32 1.0, %v5120_v30  ;;  %v3400_v1 = vmul.f32 %v3336_v23, %v7392_v22  ;;  %5121 = vtanh.f32 %v3590_v3 }
 0x7de   : > { %v3982_v54 = vpop.f32.mrf.mxu3  ;;  %v3047_v57 = vpop.f32.mrf.mxu1  ;;  %v3780_v24 = vmul.f32 %v3716_v5, %v3268_v16  ;;  %v3401_v12 = vmul.f32 %v3337_v11, %v7396_v25  ;;  %5123 = vtanh.f32 %v3591_v29 }
 0x7df   : > { %v3983_v43 = vadd.f32 %v7341_v47, %v3982_v54  ;;  %v4071_v42 = vpop.f32.mrf.mxu2  ;;  %v3048_v59 = vadd.f32 %v3047_v57, %v7125_v31  ;;  %v3136_v58 = vpop.f32.mrf.mxu0  ;;  %v3781_v60 = vmul.f32 %v3717_v35, %v3269_v8  ;;  %v3464_v2 = vmul.f32 %v3400_v1, %v7392_v22 }
 0x7e0   : > { %v3137_v48 = vadd.f32 %v3136_v58, %v7133_v7  ;;  %v3822_v45 = vpack.c.bf16 %v3780_v24, %v3778_v17  ;;  %v3465_v9 = vmul.f32 %v3401_v12, %v7396_v25  ;;  %v3271_v24 = vmul.f32 0.5, %v7379_v21 }
 0x7e1   : > { %v4072_v62 = vadd.f32 %v4071_v42, %v3983_v43  ;;  %v7413_v37 = vadd.f32 %v6891_v6, %v3048_v59  ;;  %v3823_v44 = vpack.c.bf16 %v3781_v60, %v3779_v52  ;;  %v3528_v61 = vadd.f32 %v3464_v2, %v7392_v22 }
 0x7e2   : > { %v7417_v49 = vadd.f32 %v6893_v10, %v3137_v48  ;;  %v3529_v31 = vadd.f32 %v3465_v9, %v7396_v25  ;;  %v3272_v42 = vmul.f32 0.5, %v7392_v22  ;;  %v3273_v2 = vmul.f32 0.5, %v7396_v25 }
 0x7e3   : > { %v3338_v20 = vmul.f32 0.044715, %v7413_v37  ;;  %4024 = vmatmul.bf16.gmra.mxu3 %v3822_v45  ;;  %4147 = vxpose.xlu0.b32.cont [4/16] %v4072_v62, 128  ;;  %v3592_v7 = vmul.f32 0.7978846, %v3528_v61  ;;  %v5122_v34 = vpop.eup %5121 }
 0x7e4   : > { %v3339_v27 = vmul.f32 0.044715, %v7417_v49  ;;  %4113 = vmatmul.bf16.gmra.mxu2 %v3823_v44  ;;  %v3593_v14 = vmul.f32 0.7978846, %v3529_v31  ;;  %v5124_v0 = vpop.eup %5123  ;;  %v3718_v17 = vadd.f32 1.0, %v5122_v34 }
 0x7e5   : > { %5125 = vtanh.f32 %v3592_v7  ;;  %v3402_v63 = vmul.f32 %v3338_v20, %v7413_v37  ;;  %v3719_v1 = vadd.f32 1.0, %v5124_v0 }
 0x7e6   : > { %v3985_v50 = vpop.f32.mrf.mxu3  ;;  %v3049_v28 = vpop.f32.mrf.mxu1  ;;  %5127 = vtanh.f32 %v3593_v14  ;;  %v3403_v38 = vmul.f32 %v3339_v27, %v7417_v49 }
 0x7e7   : > { %v3986_v23 = vadd.f32 %v7341_v47, %v3985_v50  ;;  %v4074_v56 = vpop.f32.mrf.mxu2  ;;  %v3050_v36 = vadd.f32 %v3049_v28, %v7155_v51  ;;  %v3138_v3 = vpop.f32.mrf.mxu0  ;;  %v3466_v30 = vmul.f32 %v3402_v63, %v7413_v37 }
 0x7e8   : > { %v3139_v11 = vadd.f32 %v3138_v3, %v7165_v32  ;;  %v3467_v16 = vmul.f32 %v3403_v38, %v7417_v49  ;;  %v3270_v32 = vmul.f32 0.5, %v7375_v40  ;;  %v3783_v40 = vmul.f32 %v3719_v1, %v3271_v24 }
 0x7e9   : > { %v4075_v5 = vadd.f32 %v4074_v56, %v3986_v23  ;;  %v7430_v29 = vadd.f32 %v6891_v6, %v3050_v36  ;;  %v3530_v8 = vadd.f32 %v3466_v30, %v7413_v37 }
 0x7ea   : > { %v7434_v35 = vadd.f32 %v6893_v10, %v3139_v11  ;;  %v3531_v51 = vadd.f32 %v3467_v16, %v7417_v49  ;;  %v3782_v60 = vmul.f32 %v3718_v17, %v3270_v32 }
 0x7eb   : > { %v5126_v54 = vpop.eup %5125  ;;  %v3340_v57 = vmul.f32 0.044715, %v7430_v29  ;;  %4148 = vxpose.xlu0.b32.cont [5/16] %v4075_v5, 128  ;;  %v3594_v52 = vmul.f32 0.7978846, %v3530_v8 }
 0x7ec   : > { %v5128_v12 = vpop.eup %5127  ;;  %v3341_v43 = vmul.f32 0.044715, %v7434_v35  ;;  %v3720_v59 = vadd.f32 1.0, %v5126_v54  ;;  %v3595_v58 = vmul.f32 0.7978846, %v3531_v51 }
 0x7ed   : > { %v3721_v48 = vadd.f32 1.0, %v5128_v12  ;;  %v3404_v45 = vmul.f32 %v3340_v57, %v7430_v29  ;;  %5129 = vtanh.f32 %v3594_v52 }
 0x7ee   : > { %v3987_v9 = vpop.f32.mrf.mxu3  ;;  %v3052_v62 = vpop.f32.mrf.mxu1  ;;  %v3784_v44 = vmul.f32 %v3720_v59, %v3272_v42  ;;  %v3405_v21 = vmul.f32 %v3341_v43, %v7434_v35  ;;  %5131 = vtanh.f32 %v3595_v58 }
 0x7ef   : > { %v3988_v61 = vadd.f32 %v7341_v47, %v3987_v9  ;;  %v4076_v31 = vpop.f32.mrf.mxu2  ;;  %v3053_v22 = vadd.f32 %v3052_v62, %v7187_v53  ;;  %v3141_v20 = vpop.f32.mrf.mxu0  ;;  %v3785_v7 = vmul.f32 %v3721_v48, %v3273_v2  ;;  %v3468_v34 = vmul.f32 %v3404_v45, %v7430_v29 }
 0x7f0   : > { %v3142_v25 = vadd.f32 %v3141_v20, %v7194_v46  ;;  %v3824_v27 = vpack.c.bf16 %v3784_v44, %v3782_v60  ;;  %v3469_v14 = vmul.f32 %v3405_v21, %v7434_v35  ;;  %v3275_v48 = vmul.f32 0.5, %v7417_v49 }
 0x7f1   : > { %v4077_v63 = vadd.f32 %v4076_v31, %v3988_v61  ;;  %v7451_v0 = vadd.f32 %v6891_v6, %v3053_v22  ;;  %v3825_v50 = vpack.c.bf16 %v3785_v7, %v3783_v40  ;;  %v3532_v28 = vadd.f32 %v3468_v34, %v7430_v29 }
 0x7f2   : > { %v7455_v38 = vadd.f32 %v6893_v10, %v3142_v25  ;;  %v3533_v53 = vadd.f32 %v3469_v14, %v7434_v35  ;;  %v3276_v44 = vmul.f32 0.5, %v7430_v29  ;;  %v3277_v31 = vmul.f32 0.5, %v7434_v35 }
 0x7f3   : > { %v3342_v23 = vmul.f32 0.044715, %v7451_v0  ;;  %4029 = vmatmul.bf16.gmra.mxu3 %v3824_v27  ;;  %4149 = vxpose.xlu0.b32.cont [6/16] %v4077_v63, 128  ;;  %v3596_v46 = vmul.f32 0.7978846, %v3532_v28  ;;  %v5130_v56 = vpop.eup %5129 }
 0x7f4   : > { %v3343_v36 = vmul.f32 0.044715, %v7455_v38  ;;  %4118 = vmatmul.bf16.gmra.mxu2 %v3825_v50  ;;  %v3597_v3 = vmul.f32 0.7978846, %v3533_v53  ;;  %v5132_v11 = vpop.eup %5131  ;;  %v3722_v43 = vadd.f32 1.0, %v5130_v56 }
 0x7f5   : > { %5133 = vtanh.f32 %v3596_v46  ;;  %v3406_v30 = vmul.f32 %v3342_v23, %v7451_v0  ;;  %v3723_v58 = vadd.f32 1.0, %v5132_v11 }
 0x7f6   : > { %v3990_v16 = vpop.f32.mrf.mxu3  ;;  %v3054_v5 = vpop.f32.mrf.mxu1  ;;  %5135 = vtanh.f32 %v3597_v3  ;;  %v3407_v17 = vmul.f32 %v3343_v36, %v7455_v38 }
 0x7f7   : > { %v3991_v8 = vadd.f32 %v7341_v47, %v3990_v16  ;;  %v4079_v1 = vpop.f32.mrf.mxu2  ;;  %v3055_v51 = vadd.f32 %v3054_v5, %v7213_v18  ;;  %v3143_v54 = vpop.f32.mrf.mxu0  ;;  %v3470_v57 = vmul.f32 %v3406_v30, %v7451_v0 }
 0x7f8   : > { %v3144_v32 = vadd.f32 %v3143_v54, %v7217_v4  ;;  %v3471_v24 = vmul.f32 %v3407_v17, %v7455_v38  ;;  %v3274_v4 = vmul.f32 0.5, %v7413_v37  ;;  %v3787_v37 = vmul.f32 %v3723_v58, %v3275_v48 }
 0x7f9   : > { %v4080_v52 = vadd.f32 %v4079_v1, %v3991_v8  ;;  %v7468_v12 = vadd.f32 %v6891_v6, %v3055_v51  ;;  %v3534_v42 = vadd.f32 %v3470_v57, %v7451_v0 }
 0x7fa   : > { %v7472_v59 = vadd.f32 %v6893_v10, %v3144_v32  ;;  %v3535_v18 = vadd.f32 %v3471_v24, %v7455_v38  ;;  %v3786_v61 = vmul.f32 %v3722_v43, %v3274_v4 }
 0x7fb   : > { %v5134_v60 = vpop.eup %5133  ;;  %v3344_v2 = vmul.f32 0.044715, %v7468_v12  ;;  %4150 = vxpose.xlu0.b32.cont [7/16] %v4080_v52, 128  ;;  %v3598_v45 = vmul.f32 0.7978846, %v3534_v42 }
 0x7fc   : > { %v5136_v9 = vpop.eup %5135  ;;  %v3345_v62 = vmul.f32 0.044715, %v7472_v59  ;;  %v3724_v40 = vadd.f32 1.0, %v5134_v60  ;;  %v3599_v21 = vmul.f32 0.7978846, %v3535_v18 }
 0x7fd   : > { %v3725_v22 = vadd.f32 1.0, %v5136_v9  ;;  %v3408_v20 = vmul.f32 %v3344_v2, %v7468_v12  ;;  %5137 = vtanh.f32 %v3598_v45 }
 0x7fe   : > { %v3992_v7 = vpop.f32.mrf.mxu3  ;;  %v3057_v34 = vpop.f32.mrf.mxu1  ;;  %v3788_v25 = vmul.f32 %v3724_v40, %v3276_v44  ;;  %v3409_v49 = vmul.f32 %v3345_v62, %v7472_v59  ;;  %5139 = vtanh.f32 %v3599_v21  ;;  %v3279_v40 = vmul.f32 0.5, %v7455_v38 }
 0x7ff   : > { %v3993_v27 = vadd.f32 %v7341_v47, %v3992_v7  ;;  %v4081_v14 = vpop.f32.mrf.mxu2  ;;  %v3058_v29 = vadd.f32 %v3057_v34, %v7241_v39  ;;  %v3146_v63 = vpop.f32.mrf.mxu0  ;;  %v3789_v50 = vmul.f32 %v3725_v22, %v3277_v31  ;;  %v3472_v28 = vmul.f32 %v3408_v20, %v7468_v12 }
 0x800   : > { %v3147_v35 = vadd.f32 %v3146_v63, %v7239_v26  ;;  %v3826_v53 = vpack.c.bf16 %v3788_v25, %v3786_v61  ;;  %v3473_v23 = vmul.f32 %v3409_v49, %v7472_v59  ;;  %v3280_v31 = vmul.f32 0.5, %v7468_v12 }
 0x801   : > { %v4082_v46 = vadd.f32 %v4081_v14, %v3993_v27  ;;  %v7489_v56 = vadd.f32 %v6891_v6, %v3058_v29  ;;  %v3827_v36 = vpack.c.bf16 %v3789_v50, %v3787_v37  ;;  %v3536_v3 = vadd.f32 %v3472_v28, %v7468_v12 }
 0x802   : > { %v7493_v30 = vadd.f32 %v6893_v10, %v3147_v35  ;;  %v3537_v39 = vadd.f32 %v3473_v23, %v7472_v59  ;;  %v3281_v34 = vmul.f32 0.5, %v7472_v59 }
 0x803   : > { %v3346_v11 = vmul.f32 0.044715, %v7489_v56  ;;  %4034 = vmatmul.bf16.gmra.mxu3 %v3826_v53  ;;  %4151 = vxpose.xlu0.b32.cont [8/16] %v4082_v46, 128  ;;  %v3600_v26 = vmul.f32 0.7978846, %v3536_v3  ;;  %v5138_v16 = vpop.eup %5137 }
 0x804   : > { %v3347_v5 = vmul.f32 0.044715, %v7493_v30  ;;  %4123 = vmatmul.bf16.gmra.mxu2 %v3827_v36  ;;  %v3601_v17 = vmul.f32 0.7978846, %v3537_v39  ;;  %v5140_v1 = vpop.eup %5139  ;;  %v3726_v4 = vadd.f32 1.0, %v5138_v16 }
 0x805   : > { %5141 = vtanh.f32 %v3600_v26  ;;  %v3410_v8 = vmul.f32 %v3346_v11, %v7489_v56  ;;  %v3727_v9 = vadd.f32 1.0, %v5140_v1 }
 0x806   : > { %v3995_v51 = vpop.f32.mrf.mxu3  ;;  %v3059_v54 = vpop.f32.mrf.mxu1  ;;  %5143 = vtanh.f32 %v3601_v17  ;;  %v3411_v57 = vmul.f32 %v3347_v5, %v7493_v30 }
 0x807   : > { %v3996_v32 = vadd.f32 %v7341_v47, %v3995_v51  ;;  %v4084_v24 = vpop.f32.mrf.mxu2  ;;  %v3060_v52 = vadd.f32 %v3059_v54, %v7265_v33  ;;  %v3148_v43 = vpop.f32.mrf.mxu0  ;;  %v3474_v42 = vmul.f32 %v3410_v8, %v7489_v56  ;;  %v3791_v29 = vmul.f32 %v3727_v9, %v3279_v40 }
 0x808   : > { %v3149_v58 = vadd.f32 %v3148_v43, %v7263_v19  ;;  %v3475_v18 = vmul.f32 %v3411_v57, %v7493_v30  ;;  %v3278_v19 = vmul.f32 0.5, %v7451_v0  ;;  %v3282_v40 = vmul.f32 0.5, %v7489_v56 }
 0x809   : > { %v4085_v60 = vadd.f32 %v4084_v24, %v3996_v32  ;;  %v7506_v2 = vadd.f32 %v6891_v6, %v3060_v52  ;;  %v3538_v48 = vadd.f32 %v3474_v42, %v7489_v56 }
 0x80a   : > { %v7510_v45 = vadd.f32 %v6893_v10, %v3149_v58  ;;  %v3539_v33 = vadd.f32 %v3475_v18, %v7493_v30  ;;  %v3790_v7 = vmul.f32 %v3726_v4, %v3278_v19 }
 0x80b   : > { %v5142_v62 = vpop.eup %5141  ;;  %v3348_v44 = vmul.f32 0.044715, %v7506_v2  ;;  %4152 = vxpose.xlu0.b32.cont [9/16] %v4085_v60, 128  ;;  %v3602_v20 = vmul.f32 0.7978846, %v3538_v48 }
 0x80c   : > { %v5144_v21 = vpop.eup %5143  ;;  %v3349_v61 = vmul.f32 0.044715, %v7510_v45  ;;  %v3728_v22 = vadd.f32 1.0, %v5142_v62  ;;  %v3603_v38 = vmul.f32 0.7978846, %v3539_v33 }
 0x80d   : > { %v3729_v25 = vadd.f32 1.0, %v5144_v21  ;;  %v3412_v37 = vmul.f32 %v3348_v44, %v7506_v2  ;;  %5145 = vtanh.f32 %v3602_v20  ;;  %v3285_v20 = vmul.f32 0.5, %v7510_v45 }
 0x80e   : > { %v3997_v49 = vpop.f32.mrf.mxu3  ;;  %v3062_v27 = vpop.f32.mrf.mxu1  ;;  %v3792_v14 = vmul.f32 %v3728_v22, %v3280_v31  ;;  %v3413_v0 = vmul.f32 %v3349_v61, %v7510_v45  ;;  %5147 = vtanh.f32 %v3603_v38  ;;  %v3284_v31 = vmul.f32 0.5, %v7506_v2 }
 0x80f   : > { %v3998_v63 = vadd.f32 %v7341_v47, %v3997_v49  ;;  %v4086_v50 = vpop.f32.mrf.mxu2  ;;  %v3063_v12 = vadd.f32 %v3062_v27, %v7297_v13  ;;  %v3151_v28 = vpop.f32.mrf.mxu0  ;;  %v3793_v35 = vmul.f32 %v3729_v25, %v3281_v34  ;;  %v3476_v53 = vmul.f32 %v3412_v37, %v7506_v2 }
 0x810   : > { %v3152_v59 = vadd.f32 %v3151_v28, %v7295_v55  ;;  %v3828_v23 = vpack.c.bf16 %v3792_v14, %v3790_v7  ;;  %v3477_v46 = vmul.f32 %v3413_v0, %v7510_v45 }
 0x811   : > { %v4087_v36 = vadd.f32 %v4086_v50, %v3998_v63  ;;  %v7527_v3 = vadd.f32 %v6891_v6, %v3063_v12  ;;  %v3829_v39 = vpack.c.bf16 %v3793_v35, %v3791_v29  ;;  %v3540_v11 = vadd.f32 %v3476_v53, %v7506_v2 }
 0x812   : > { %v7531_v26 = vadd.f32 %v6893_v10, %v3152_v59  ;;  %v3541_v13 = vadd.f32 %v3477_v46, %v7510_v45 }
 0x813   : > { %v3350_v16 = vmul.f32 0.044715, %v7527_v3  ;;  %4039 = vmatmul.bf16.gmra.mxu3 %v3828_v23  ;;  %4153 = vxpose.xlu0.b32.cont [10/16] %v4087_v36, 128  ;;  %v3604_v55 = vmul.f32 0.7978846, %v3540_v11  ;;  %v5146_v1 = vpop.eup %5145 }
 0x814   : > { %v3351_v5 = vmul.f32 0.044715, %v7531_v26  ;;  %4128 = vmatmul.bf16.gmra.mxu2 %v3829_v39  ;;  %v3605_v17 = vmul.f32 0.7978846, %v3541_v13  ;;  %v5148_v58 = vpop.eup %5147  ;;  %v3730_v62 = vadd.f32 1.0, %v5146_v1 }
 0x815   : > { %5149 = vtanh.f32 %v3604_v55  ;;  %v3414_v8 = vmul.f32 %v3350_v16, %v7527_v3  ;;  %v3731_v21 = vadd.f32 1.0, %v5148_v58 }
 0x816   : > { %v4000_v51 = vpop.f32.mrf.mxu3  ;;  %v3064_v54 = vpop.f32.mrf.mxu1  ;;  %5151 = vtanh.f32 %v3605_v17  ;;  %v3415_v57 = vmul.f32 %v3351_v5, %v7531_v26  ;;  %v3794_v37 = vmul.f32 %v3730_v62, %v3282_v40  ;;  %v3286_v17 = vmul.f32 0.5, %v7527_v3 }
 0x817   : > { %v4001_v32 = vadd.f32 %v7341_v47, %v4000_v51  ;;  %v4089_v24 = vpop.f32.mrf.mxu2  ;;  %v3065_v52 = vadd.f32 %v3064_v54, %v7322_v41  ;;  %v3153_v43 = vpop.f32.mrf.mxu0  ;;  %v3478_v42 = vmul.f32 %v3414_v8, %v7527_v3  ;;  %v3287_v51 = vmul.f32 0.5, %v7531_v26 }
 0x818   : > { %v3154_v18 = vadd.f32 %v3153_v43, %v7320_v15  ;;  %v3479_v60 = vmul.f32 %v3415_v57, %v7531_v26 }
 0x819   : > { %v4090_v4 = vadd.f32 %v4089_v24, %v4001_v32  ;;  %v3224_v48 = vadd.f32 %v6891_v6, %v3065_v52  ;;  %v3542_v9 = vadd.f32 %v3478_v42, %v7527_v3  ;;  %v3283_v6 = vmul.f32 0.5, %v7493_v30 }
 0x81a   : > { %v3225_v33 = vadd.f32 %v6893_v10, %v3154_v18  ;;  %v3543_v44 = vadd.f32 %v3479_v60, %v7531_v26 }
 0x81b   : > { %v5150_v19 = vpop.eup %5149  ;;  %v3352_v41 = vmul.f32 0.044715, %v3224_v48  ;;  %4154 = vxpose.xlu0.b32.cont [11/16] %v4090_v4, 128  ;;  %v3606_v34 = vmul.f32 0.7978846, %v3542_v9  ;;  %v3795_v0 = vmul.f32 %v3731_v21, %v3283_v6  ;;  %v3288_v8 = vmul.f32 0.5, %v3224_v48 }
 0x81c   : > { %v5152_v61 = vpop.eup %5151  ;;  %v3353_v15 = vmul.f32 0.044715, %v3225_v33  ;;  %v3732_v22 = vadd.f32 1.0, %v5150_v19  ;;  %v3607_v14 = vmul.f32 0.7978846, %v3543_v44  ;;  %v3289_v54 = vmul.f32 0.5, %v3225_v33 }
 0x81d   : > { %v3733_v7 = vadd.f32 1.0, %v5152_v61  ;;  %v3416_v10 = vmul.f32 %v3352_v41, %v3224_v48  ;;  %5153 = vtanh.f32 %v3606_v34 }
 0x81e   : > { %v4002_v25 = vpop.f32.mrf.mxu3  ;;  %v3796_v49 = vmul.f32 %v3732_v22, %v3284_v31  ;;  %v3417_v27 = vmul.f32 %v3353_v15, %v3225_v33  ;;  %5155 = vtanh.f32 %v3607_v14 }
 0x81f   : > { %v4003_v56 = vadd.f32 %v7341_v47, %v4002_v25  ;;  %v4091_v29 = vpop.f32.mrf.mxu2  ;;  %v3797_v38 = vmul.f32 %v3733_v7, %v3285_v20  ;;  %v3480_v63 = vmul.f32 %v3416_v10, %v3224_v48 }
 0x820   : > { %v3830_v2 = vpack.c.bf16 %v3796_v49, %v3794_v37  ;;  %v3481_v50 = vmul.f32 %v3417_v27, %v3225_v33 }
 0x821   : > { %v4092_v12 = vadd.f32 %v4091_v29, %v4003_v56  ;;  %v3831_v30 = vpack.c.bf16 %v3797_v38, %v3795_v0  ;;  %v3544_v28 = vadd.f32 %v3480_v63, %v3224_v48 }
 0x822   : > { %v3545_v45 = vadd.f32 %v3481_v50, %v3225_v33 }
 0x823   : > { %4044 = vmatmul.bf16.gmra.mxu3 %v3830_v2  ;;  %4155 = vxpose.xlu0.b32.cont [12/16] %v4092_v12, 128  ;;  %v3608_v35 = vmul.f32 0.7978846, %v3544_v28  ;;  %v5154_v23 = vpop.eup %5153 }
 0x824   : > { %4133 = vmatmul.bf16.gmra.mxu2 %v3831_v30  ;;  %v3609_v53 = vmul.f32 0.7978846, %v3545_v45  ;;  %v5156_v39 = vpop.eup %5155  ;;  %v3734_v13 = vadd.f32 1.0, %v5154_v23 }
 0x825   : > { %5157 = vtanh.f32 %v3608_v35  ;;  %v3735_v55 = vadd.f32 1.0, %v5156_v39 }
 0x826   : > { %v4005_v59 = vpop.f32.mrf.mxu3  ;;  %5159 = vtanh.f32 %v3609_v53  ;;  %v3798_v24 = vmul.f32 %v3734_v13, %v3286_v17 }
 0x827   : > { %v4006_v46 = vadd.f32 %v7341_v47, %v4005_v59  ;;  %v4094_v36 = vpop.f32.mrf.mxu2  ;;  %v3799_v58 = vmul.f32 %v3735_v55, %v3287_v51 }
 0x829   : > { %v4095_v11 = vadd.f32 %v4094_v36, %v4006_v46 }
 0x82b   : > { %v5158_v16 = vpop.eup %5157  ;;  %4156 = vxpose.xlu0.b32.cont [13/16] %v4095_v11, 128 }
 0x82c   : > { %v5160_v5 = vpop.eup %5159  ;;  %v3736_v1 = vadd.f32 1.0, %v5158_v16 }
 0x82d   : > { %v3737_v57 = vadd.f32 1.0, %v5160_v5 }
 0x82e   : > { %v4007_v32 = vpop.f32.mrf.mxu3  ;;  %v3800_v52 = vmul.f32 %v3736_v1, %v3288_v8 }
 0x82f   : > { %v4008_v43 = vadd.f32 %v7341_v47, %v4007_v32  ;;  %v4096_v42 = vpop.f32.mrf.mxu2  ;;  %v3801_v18 = vmul.f32 %v3737_v57, %v3289_v54 }
 0x830   : > { %v3832_v60 = vpack.c.bf16 %v3800_v52, %v3798_v24 }
 0x831   : > { %v4097_v4 = vadd.f32 %v4096_v42, %v4008_v43  ;;  %v3833_v9 = vpack.c.bf16 %v3801_v18, %v3799_v58 }
 0x833   : > { %4157 = vxpose.xlu0.b32.cont [14/16] %v4097_v4, 128  ;;  %4049 = vmatmul.bf16.gmra.mxu3 %v3832_v60 }
 0x834   : > { %4138 = vmatmul.bf16.gmra.mxu2 %v3833_v9 }
 0x836   : > { %v4010_v3 = vpop.f32.mrf.mxu3 }
 0x837   : > { %v4011_v48 = vadd.f32 %v7341_v47, %v4010_v3  ;;  %v4099_v26 = vpop.f32.mrf.mxu2 }
 0x839   : > { %v4100_v33 = vadd.f32 %v4099_v26, %v4011_v48 }
 0x83b   : > { %4158 = vxpose.xlu0.b32.cont [15/16] %v4100_v33, 128  ;;  %v5169_v33 = vld [vmem:[%s7660_s15] ss:$0 sm:$0xff] }
 0x83e   : > { %v4012_v62 = vpop.f32.mrf.mxu3 }
 0x83f   : > { %v4013_v44 = vadd.f32 %v7341_v47, %v4012_v62  ;;  %v4101_v19 = vpop.f32.mrf.mxu2 }
 0x841   : > { %v4102_v41 = vadd.f32 %v4101_v19, %v4013_v44 }
 0x843   : > { %4159 = vxpose.xlu0.b32.end [16/16] %v4102_v41, 128 }
 0x846   : > { %v4015_v40 = vpop.f32.mrf.mxu3 }
 0x847   : > { %v4016_v21 = vadd.f32 %v7341_v47, %v4015_v40  ;;  %v4104_v61 = vpop.f32.mrf.mxu2 }
 0x849   : > { %v4105_v15 = vadd.f32 %v4104_v61, %v4016_v21 }
 0x84b   : > { %4176 = vxpose.xlu1.b32.start [1/16] %v4105_v15, 128 }
 0x84e   : > { %v4017_v31 = vpop.f32.mrf.mxu3 }
 0x84f   : > { %v4018_v22 = vadd.f32 %v7341_v47, %v4017_v31  ;;  %v4106_v6 = vpop.f32.mrf.mxu2 }
 0x851   : > { %v4107_v20 = vadd.f32 %v4106_v6, %v4018_v22 }
 0x853   : > { %4177 = vxpose.xlu1.b32.cont [2/16] %v4107_v20, 128 }
 0x856   : > { %v4020_v7 = vpop.f32.mrf.mxu3 }
 0x857   : > { %v4021_v10 = vadd.f32 %v7341_v47, %v4020_v7  ;;  %v4109_v34 = vpop.f32.mrf.mxu2 }
 0x859   : > { %v4110_v25 = vadd.f32 %v4109_v34, %v4021_v10 }
 0x85b   : > { %4178 = vxpose.xlu1.b32.cont [3/16] %v4110_v25, 128 }
 0x85e   : > { %v4022_v37 = vpop.f32.mrf.mxu3 }
 0x85f   : > { %v4023_v49 = vadd.f32 %v7341_v47, %v4022_v37  ;;  %v4111_v27 = vpop.f32.mrf.mxu2 }
 0x861   : > { %v4112_v14 = vadd.f32 %v4111_v27, %v4023_v49 }
 0x863   : > { %4179 = vxpose.xlu1.b32.cont [4/16] %v4112_v14, 128 }
 0x866   : > { %v4025_v56 = vpop.f32.mrf.mxu3 }
 0x867   : > { %v4026_v29 = vadd.f32 %v7341_v47, %v4025_v56  ;;  %v4114_v0 = vpop.f32.mrf.mxu2 }
 0x869   : > { %v4115_v38 = vadd.f32 %v4114_v0, %v4026_v29 }
 0x86b   : > { %4180 = vxpose.xlu1.b32.cont [5/16] %v4115_v38, 128 }
 0x86e   : > { %v4027_v63 = vpop.f32.mrf.mxu3 }
 0x86f   : > { %v4028_v2 = vadd.f32 %v7341_v47, %v4027_v63  ;;  %v4116_v50 = vpop.f32.mrf.mxu2  ;;  %v4160_v43 = vpop.trf.xlu0 }
 0x870   : > { %4208 = vst [vmem:[%s7572_s22] sm:$0xff] %v4160_v43 }
 0x871   : > { %v4117_v12 = vadd.f32 %v4116_v50, %v4028_v2 }
 0x873   : > { %4181 = vxpose.xlu1.b32.cont [6/16] %v4117_v12, 128 }
 0x876   : > { %v4030_v30 = vpop.f32.mrf.mxu3 }
 0x877   : > { %v4031_v28 = vadd.f32 %v7341_v47, %v4030_v30  ;;  %v4119_v45 = vpop.f32.mrf.mxu2  ;;  %v4161_v61 = vpop.trf.xlu0 }
 0x878   : > { %4210 = vst [vmem:[%s7572_s22 + $0x10] sm:$0xff] %v4161_v61 }
 0x879   : > { %v4120_v35 = vadd.f32 %v4119_v45, %v4031_v28 }
 0x87b   : > { %4182 = vxpose.xlu1.b32.cont [7/16] %v4120_v35, 128 }
 0x87e   : > { %v4032_v53 = vpop.f32.mrf.mxu3 }
 0x87f   : > { %v4033_v59 = vadd.f32 %v7341_v47, %v4032_v53  ;;  %v4121_v23 = vpop.f32.mrf.mxu2  ;;  %v4162_v15 = vpop.trf.xlu0 }
 0x880   : > { %4212 = vst [vmem:[%s7572_s22 + $0x20] sm:$0xff] %v4162_v15 }
 0x881   : > { %v4122_v46 = vadd.f32 %v4121_v23, %v4033_v59 }
 0x883   : > { %4183 = vxpose.xlu1.b32.cont [8/16] %v4122_v46, 128 }
 0x886   : > { %v4035_v36 = vpop.f32.mrf.mxu3 }
 0x887   : > { %v4036_v39 = vadd.f32 %v7341_v47, %v4035_v36  ;;  %v4124_v11 = vpop.f32.mrf.mxu2  ;;  %v4163_v31 = vpop.trf.xlu0 }
 0x888   : > { %4214 = vst [vmem:[%s7572_s22 + $0x30] sm:$0xff] %v4163_v31 }
 0x889   : > { %v4125_v13 = vadd.f32 %v4124_v11, %v4036_v39 }
 0x88b   : > { %4184 = vxpose.xlu1.b32.cont [9/16] %v4125_v13, 128 }
 0x88e   : > { %v4037_v16 = vpop.f32.mrf.mxu3 }
 0x88f   : > { %v4038_v55 = vadd.f32 %v7341_v47, %v4037_v16  ;;  %v4126_v5 = vpop.f32.mrf.mxu2  ;;  %v4164_v22 = vpop.trf.xlu0 }
 0x890   : > { %4216 = vst [vmem:[%s7572_s22 + $0x40] sm:$0xff] %v4164_v22 }
 0x891   : > { %v4127_v17 = vadd.f32 %v4126_v5, %v4038_v55 }
 0x893   : > { %4185 = vxpose.xlu1.b32.cont [10/16] %v4127_v17, 128 }
 0x896   : > { %v4040_v8 = vpop.f32.mrf.mxu3 }
 0x897   : > { %v4041_v1 = vadd.f32 %v7341_v47, %v4040_v8  ;;  %v4129_v51 = vpop.f32.mrf.mxu2  ;;  %v4165_v20 = vpop.trf.xlu0 }
 0x898   : > { %4218 = vst [vmem:[%s7572_s22 + $0x50] sm:$0xff] %v4165_v20 }
 0x899   : > { %v4130_v54 = vadd.f32 %v4129_v51, %v4041_v1 }
 0x89b   : > { %4186 = vxpose.xlu1.b32.cont [11/16] %v4130_v54, 128 }
 0x89e   : > { %v4042_v57 = vpop.f32.mrf.mxu3 }
 0x89f   : > { %v4043_v32 = vadd.f32 %v7341_v47, %v4042_v57  ;;  %v4131_v24 = vpop.f32.mrf.mxu2  ;;  %v4166_v10 = vpop.trf.xlu0 }
 0x8a0   : > { %4220 = vst [vmem:[%s7572_s22 + $0x60] sm:$0xff] %v4166_v10 }
 0x8a1   : > { %v4132_v52 = vadd.f32 %v4131_v24, %v4043_v32 }
 0x8a3   : > { %4187 = vxpose.xlu1.b32.cont [12/16] %v4132_v52, 128 }
 0x8a6   : > { %v4045_v42 = vpop.f32.mrf.mxu3 }
 0x8a7   : > { %v4046_v58 = vadd.f32 %v7341_v47, %v4045_v42  ;;  %v4134_v18 = vpop.f32.mrf.mxu2  ;;  %v4167_v25 = vpop.trf.xlu0 }
 0x8a8   : > { %4222 = vst [vmem:[%s7572_s22 + $0x70] sm:$0xff] %v4167_v25 }
 0x8a9   : > { %v4135_v60 = vadd.f32 %v4134_v18, %v4046_v58 }
 0x8ab   : > { %4188 = vxpose.xlu1.b32.cont [13/16] %v4135_v60, 128 }
 0x8ae   : > { %v4047_v4 = vpop.f32.mrf.mxu3 }
 0x8af   : > { %v4048_v9 = vadd.f32 %v7341_v47, %v4047_v4  ;;  %v4136_v3 = vpop.f32.mrf.mxu2  ;;  %v4168_v49 = vpop.trf.xlu0 }
 0x8b0   : > { %4224 = vst [vmem:[%s7572_s22 + $0x80] sm:$0xff] %v4168_v49 }
 0x8b1   : > { %v4137_v48 = vadd.f32 %v4136_v3, %v4048_v9 }
 0x8b3   : > { %4189 = vxpose.xlu1.b32.cont [14/16] %v4137_v48, 128 }
 0x8b6   : > { %v4050_v26 = vpop.f32.mrf.mxu3 }
 0x8b7   : > { %v4051_v62 = vadd.f32 %v5169_v33, %v4050_v26  ;;  %v4139_v44 = vpop.f32.mrf.mxu2  ;;  %v4169_v14 = vpop.trf.xlu0 }
 0x8b8   : > { %4226 = vst [vmem:[%s7572_s22 + $0x90] sm:$0xff] %v4169_v14 }
 0x8b9   : > { %v4140_v19 = vadd.f32 %v4139_v44, %v4051_v62 }
 0x8bb   : > { %4190 = vxpose.xlu1.b32.cont [15/16] %v4140_v19, 128 }
 0x8be   : > { %v4052_v41 = vpop.f32.mrf.mxu3 }
 0x8bf   : > { %v4053_v47 = vadd.f32 %v5169_v33, %v4052_v41  ;;  %v4141_v40 = vpop.f32.mrf.mxu2  ;;  %v4170_v29 = vpop.trf.xlu0 }
 0x8c0   : > { %4228 = vst [vmem:[%s7572_s22 + $0xa0] sm:$0xff] %v4170_v29 }
 0x8c1   : > { %v4142_v21 = vadd.f32 %v4141_v40, %v4053_v47 }
 0x8c3   : > { %4191 = vxpose.xlu1.b32.end [16/16] %v4142_v21, 128 }
 0x8c7   : > { %v4171_v38 = vpop.trf.xlu0 }
 0x8c8   : > { %4230 = vst [vmem:[%s7572_s22 + $0xb0] sm:$0xff] %v4171_v38 }
 0x8cf   : > { %v4172_v2 = vpop.trf.xlu0 }
 0x8d0   : > { %4232 = vst [vmem:[%s7572_s22 + $0xc0] sm:$0xff] %v4172_v2 }
 0x8d7   : > { %v4173_v12 = vpop.trf.xlu0 }
 0x8d8   : > { %4234 = vst [vmem:[%s7572_s22 + $0xd0] sm:$0xff] %v4173_v12 }
 0x8df   : > { %v4174_v28 = vpop.trf.xlu0 }
 0x8e0   : > { %4236 = vst [vmem:[%s7572_s22 + $0xe0] sm:$0xff] %v4174_v28 }
 0x8e7   : > { %v4175_v35 = vpop.trf.xlu0 }
 0x8e8   : > { %4238 = vst [vmem:[%s7572_s22 + $0xf0] sm:$0xff] %v4175_v35 }
 0x8ef   : > { %v4192_v6 = vpop.trf.xlu1 }
 0x8f0   : > { %4209 = vst [vmem:[%s7572_s22 + $0x8] sm:$0xff] %v4192_v6 }
 0x8f7   : > { %v4193_v7 = vpop.trf.xlu1 }
 0x8f8   : > { %4211 = vst [vmem:[%s7572_s22 + $0x18] sm:$0xff] %v4193_v7 }
 0x8ff   : > { %v4194_v34 = vpop.trf.xlu1 }
 0x900   : > { %4213 = vst [vmem:[%s7572_s22 + $0x28] sm:$0xff] %v4194_v34 }
 0x907   : > { %v4195_v37 = vpop.trf.xlu1 }
 0x908   : > { %4215 = vst [vmem:[%s7572_s22 + $0x38] sm:$0xff] %v4195_v37 }
 0x90f   : > { %v4196_v27 = vpop.trf.xlu1 }
 0x910   : > { %4217 = vst [vmem:[%s7572_s22 + $0x48] sm:$0xff] %v4196_v27 }
 0x917   : > { %v4197_v56 = vpop.trf.xlu1 }
 0x918   : > { %4219 = vst [vmem:[%s7572_s22 + $0x58] sm:$0xff] %v4197_v56 }
 0x91f   : > { %v4198_v0 = vpop.trf.xlu1 }
 0x920   : > { %4221 = vst [vmem:[%s7572_s22 + $0x68] sm:$0xff] %v4198_v0 }
 0x927   : > { %v4199_v63 = vpop.trf.xlu1 }
 0x928   : > { %4223 = vst [vmem:[%s7572_s22 + $0x78] sm:$0xff] %v4199_v63 }
 0x92f   : > { %v4200_v50 = vpop.trf.xlu1 }
 0x930   : > { %4225 = vst [vmem:[%s7572_s22 + $0x88] sm:$0xff] %v4200_v50 }
 0x937   : > { %v4201_v30 = vpop.trf.xlu1 }
 0x938   : > { %4227 = vst [vmem:[%s7572_s22 + $0x98] sm:$0xff] %v4201_v30 }
 0x93f   : > { %v4202_v45 = vpop.trf.xlu1 }
 0x940   : > { %4229 = vst [vmem:[%s7572_s22 + $0xa8] sm:$0xff] %v4202_v45 }
 0x947   : > { %v4203_v53 = vpop.trf.xlu1 }
 0x948   : > { %4231 = vst [vmem:[%s7572_s22 + $0xb8] sm:$0xff] %v4203_v53 }
 0x94f   : > { %v4204_v59 = vpop.trf.xlu1 }
 0x950   : > { %4233 = vst [vmem:[%s7572_s22 + $0xc8] sm:$0xff] %v4204_v59 }
 0x957   : > { %v4205_v23 = vpop.trf.xlu1 }
 0x958   : > { %4235 = vst [vmem:[%s7572_s22 + $0xd8] sm:$0xff] %v4205_v23 }
 0x95f   : > { %v4206_v46 = vpop.trf.xlu1 }
 0x960   : > { %4237 = vst [vmem:[%s7572_s22 + $0xe8] sm:$0xff] %v4206_v46 }
 0x967   : > { %v4207_v36 = vpop.trf.xlu1 }
 0x968   : > { %4239 = vst [vmem:[%s7572_s22 + $0xf8] sm:$0xff] %v4207_v36 }
 0x969   : > { %5287 = shalt.err (!%p5284_p10)
}
 0x96a   : > { %s5343_s12 = smov 256   ;;  %s5344_s22 = smov 16  }
 0x96b   : > { %4691 = dma.vmem_to_hbm [thread:$0]  (%p5502_p5), %s4254_s25, 4096, %s4256_s16, %s4241_s28, %s5343_s12, %s5343_s12, %s5344_s22  }
 0x96c PF: > { %s7748_s0 = sld [smem:[#allocation13_spill]]  ;;  %p7750_p12 = scmp.ge.s32.totalorder %s5330_s26, 2 }
 0x96e   : > { %p4705_p13 = pnand %p7750_p12, %p5468_p6 }
 0x970   : > { %p4706_p0 = pneg %p4705_p13 }
 0x972   : > { %s4270_s1 = sand.u32 1, %s7748_s0  }
 0x973   : > { %s4271_s10 = scalar_lea.sflag [#allocation5], %s4270_s1 }
 0x974   : > { %5313 = dma.done.wait (%p4706_p0), %s4271_s10, 4096  }
 0x975   : > { %5315 = vsyncadd (%p4706_p0), %s4271_s10, 4294963200  ;;  %s7751_s26 = sld [smem:[#allocation16_spill]]  ;;  %s7754_s23 = smov %s5322_s24 }
 0x976   : > { %s7752_s18 = sld [smem:[#allocation14_spill]] }
 0x977   : > { %s7753_s25 = sld [smem:[#allocation17_spill]] }
 0x97b   : > { %p32_p3 = scmp.ge.s32.totalorder %s7751_s26, 4  }
 0x97c   : > { %s7755_s24 = smov %s7752_s18 }
 0x97d   :  { %34 = sbr.rel (!%p32_p3) target bundleno = 12 (0xc), region = 137 }
 0x982   :  { %4277 = vsyncpa [#allocation4], 1 }
 0x983   :  { %4279 = vsyncpa [#allocation4 + $0x1], 1 }
 0x984   :  { %4280 = vsyncpa [#allocation7], 1 }
 0x985   :  { %4281 = vsyncpa [#allocation5], 1 }
 0x986   :  { %4283 = vsyncpa [#allocation5 + $0x1], 1 }

</bundles_post_ra>
